<compile_context>
chip_gen: v7x
topology: tpu7x:2x2x1
jax: 0.10.0
libtpu: 0.0.40
codegen_flags: <defaults>
</compile_context>

<pallas_src>
import math
import functools

import numpy as np
import jax
import jax.numpy as jnp
from jax import lax
from jax.experimental import pallas as pl
from jax.experimental.pallas import tpu as pltpu


# ----------------------------------------------------------------------------
# Helpers
# ----------------------------------------------------------------------------
def _ru(x, m):
    return (x + m - 1) // m * m


_VMEM_LIMIT = 48 * 1024 * 1024        # <= ~48 MiB: safe on v7x (64 MiB/TC)
_K_SINGLE_TILE_MAX = 7168             # largest K kept as a single K tile
_TM_LARGE = 256                       # M tile when M > 512 (>=2 blocks -> both
                                      # v7x TensorCores get work)


# ----------------------------------------------------------------------------
# Pallas fused GEMM kernels
#   out = maybe_relu(A @ W + bias [+ residual])     (bias per output column)
# ----------------------------------------------------------------------------
def _gemm1k_kernel(apply_relu, has_res, *refs):
    """Single K-tile variant (no accumulator scratch, one epilogue)."""
    if has_res:
        a_ref, b_ref, c_ref, r_ref, o_ref = refs
    else:
        a_ref, b_ref, c_ref, o_ref = refs
        r_ref = None
    acc = jnp.dot(a_ref[...], b_ref[...], preferred_element_type=jnp.float32)
    acc = acc + c_ref[...]
    if has_res:
        acc = acc + r_ref[...].astype(jnp.float32)
    if apply_relu:
        acc = jnp.maximum(acc, 0.0)
    o_ref[...] = acc.astype(o_ref.dtype)


def _gemm_acc_kernel(apply_relu, has_res, *refs):
    """Multi K-tile variant: f32 VMEM accumulator, epilogue on the last step."""
    if has_res:
        a_ref, b_ref, c_ref, r_ref, o_ref, acc_ref = refs
    else:
        a_ref, b_ref, c_ref, o_ref, acc_ref = refs
        r_ref = None

    @pl.when(pl.program_id(2) == 0)
    def _():
        acc_ref[...] = jnp.zeros_like(acc_ref)

    acc_ref[...] += jnp.dot(a_ref[...], b_ref[...],
                            preferred_element_type=jnp.float32)

    @pl.when(pl.program_id(2) == pl.num_programs(2) - 1)
    def _():
        r = acc_ref[...] + c_ref[...]
        if has_res:
            r = r + r_ref[...].astype(jnp.float32)
        if apply_relu:
            r = jnp.maximum(r, 0.0)
        o_ref[...] = r.astype(o_ref.dtype)


def fused_gemm(a, w, bias, relu, residual=None):
    """a: (M, K) bf16.  w: (K, N) bf16 (BN scale folded in).  bias: (1, N) f32.

    Returns (M, N) bf16 = maybe_relu(a @ w + bias [+ residual]).
    """
    M, K = a.shape
    Kw, N = w.shape
    assert Kw == K, (Kw, K)
    has_res = residual is not None

    # --- tiny-problem bypass: padded Pallas launch would be pure overhead ---
    if M < 64 or N < 64:
        out = jnp.dot(a, w, preferred_element_type=jnp.float32) + bias
        if has_res:
            out = out + residual.astype(jnp.float32)
        if relu:
            out = jnp.maximum(out, 0.0)
        return out.astype(jnp.bfloat16)

    # --- tile sizes (block == full dim wherever possible -> no padding) ---
    if M <= 512:
        tm, Mp = M, M
    else:
        tm, Mp = _TM_LARGE, _ru(M, _TM_LARGE)
    if N <= 512:
        tn, Np = N, N
    else:
        tn, Np = 256, _ru(N, 256)
    if K <= _K_SINGLE_TILE_MAX:
        tk, Kp = K, K
    else:
        tk, Kp = 512, _ru(K, 512)
    nk = Kp // tk

    a_p = a if (Mp == M and Kp == K) else jnp.pad(a, ((0, Mp - M), (0, Kp - K)))
    w_p = w if (Kp == K and Np == N) else jnp.pad(w, ((0, Kp - K), (0, Np - N)))
    b_p = bias if Np == N else jnp.pad(bias, ((0, 0), (0, Np - N)))

    inputs = [a_p, w_p, b_p]
    if has_res:
        r_p = residual.astype(jnp.bfloat16)
        if Mp != M or Np != N:
            r_p = jnp.pad(r_p, ((0, Mp - M), (0, Np - N)))
        inputs.append(r_p)

    if nk == 1:
        in_specs = [
            pl.BlockSpec((tm, tk), lambda i, j: (i, 0)),
            pl.BlockSpec((tk, tn), lambda i, j: (0, j)),
            pl.BlockSpec((1, tn), lambda i, j: (0, j)),
        ]
        if has_res:
            in_specs.append(pl.BlockSpec((tm, tn), lambda i, j: (i, j)))
        out = pl.pallas_call(
            functools.partial(_gemm1k_kernel, bool(relu), has_res),
            out_shape=jax.ShapeDtypeStruct((Mp, Np), jnp.bfloat16),
            grid_spec=pltpu.PrefetchScalarGridSpec(
                num_scalar_prefetch=0,
                grid=(Mp // tm, Np // tn),
                in_specs=in_specs,
                out_specs=pl.BlockSpec((tm, tn), lambda i, j: (i, j)),
            ),
            compiler_params=pltpu.CompilerParams(
                dimension_semantics=("parallel", "parallel"),
                vmem_limit_bytes=_VMEM_LIMIT,
            ),
        )(*inputs)
    else:
        in_specs = [
            pl.BlockSpec((tm, tk), lambda i, j, k: (i, k)),
            pl.BlockSpec((tk, tn), lambda i, j, k: (k, j)),
            pl.BlockSpec((1, tn), lambda i, j, k: (0, j)),
        ]
        if has_res:
            in_specs.append(pl.BlockSpec((tm, tn), lambda i, j, k: (i, j)))
        out = pl.pallas_call(
            functools.partial(_gemm_acc_kernel, bool(relu), has_res),
            out_shape=jax.ShapeDtypeStruct((Mp, Np), jnp.bfloat16),
            grid_spec=pltpu.PrefetchScalarGridSpec(
                num_scalar_prefetch=0,
                grid=(Mp // tm, Np // tn, nk),
                in_specs=in_specs,
                out_specs=pl.BlockSpec((tm, tn), lambda i, j, k: (i, j)),
                scratch_shapes=[pltpu.VMEM((tm, tn), jnp.float32)],
            ),
            compiler_params=pltpu.CompilerParams(
                dimension_semantics=("parallel", "parallel", "arbitrary"),
                vmem_limit_bytes=_VMEM_LIMIT,
            ),
        )(*inputs)

    if Mp != M or Np != N:
        out = out[:M, :N]
    return out


# ----------------------------------------------------------------------------
# Conv / pooling / upsampling glue (im2col in JAX, GEMM in Pallas)
# ----------------------------------------------------------------------------
def im2col(x, kh, kw, stride, padding):
    """x: NHWC bf16 -> (N*Ho*Wo, kh*kw*C), Ho, Wo, N."""
    N, H, W, C = x.shape
    Ho = (H + 2 * padding - kh) // stride + 1
    Wo = (W + 2 * padding - kw) // stride + 1
    xp = x
    if padding:
        xp = jnp.pad(x, ((0, 0), (padding, padding), (padding, padding), (0, 0)))
    cols = []
    for i in range(kh):
        for j in range(kw):
            cols.append(xp[:, i:i + stride * Ho:stride, j:j + stride * Wo:stride, :])
    patches = jnp.concatenate(cols, axis=-1)           # (N, Ho, Wo, kh*kw*C)
    return patches.reshape(N * Ho * Wo, kh * kw * C), Ho, Wo, N


def conv_bn(x, cp, k, stride, padding, relu, residual=None):
    """cp = {'w': (K,N) bf16 (scale folded), 'b': (1,N) f32}; k is the kernel size."""
    a, Ho, Wo, N = im2col(x, k, k, stride, padding)
    res2d = None
    if residual is not None:
        res2d = residual.reshape(N * Ho * Wo, residual.shape[-1])
    out = fused_gemm(a, cp['w'], cp['b'], relu, res2d)
    return out.reshape(N, Ho, Wo, cp['w'].shape[1])


def maxpool3x3_s2(x):
    init = jnp.array(-jnp.inf, dtype=x.dtype)
    return lax.reduce_window(x, init, lax.max,
                             window_dimensions=(1, 3, 3, 1),
                             window_strides=(1, 2, 2, 1),
                             padding=((0, 0), (1, 1), (1, 1), (0, 0)))


def _interp_matrix(out_size, in_size):
    """align_corners=True bilinear interpolation matrix (static, numpy)."""
    m = np.zeros((out_size, in_size), np.float32)
    if out_size == 1 or in_size == 1:
        m[:, 0] = 1.0
        return m
    src = np.arange(out_size, dtype=np.float64) * (in_size - 1) / (out_size - 1)
    i0 = np.floor(src).astype(np.int64)
    i0 = np.minimum(i0, in_size - 1)
    i1 = np.minimum(i0 + 1, in_size - 1)
    w = (src - i0).astype(np.float32)
    m[np.arange(out_size), i0] += 1.0 - w
    m[np.arange(out_size), i1] += w
    return m


def bilinear_upsample(x, scale):
    """nn.Upsample(scale_factor=scale, mode='bilinear', align_corners=True)."""
    N, H, W, C = x.shape
    Ho, Wo = int(H * scale), int(W * scale)
    if Ho == H and Wo == W:
        return x
    My = jnp.asarray(_interp_matrix(Ho, H))
    Mx = jnp.asarray(_interp_matrix(Wo, W))
    t = jnp.einsum('ph,nhwc->npwc', My, x.astype(jnp.float32))
    t = jnp.einsum('qw,npwc->npqc', Mx, t)
    return t.astype(x.dtype)


def pad_or_crop(x, t, b, l, r):
    """F.pad-like constant pad on H/W; negative values crop (static ints)."""
    if t < 0:
        x = x[:, -t:, :, :]; t = 0
    if b < 0:
        x = x[:, :x.shape[1] + b, :, :]; b = 0
    if l < 0:
        x = x[:, :, -l:, :]; l = 0
    if r < 0:
        x = x[:, :, :x.shape[2] + r, :]; r = 0
    if t or b or l or r:
        x = jnp.pad(x, ((0, 0), (t, b), (l, r), (0, 0)))
    return x


# ----------------------------------------------------------------------------
# Network blocks
# ----------------------------------------------------------------------------
def basic_block(x, p, stride):
    out = conv_bn(x, p['conv1'], 3, stride, 1, relu=True)
    if 'ds_conv' in p:
        identity = conv_bn(x, p['ds_conv'], 1, stride, 0, relu=False)
    else:
        identity = x
    # residual add + final ReLU fused into the conv2 GEMM epilogue
    out = conv_bn(out, p['conv2'], 3, 1, 1, relu=True, residual=identity)
    return out


def run_layer(x, blocks, first_stride):
    x = basic_block(x, blocks[0], first_stride)
    for bp in blocks[1:]:
        x = basic_block(x, bp, 1)
    return x


def se_block(x, p):
    # Micro-GEMMs (M=batch, N<=channels): plain XLA dot (not worth a Pallas launch).
    y = jnp.mean(x.astype(jnp.float32), axis=(1, 2))                  # (N, C)
    y = jnp.maximum(y @ p['fc1']['w'] + p['fc1']['b'], 0.0)
    y = jax.nn.sigmoid(y @ p['fc2']['w'] + p['fc2']['b'])
    return x * y.astype(x.dtype)[:, None, None, :]


def up_block(x1, x2, cp, scale):
    if scale != 1:
        x1 = bilinear_upsample(x1, scale)
    dH = x2.shape[1] - x1.shape[1]
    dW = x2.shape[2] - x1.shape[2]
    x1 = pad_or_crop(x1, dH // 2, dH - dH // 2, dW // 2, dW - dW // 2)
    x = jnp.concatenate([x2, x1], axis=-1)                            # cat on C
    x = conv_bn(x, cp, 3, 1, 1, relu=True)
    # TODO(synk): nn.Dropout() is stochastic in train mode; treated as identity (eval).
    return x


def apsnet_forward(params, x_nchw):
    x = jnp.transpose(x_nchw, (0, 2, 3, 1)).astype(jnp.bfloat16)      # -> NHWC bf16
    x = conv_bn(x, params['conv1'], 7, 2, 3, relu=True)               # 7x7 s2
    x1 = maxpool3x3_s2(x)
    x1 = se_block(x1, params['se1'])
    x2 = run_layer(x1, params['layer1'], 1)
    x2 = se_block(x2, params['se2'])
    x3 = run_layer(x2, params['layer2'], 2)
    x3 = se_block(x3, params['se3'])
    x4 = run_layer(x3, params['layer3'], 2)
    x4 = se_block(x4, params['se4'])
    x5 = run_layer(x4, params['layer4'], 2)

    feat = jnp.mean(x5.astype(jnp.float32), axis=(1, 2))              # (N, 512)
    logits = feat @ params['fc']['w'] + params['fc']['b']             # tiny GEMM

    y = up_block(x5, x4, params['up4'], 2)
    y = up_block(y, x3, params['up3'], 2)
    y = up_block(y, x2, params['up2'], 2)
    y = up_block(y, x1, params['up1'], 1)
    y = conv_bn(y, params['outconv'], 3, 1, 1, relu=False)
    return logits, jnp.transpose(y.astype(jnp.float32), (0, 3, 1, 2))  # -> NCHW


# ----------------------------------------------------------------------------
# Parameter preparation (done ONCE, outside jit):
#   fold BN, fold BN scale into bf16 weight columns, reshape HWIO -> (K, N).
# The prepared pytree contains ONLY arrays (no Python ints -> jit-safe).
# ----------------------------------------------------------------------------
def _prep_conv_bn(cp, bnp, eps=1e-5):
    kh, kw, cin, cout = cp['w'].shape
    inv = bnp['gamma'] / jnp.sqrt(bnp['var'] + eps)
    w2d = (cp['w'].reshape(kh * kw * cin, cout) * inv[None, :]).astype(jnp.bfloat16)
    bias = ((cp['b'] - bnp['mean']) * inv + bnp['beta']).astype(jnp.float32)
    return {'w': w2d, 'b': bias.reshape(1, cout)}


def _prep_conv_only(cp):
    kh, kw, cin, cout = cp['w'].shape
    return {'w': cp['w'].reshape(kh * kw * cin, cout).astype(jnp.bfloat16),
            'b': cp['b'].astype(jnp.float32).reshape(1, cout)}


def prepare_params(p):
    q = {'conv1': _prep_conv_bn(p['conv1'], p['bn1'])}

    def prep_block(bp):
        out = {'conv1': _prep_conv_bn(bp['conv1'], bp['bn1']),
               'conv2': _prep_conv_bn(bp['conv2'], bp['bn2'])}
        if 'ds_conv' in bp:
            out['ds_conv'] = _prep_conv_bn(bp['ds_conv'], bp['ds_bn'])
        return out

    for name in ('layer1', 'layer2', 'layer3', 'layer4'):
        q[name] = [prep_block(bp) for bp in p[name]]
    for name in ('se1', 'se2', 'se3', 'se4', 'fc'):
        q[name] = p[name]
    for name in ('up4', 'up3', 'up2', 'up1'):
        q[name] = _prep_conv_bn(p[name]['conv'], p[name]['bn'])
    q['outconv'] = _prep_conv_only(p['outconv'])
    return q


# ----------------------------------------------------------------------------
# Deterministic raw-parameter initialization (shapes from the PyTorch __init__)
# ----------------------------------------------------------------------------
class KeyGen:
    def __init__(self, key):
        self.key = key

    def __call__(self):
        self.key, sub = jax.random.split(self.key)
        return sub


def init_conv(kg, cin, cout, k):
    fan_out = cout * k * k
    std = math.sqrt(2.0 / fan_out)            # kaiming_normal_(fan_out, relu)
    w = std * jax.random.normal(kg(), (k, k, cin, cout), jnp.float32)
    return {'w': w, 'b': jnp.zeros((cout,), jnp.float32)}


def init_bn(c):
    return {'gamma': jnp.ones((c,), jnp.float32), 'beta': jnp.zeros((c,), jnp.float32),
            'mean': jnp.zeros((c,), jnp.float32), 'var': jnp.ones((c,), jnp.float32)}


def init_linear(kg, cin, cout):
    std = 1.0 / math.sqrt(cin)
    w = std * jax.random.normal(kg(), (cin, cout), jnp.float32)
    return {'w': w, 'b': jnp.zeros((cout,), jnp.float32)}


def init_se(kg, c, reduction=16):
    return {'fc1': init_linear(kg, c, c // reduction),
            'fc2': init_linear(kg, c // reduction, c)}


def init_basic_block(kg, inplanes, planes, stride):
    p = {'conv1': init_conv(kg, inplanes, planes, 3), 'bn1': init_bn(planes),
         'conv2': init_conv(kg, planes, planes, 3), 'bn2': init_bn(planes)}
    if stride != 1 or inplanes != planes:
        p['ds_conv'] = init_conv(kg, inplanes, planes, 1)
        p['ds_bn'] = init_bn(planes)
    return p


def init_apsnet(kg, layers=(2, 2, 2, 2), num_classes=2):
    p = {'conv1': init_conv(kg, 3, 64, 7), 'bn1': init_bn(64)}
    inplanes = [64]

    def make_layer(planes, blocks, stride):
        blks = [init_basic_block(kg, inplanes[0], planes, stride)]
        inplanes[0] = planes
        for _ in range(1, blocks):
            blks.append(init_basic_block(kg, inplanes[0], planes, 1))
        return blks

    p['layer1'] = make_layer(64, layers[0], 1)
    p['layer2'] = make_layer(128, layers[1], 2)
    p['layer3'] = make_layer(256, layers[2], 2)
    p['layer4'] = make_layer(512, layers[3], 2)
    p['fc'] = init_linear(kg, 512, num_classes)
    p['se1'] = init_se(kg, 64)
    p['se2'] = init_se(kg, 64)
    p['se3'] = init_se(kg, 128)
    p['se4'] = init_se(kg, 256)
    p['up4'] = {'conv': init_conv(kg, 512 + 256, 256, 3), 'bn': init_bn(256)}
    p['up3'] = {'conv': init_conv(kg, 256 + 128, 128, 3), 'bn': init_bn(128)}
    p['up2'] = {'conv': init_conv(kg, 128 + 64, 64, 3), 'bn': init_bn(64)}
    p['up1'] = {'conv': init_conv(kg, 64 + 64, 64, 3), 'bn': init_bn(64)}
    p['outconv'] = init_conv(kg, 64, 1, 3)
    return p


# ----------------------------------------------------------------------------
if __name__ == "__main__":
    root = jax.random.PRNGKey(0)
    pkey, xkey = jax.random.split(root)
    raw_params = init_apsnet(KeyGen(pkey))
    params = prepare_params(raw_params)    # fold BN + scale, bf16-cast once

    # small, consistent input: batch=2, 3 channels, 32x32 spatial
    x = jax.random.normal(xkey, (2, 3, 32, 32), jnp.float32)

    fwd = jax.jit(apsnet_forward)
    logits, seg = fwd(params, x)
    jax.block_until_ready((logits, seg))

    assert logits.shape == (2, 2), logits.shape
    assert seg.shape == (2, 1, 8, 8), seg.shape
    assert bool(jnp.all(jnp.isfinite(logits))) and bool(jnp.all(jnp.isfinite(seg)))
    print("KERNEL_OK")
</pallas_src>

<mosaic_0001>
module attributes {stable_mosaic.version = 11 : i64} {
  func.func @_gemm1k_kernel(%arg0: i32, %arg1: i32, %arg2: memref<512x147xbf16, #tpu.memory_space<vmem>>, %arg3: memref<147x64xbf16, #tpu.memory_space<vmem>>, %arg4: memref<1x64xf32, #tpu.memory_space<vmem>>, %arg5: memref<512x64xbf16, #tpu.memory_space<vmem>>) attributes {dimension_semantics = [#tpu.dimension_semantics<parallel>, #tpu.dimension_semantics<parallel>], iteration_bounds = array<i64: 1, 1>, scalar_prefetch = 0 : i64, scratch_operands = 0 : i64, tpu.core_type = #tpu.core_type<tc>, window_params = [{transform_indices = @transform_0, window_bounds = array<i64: 512, 147>}, {transform_indices = @transform_1, window_bounds = array<i64: 147, 64>}, {transform_indices = @transform_2, window_bounds = array<i64: 1, 64>}, {transform_indices = @transform_3, window_bounds = array<i64: 512, 64>}]} {
    %c0 = arith.constant 0 : index
    %c0_0 = arith.constant 0 : index
    %0 = vector.load %arg2[%c0, %c0_0] : memref<512x147xbf16, #tpu.memory_space<vmem>>, vector<512x147xbf16>
    %c0_1 = arith.constant 0 : index
    %c0_2 = arith.constant 0 : index
    %1 = vector.load %arg3[%c0_1, %c0_2] : memref<147x64xbf16, #tpu.memory_space<vmem>>, vector<147x64xbf16>
    %cst = arith.constant dense<0.000000e+00> : vector<512x64xf32>
    %2 = tpu.matmul %0, %1, %cst {dimension_numbers = #tpu.dot_dimension_numbers<[1], [0], [0], [1], [0, 0, 1, 1], [], []>} : vector<512x147xbf16>, vector<147x64xbf16>, vector<512x64xf32> -> vector<512x64xf32>
    %c0_3 = arith.constant 0 : index
    %c0_4 = arith.constant 0 : index
    %3 = vector.load %arg4[%c0_3, %c0_4] : memref<1x64xf32, #tpu.memory_space<vmem>>, vector<1x64xf32>
    %4 = vector.broadcast %3 : vector<1x64xf32> to vector<512x64xf32>
    %5 = arith.addf %2, %4 : vector<512x64xf32>
    %cst_5 = arith.constant 0.000000e+00 : f32
    %6 = vector.broadcast %cst_5 : f32 to vector<512x64xf32>
    %7 = arith.maximumf %5, %6 : vector<512x64xf32>
    %8 = arith.truncf %7 : vector<512x64xf32> to vector<512x64xbf16>
    %c0_6 = arith.constant 0 : index
    %c0_7 = arith.constant 0 : index
    %9 = vector.load %arg5[%c0_6, %c0_7] : memref<512x64xbf16, #tpu.memory_space<vmem>>, vector<512x64xbf16>
    tpu.vector_store %arg5[%c0_6, %c0_7], %8 {strides = array<i32>} : memref<512x64xbf16, #tpu.memory_space<vmem>>, vector<512x64xbf16>,
    return
  }
  func.func @transform_0(%arg0: i32, %arg1: i32) -> (i32, i32) {
    %c0_i32 = arith.constant 0 : i32
    %c0_i32_0 = arith.constant 0 : i32
    return %arg0, %c0_i32 : i32, i32
  }
  func.func @transform_1(%arg0: i32, %arg1: i32) -> (i32, i32) {
    %c0_i32 = arith.constant 0 : i32
    %c0_i32_0 = arith.constant 0 : i32
    return %c0_i32, %arg1 : i32, i32
  }
  func.func @transform_2(%arg0: i32, %arg1: i32) -> (i32, i32) {
    %c0_i32 = arith.constant 0 : i32
    %c0_i32_0 = arith.constant 0 : i32
    return %c0_i32, %arg1 : i32, i32
  }
  func.func @transform_3(%arg0: i32, %arg1: i32) -> (i32, i32) {
    %c0_i32 = arith.constant 0 : i32
    return %arg0, %arg1 : i32, i32
  }
}

module attributes {stable_mosaic.version = 11 : i64} {
  func.func @_gemm1k_kernel(%arg0: i32, %arg1: i32, %arg2: memref<128x576xbf16, #tpu.memory_space<vmem>>, %arg3: memref<576x64xbf16, #tpu.memory_space<vmem>>, %arg4: memref<1x64xf32, #tpu.memory_space<vmem>>, %arg5: memref<128x64xbf16, #tpu.memory_space<vmem>>) attributes {dimension_semantics = [#tpu.dimension_semantics<parallel>, #tpu.dimension_semantics<parallel>], iteration_bounds = array<i64: 1, 1>, scalar_prefetch = 0 : i64, scratch_operands = 0 : i64, tpu.core_type = #tpu.core_type<tc>, window_params = [{transform_indices = @transform_0, window_bounds = array<i64: 128, 576>}, {transform_indices = @transform_1, window_bounds = array<i64: 576, 64>}, {transform_indices = @transform_2, window_bounds = array<i64: 1, 64>}, {transform_indices = @transform_3, window_bounds = array<i64: 128, 64>}]} {
    %c0 = arith.constant 0 : index
    %c0_0 = arith.constant 0 : index
    %0 = vector.load %arg2[%c0, %c0_0] : memref<128x576xbf16, #tpu.memory_space<vmem>>, vector<128x576xbf16>
    %c0_1 = arith.constant 0 : index
    %c0_2 = arith.constant 0 : index
    %1 = vector.load %arg3[%c0_1, %c0_2] : memref<576x64xbf16, #tpu.memory_space<vmem>>, vector<576x64xbf16>
    %cst = arith.constant dense<0.000000e+00> : vector<128x64xf32>
    %2 = tpu.matmul %0, %1, %cst {dimension_numbers = #tpu.dot_dimension_numbers<[1], [0], [0], [1], [0, 0, 1, 1], [], []>} : vector<128x576xbf16>, vector<576x64xbf16>, vector<128x64xf32> -> vector<128x64xf32>
    %c0_3 = arith.constant 0 : index
    %c0_4 = arith.constant 0 : index
    %3 = vector.load %arg4[%c0_3, %c0_4] : memref<1x64xf32, #tpu.memory_space<vmem>>, vector<1x64xf32>
    %4 = vector.broadcast %3 : vector<1x64xf32> to vector<128x64xf32>
    %5 = arith.addf %2, %4 : vector<128x64xf32>
    %cst_5 = arith.constant 0.000000e+00 : f32
    %6 = vector.broadcast %cst_5 : f32 to vector<128x64xf32>
    %7 = arith.maximumf %5, %6 : vector<128x64xf32>
    %8 = arith.truncf %7 : vector<128x64xf32> to vector<128x64xbf16>
    %c0_6 = arith.constant 0 : index
    %c0_7 = arith.constant 0 : index
    %9 = vector.load %arg5[%c0_6, %c0_7] : memref<128x64xbf16, #tpu.memory_space<vmem>>, vector<128x64xbf16>
    tpu.vector_store %arg5[%c0_6, %c0_7], %8 {strides = array<i32>} : memref<128x64xbf16, #tpu.memory_space<vmem>>, vector<128x64xbf16>,
    return
  }
  func.func @transform_0(%arg0: i32, %arg1: i32) -> (i32, i32) {
    %c0_i32 = arith.constant 0 : i32
    %c0_i32_0 = arith.constant 0 : i32
    return %arg0, %c0_i32 : i32, i32
  }
  func.func @transform_1(%arg0: i32, %arg1: i32) -> (i32, i32) {
    %c0_i32 = arith.constant 0 : i32
    %c0_i32_0 = arith.constant 0 : i32
    return %c0_i32, %arg1 : i32, i32
  }
  func.func @transform_2(%arg0: i32, %arg1: i32) -> (i32, i32) {
    %c0_i32 = arith.constant 0 : i32
    %c0_i32_0 = arith.constant 0 : i32
    return %c0_i32, %arg1 : i32, i32
  }
  func.func @transform_3(%arg0: i32, %arg1: i32) -> (i32, i32) {
    %c0_i32 = arith.constant 0 : i32
    return %arg0, %arg1 : i32, i32
  }
}

module attributes {stable_mosaic.version = 11 : i64} {
  func.func @_gemm1k_kernel(%arg0: i32, %arg1: i32, %arg2: memref<128x576xbf16, #tpu.memory_space<vmem>>, %arg3: memref<576x64xbf16, #tpu.memory_space<vmem>>, %arg4: memref<1x64xf32, #tpu.memory_space<vmem>>, %arg5: memref<128x64xbf16, #tpu.memory_space<vmem>>, %arg6: memref<128x64xbf16, #tpu.memory_space<vmem>>) attributes {dimension_semantics = [#tpu.dimension_semantics<parallel>, #tpu.dimension_semantics<parallel>], iteration_bounds = array<i64: 1, 1>, scalar_prefetch = 0 : i64, scratch_operands = 0 : i64, tpu.core_type = #tpu.core_type<tc>, window_params = [{transform_indices = @transform_0, window_bounds = array<i64: 128, 576>}, {transform_indices = @transform_1, window_bounds = array<i64: 576, 64>}, {transform_indices = @transform_2, window_bounds = array<i64: 1, 64>}, {transform_indices = @transform_3, window_bounds = array<i64: 128, 64>}, {transform_indices = @transform_4, window_bounds = array<i64: 128, 64>}]} {
    %c0 = arith.constant 0 : index
    %c0_0 = arith.constant 0 : index
    %0 = vector.load %arg2[%c0, %c0_0] : memref<128x576xbf16, #tpu.memory_space<vmem>>, vector<128x576xbf16>
    %c0_1 = arith.constant 0 : index
    %c0_2 = arith.constant 0 : index
    %1 = vector.load %arg3[%c0_1, %c0_2] : memref<576x64xbf16, #tpu.memory_space<vmem>>, vector<576x64xbf16>
    %cst = arith.constant dense<0.000000e+00> : vector<128x64xf32>
    %2 = tpu.matmul %0, %1, %cst {dimension_numbers = #tpu.dot_dimension_numbers<[1], [0], [0], [1], [0, 0, 1, 1], [], []>} : vector<128x576xbf16>, vector<576x64xbf16>, vector<128x64xf32> -> vector<128x64xf32>
    %c0_3 = arith.constant 0 : index
    %c0_4 = arith.constant 0 : index
    %3 = vector.load %arg4[%c0_3, %c0_4] : memref<1x64xf32, #tpu.memory_space<vmem>>, vector<1x64xf32>
    %4 = vector.broadcast %3 : vector<1x64xf32> to vector<128x64xf32>
    %5 = arith.addf %2, %4 : vector<128x64xf32>
    %c0_5 = arith.constant 0 : index
    %c0_6 = arith.constant 0 : index
    %6 = vector.load %arg5[%c0_5, %c0_6] : memref<128x64xbf16, #tpu.memory_space<vmem>>, vector<128x64xbf16>
    %7 = arith.extf %6 : vector<128x64xbf16> to vector<128x64xf32>
    %8 = arith.addf %5, %7 : vector<128x64xf32>
    %cst_7 = arith.constant 0.000000e+00 : f32
    %9 = vector.broadcast %cst_7 : f32 to vector<128x64xf32>
    %10 = arith.maximumf %8, %9 : vector<128x64xf32>
    %11 = arith.truncf %10 : vector<128x64xf32> to vector<128x64xbf16>
    %c0_8 = arith.constant 0 : index
    %c0_9 = arith.constant 0 : index
    %12 = vector.load %arg6[%c0_8, %c0_9] : memref<128x64xbf16, #tpu.memory_space<vmem>>, vector<128x64xbf16>
    tpu.vector_store %arg6[%c0_8, %c0_9], %11 {strides = array<i32>} : memref<128x64xbf16, #tpu.memory_space<vmem>>, vector<128x64xbf16>,
    return
  }
  func.func @transform_0(%arg0: i32, %arg1: i32) -> (i32, i32) {
    %c0_i32 = arith.constant 0 : i32
    %c0_i32_0 = arith.constant 0 : i32
    return %arg0, %c0_i32 : i32, i32
  }
  func.func @transform_1(%arg0: i32, %arg1: i32) -> (i32, i32) {
    %c0_i32 = arith.constant 0 : i32
    %c0_i32_0 = arith.constant 0 : i32
    return %c0_i32, %arg1 : i32, i32
  }
  func.func @transform_2(%arg0: i32, %arg1: i32) -> (i32, i32) {
    %c0_i32 = arith.constant 0 : i32
    %c0_i32_0 = arith.constant 0 : i32
    return %c0_i32, %arg1 : i32, i32
  }
  func.func @transform_3(%arg0: i32, %arg1: i32) -> (i32, i32) {
    %c0_i32 = arith.constant 0 : i32
    return %arg0, %arg1 : i32, i32
  }
  func.func @transform_4(%arg0: i32, %arg1: i32) -> (i32, i32) {
    %c0_i32 = arith.constant 0 : i32
    return %arg0, %arg1 : i32, i32
  }
}

module attributes {stable_mosaic.version = 11 : i64} {
  func.func @_gemm1k_kernel(%arg0: i32, %arg1: i32, %arg2: memref<128x1728xbf16, #tpu.memory_space<vmem>>, %arg3: memref<1728x64xbf16, #tpu.memory_space<vmem>>, %arg4: memref<1x64xf32, #tpu.memory_space<vmem>>, %arg5: memref<128x64xbf16, #tpu.memory_space<vmem>>) attributes {dimension_semantics = [#tpu.dimension_semantics<parallel>, #tpu.dimension_semantics<parallel>], iteration_bounds = array<i64: 1, 1>, scalar_prefetch = 0 : i64, scratch_operands = 0 : i64, tpu.core_type = #tpu.core_type<tc>, window_params = [{transform_indices = @transform_0, window_bounds = array<i64: 128, 1728>}, {transform_indices = @transform_1, window_bounds = array<i64: 1728, 64>}, {transform_indices = @transform_2, window_bounds = array<i64: 1, 64>}, {transform_indices = @transform_3, window_bounds = array<i64: 128, 64>}]} {
    %c0 = arith.constant 0 : index
    %c0_0 = arith.constant 0 : index
    %0 = vector.load %arg2[%c0, %c0_0] : memref<128x1728xbf16, #tpu.memory_space<vmem>>, vector<128x1728xbf16>
    %c0_1 = arith.constant 0 : index
    %c0_2 = arith.constant 0 : index
    %1 = vector.load %arg3[%c0_1, %c0_2] : memref<1728x64xbf16, #tpu.memory_space<vmem>>, vector<1728x64xbf16>
    %cst = arith.constant dense<0.000000e+00> : vector<128x64xf32>
    %2 = tpu.matmul %0, %1, %cst {dimension_numbers = #tpu.dot_dimension_numbers<[1], [0], [0], [1], [0, 0, 1, 1], [], []>} : vector<128x1728xbf16>, vector<1728x64xbf16>, vector<128x64xf32> -> vector<128x64xf32>
    %c0_3 = arith.constant 0 : index
    %c0_4 = arith.constant 0 : index
    %3 = vector.load %arg4[%c0_3, %c0_4] : memref<1x64xf32, #tpu.memory_space<vmem>>, vector<1x64xf32>
    %4 = vector.broadcast %3 : vector<1x64xf32> to vector<128x64xf32>
    %5 = arith.addf %2, %4 : vector<128x64xf32>
    %cst_5 = arith.constant 0.000000e+00 : f32
    %6 = vector.broadcast %cst_5 : f32 to vector<128x64xf32>
    %7 = arith.maximumf %5, %6 : vector<128x64xf32>
    %8 = arith.truncf %7 : vector<128x64xf32> to vector<128x64xbf16>
    %c0_6 = arith.constant 0 : index
    %c0_7 = arith.constant 0 : index
    %9 = vector.load %arg5[%c0_6, %c0_7] : memref<128x64xbf16, #tpu.memory_space<vmem>>, vector<128x64xbf16>
    tpu.vector_store %arg5[%c0_6, %c0_7], %8 {strides = array<i32>} : memref<128x64xbf16, #tpu.memory_space<vmem>>, vector<128x64xbf16>,
    return
  }
  func.func @transform_0(%arg0: i32, %arg1: i32) -> (i32, i32) {
    %c0_i32 = arith.constant 0 : i32
    %c0_i32_0 = arith.constant 0 : i32
    return %arg0, %c0_i32 : i32, i32
  }
  func.func @transform_1(%arg0: i32, %arg1: i32) -> (i32, i32) {
    %c0_i32 = arith.constant 0 : i32
    %c0_i32_0 = arith.constant 0 : i32
    return %c0_i32, %arg1 : i32, i32
  }
  func.func @transform_2(%arg0: i32, %arg1: i32) -> (i32, i32) {
    %c0_i32 = arith.constant 0 : i32
    %c0_i32_0 = arith.constant 0 : i32
    return %c0_i32, %arg1 : i32, i32
  }
  func.func @transform_3(%arg0: i32, %arg1: i32) -> (i32, i32) {
    %c0_i32 = arith.constant 0 : i32
    return %arg0, %arg1 : i32, i32
  }
}

module attributes {stable_mosaic.version = 11 : i64} {
  func.func @_gemm1k_kernel(%arg0: i32, %arg1: i32, %arg2: memref<128x1152xbf16, #tpu.memory_space<vmem>>, %arg3: memref<1152x64xbf16, #tpu.memory_space<vmem>>, %arg4: memref<1x64xf32, #tpu.memory_space<vmem>>, %arg5: memref<128x64xbf16, #tpu.memory_space<vmem>>) attributes {dimension_semantics = [#tpu.dimension_semantics<parallel>, #tpu.dimension_semantics<parallel>], iteration_bounds = array<i64: 1, 1>, scalar_prefetch = 0 : i64, scratch_operands = 0 : i64, tpu.core_type = #tpu.core_type<tc>, window_params = [{transform_indices = @transform_0, window_bounds = array<i64: 128, 1152>}, {transform_indices = @transform_1, window_bounds = array<i64: 1152, 64>}, {transform_indices = @transform_2, window_bounds = array<i64: 1, 64>}, {transform_indices = @transform_3, window_bounds = array<i64: 128, 64>}]} {
    %c0 = arith.constant 0 : index
    %c0_0 = arith.constant 0 : index
    %0 = vector.load %arg2[%c0, %c0_0] : memref<128x1152xbf16, #tpu.memory_space<vmem>>, vector<128x1152xbf16>
    %c0_1 = arith.constant 0 : index
    %c0_2 = arith.constant 0 : index
    %1 = vector.load %arg3[%c0_1, %c0_2] : memref<1152x64xbf16, #tpu.memory_space<vmem>>, vector<1152x64xbf16>
    %cst = arith.constant dense<0.000000e+00> : vector<128x64xf32>
    %2 = tpu.matmul %0, %1, %cst {dimension_numbers = #tpu.dot_dimension_numbers<[1], [0], [0], [1], [0, 0, 1, 1], [], []>} : vector<128x1152xbf16>, vector<1152x64xbf16>, vector<128x64xf32> -> vector<128x64xf32>
    %c0_3 = arith.constant 0 : index
    %c0_4 = arith.constant 0 : index
    %3 = vector.load %arg4[%c0_3, %c0_4] : memref<1x64xf32, #tpu.memory_space<vmem>>, vector<1x64xf32>
    %4 = vector.broadcast %3 : vector<1x64xf32> to vector<128x64xf32>
    %5 = arith.addf %2, %4 : vector<128x64xf32>
    %cst_5 = arith.constant 0.000000e+00 : f32
    %6 = vector.broadcast %cst_5 : f32 to vector<128x64xf32>
    %7 = arith.maximumf %5, %6 : vector<128x64xf32>
    %8 = arith.truncf %7 : vector<128x64xf32> to vector<128x64xbf16>
    %c0_6 = arith.constant 0 : index
    %c0_7 = arith.constant 0 : index
    %9 = vector.load %arg5[%c0_6, %c0_7] : memref<128x64xbf16, #tpu.memory_space<vmem>>, vector<128x64xbf16>
    tpu.vector_store %arg5[%c0_6, %c0_7], %8 {strides = array<i32>} : memref<128x64xbf16, #tpu.memory_space<vmem>>, vector<128x64xbf16>,
    return
  }
  func.func @transform_0(%arg0: i32, %arg1: i32) -> (i32, i32) {
    %c0_i32 = arith.constant 0 : i32
    %c0_i32_0 = arith.constant 0 : i32
    return %arg0, %c0_i32 : i32, i32
  }
  func.func @transform_1(%arg0: i32, %arg1: i32) -> (i32, i32) {
    %c0_i32 = arith.constant 0 : i32
    %c0_i32_0 = arith.constant 0 : i32
    return %c0_i32, %arg1 : i32, i32
  }
  func.func @transform_2(%arg0: i32, %arg1: i32) -> (i32, i32) {
    %c0_i32 = arith.constant 0 : i32
    %c0_i32_0 = arith.constant 0 : i32
    return %c0_i32, %arg1 : i32, i32
  }
  func.func @transform_3(%arg0: i32, %arg1: i32) -> (i32, i32) {
    %c0_i32 = arith.constant 0 : i32
    return %arg0, %arg1 : i32, i32
  }
}

</mosaic_0001>

<bundles_post_ra>
// kernel: apsnet_forward.7
= control target key start
LH: loop header
LB: loop body
LE: loop exit
PB: predicated region body
PF: predicated region fallthrough
CT: control target
= control target key end

     0   :  { %v1595_v0 = vmov 0   ;;  %vm450_vm0 = vcmask 154624   ;;  %vm547_vm1 = vcmask 1040384   ;;  %vm548_vm2 = vcmask 1041408   ;;  %s2196_s1 = inlined_call_operand.vmem [shape: bf16[147,64], index: 1, kind: input, shape index: {}]   ;;  %s2197_s0 = inlined_call_operand.vmem [shape: bf16[512,147], index: 0, kind: input, shape index: {}]   ;;  %s2198_s2 = inlined_call_operand.vmem [shape: f32[1,64], index: 2, kind: input, shape index: {}]   ;;  %s2199_s3 = inlined_call_operand.vmem [shape: bf16[512,64], index: 3, kind: output, shape index: {}]  }
   0x1   :  { %554 = vmatprep.subr.bf16.mxu0 %v1595_v0  ;;  %1467 = vmatprep.subr.bf16.mxu1 %v1595_v0  ;;  %v1489_v1 = vld [vmem:[%s2196_s1] sm:$0xff]   ;;  %v1490_v2 = vld [vmem:[%s2196_s1 + $0x8] sm:$0xff]   ;;  %v1491_v3 = vld [vmem:[%s2196_s1 + $0x10] sm:$0xff]   ;;  %v1596_v11 = vmov 65535   ;;  %vm1163_vm3 = vcmask 519168  }
   0x2   :  { %555 = vmatpush1.bf16.msra.mxu0 %v1489_v1  ;;  %1477 = vmatpush1.bf16.msra.mxu1 %v1489_v1  ;;  %v1492_v4 = vld [vmem:[%s2196_s1 + $0x18] sm:$0xff]   ;;  %v1501_v5 = vld [vmem:[%s2197_s0 + $0x4] ss:$8 sps:$4 sm:$0xff]   ;;  %v1495_v9 = vld [vmem:[%s2196_s1 + $0x30] sm:$0xff]   ;;  %v549_v12 = vsel %vm547_vm1, 4294967295, %v1596_v11 }
   0x3   :  { %556 = vmatprep.subr.bf16.mxu0 %v1595_v0  ;;  %1468 = vmatprep.subr.bf16.mxu1 %v1595_v0  ;;  %v1504_v6 = vld [vmem:[%s2197_s0 + $0x104] ss:$8 sps:$4 sm:$0xff]   ;;  %v1496_v10 = vld [vmem:[%s2196_s1 + $0x38] sm:$0xff]   ;;  %v1498_v14 = vld [vmem:[%s2196_s1 + $0x48] ss:$0 sps:$4 sm:$0x33]  }
   0x4   :  { %1307 = vmatprep.mubr.msk.bf16.mxu0 %vm450_vm0, %v1501_v5  ;;  %v1493_v7 = vld [vmem:[%s2196_s1 + $0x20] sm:$0xff]   ;;  %1323 = vmatprep.mubr.msk.bf16.mxu1 %vm450_vm0, %v1504_v6  ;;  %v1494_v8 = vld [vmem:[%s2196_s1 + $0x28] sm:$0xff]   ;;  %v550_v15 = vsel %vm548_vm2, %v549_v12, 0  ;;  %v1505_v19 = vld [vmem:[%s2197_s0 + $0x14] ss:$8 sps:$4 sm:$0xff]  }
   0x5   :  { %v1497_v13 = vld [vmem:[%s2196_s1 + $0x40] sm:$0xff]   ;;  %v552_v16 = vand.u32 %v1498_v14, %v550_v15  ;;  %v1507_v20 = vld [vmem:[%s2197_s0 + $0x114] ss:$8 sps:$4 sm:$0xff]   ;;  %v1509_v21 = vld [vmem:[%s2197_s0 + $0x10] ss:$8 sps:$4 sm:$0xff]  }
   0x6   :  { %557 = vmatpush1.bf16.msra.mxu0 %v1490_v2  ;;  %1478 = vmatpush1.bf16.msra.mxu1 %v1490_v2  ;;  %v1499_v17 = vld [vmem:[%s2197_s0] ss:$8 sps:$4 sm:$0xff]   ;;  %v1510_v22 = vld [vmem:[%s2197_s0 + $0x110] ss:$8 sps:$4 sm:$0xff]   ;;  %v1511_v23 = vld [vmem:[%s2197_s0 + $0x24] ss:$8 sps:$4 sm:$0xff]  }
   0x7   :  { %558 = vmatprep.subr.bf16.mxu0 %v1595_v0  ;;  %1469 = vmatprep.subr.bf16.mxu1 %v1595_v0  ;;  %v1502_v18 = vld [vmem:[%s2197_s0 + $0x100] ss:$8 sps:$4 sm:$0xff]   ;;  %v1513_v24 = vld [vmem:[%s2197_s0 + $0x124] ss:$8 sps:$4 sm:$0xff]   ;;  %v1517_v27 = vld [vmem:[%s2197_s0 + $0x34] ss:$8 sps:$4 sm:$0xff]  }
   0x8   :  { %v1515_v25 = vld [vmem:[%s2197_s0 + $0x20] ss:$8 sps:$4 sm:$0xff]   ;;  %v1519_v28 = vld [vmem:[%s2197_s0 + $0x134] ss:$8 sps:$4 sm:$0xff]   ;;  %v1521_v29 = vld [vmem:[%s2197_s0 + $0x30] ss:$8 sps:$4 sm:$0xff]  }
   0x9   :  { %v1516_v26 = vld [vmem:[%s2197_s0 + $0x120] ss:$8 sps:$4 sm:$0xff]   ;;  %v1522_v30 = vld [vmem:[%s2197_s0 + $0x130] ss:$8 sps:$4 sm:$0xff]   ;;  %v1523_v31 = vld [vmem:[%s2197_s0 + $0x44] ss:$8 sps:$4 sm:$0xff]  }
   0xa   :  { %559 = vmatpush1.bf16.msra.mxu0 %v1491_v3  ;;  %1479 = vmatpush1.bf16.msra.mxu1 %v1491_v3  ;;  %v1525_v32 = vld [vmem:[%s2197_s0 + $0x144] ss:$8 sps:$4 sm:$0xff]   ;;  %v1527_v33 = vld [vmem:[%s2197_s0 + $0x40] ss:$8 sps:$4 sm:$0xff]   ;;  %v1529_v35 = vld [vmem:[%s2197_s0 + $0x54] ss:$8 sps:$4 sm:$0xff]  }
   0xb   :  { %560 = vmatprep.subr.bf16.mxu0 %v1595_v0  ;;  %1470 = vmatprep.subr.bf16.mxu1 %v1595_v0  ;;  %v1528_v34 = vld [vmem:[%s2197_s0 + $0x140] ss:$8 sps:$4 sm:$0xff]   ;;  %v1531_v36 = vld [vmem:[%s2197_s0 + $0x154] ss:$8 sps:$4 sm:$0xff]   ;;  %v1533_v37 = vld [vmem:[%s2197_s0 + $0x50] ss:$8 sps:$4 sm:$0xff]  }
   0xc   :  { %v1534_v38 = vld [vmem:[%s2197_s0 + $0x150] ss:$8 sps:$4 sm:$0xff]   ;;  %v1535_v39 = vld [vmem:[%s2197_s0 + $0x64] ss:$8 sps:$4 sm:$0xff]   ;;  %v1539_v41 = vld [vmem:[%s2197_s0 + $0x60] ss:$8 sps:$4 sm:$0xff]  }
   0xd   :  { %v1537_v40 = vld [vmem:[%s2197_s0 + $0x164] ss:$8 sps:$4 sm:$0xff]   ;;  %v1540_v42 = vld [vmem:[%s2197_s0 + $0x160] ss:$8 sps:$4 sm:$0xff]   ;;  %v1541_v43 = vld [vmem:[%s2197_s0 + $0x74] ss:$8 sps:$4 sm:$0xff]  }
   0xe   :  { %561 = vmatpush1.bf16.msra.mxu0 %v1492_v4  ;;  %1480 = vmatpush1.bf16.msra.mxu1 %v1492_v4  ;;  %v1543_v44 = vld [vmem:[%s2197_s0 + $0x174] ss:$8 sps:$4 sm:$0xff]   ;;  %v1545_v45 = vld [vmem:[%s2197_s0 + $0x70] ss:$8 sps:$4 sm:$0xff]   ;;  %v1547_v47 = vld [vmem:[%s2197_s0 + $0x84] ss:$8 sps:$4 sm:$0xff]  }
   0xf   :  { %562 = vmatprep.subr.bf16.mxu0 %v1595_v0  ;;  %1471 = vmatprep.subr.bf16.mxu1 %v1595_v0  ;;  %v1546_v46 = vld [vmem:[%s2197_s0 + $0x170] ss:$8 sps:$4 sm:$0xff]   ;;  %v1549_v48 = vld [vmem:[%s2197_s0 + $0x184] ss:$8 sps:$4 sm:$0xff]   ;;  %v1551_v49 = vld [vmem:[%s2197_s0 + $0x80] ss:$8 sps:$4 sm:$0xff]  }
  0x10   :  { %v1552_v50 = vld [vmem:[%s2197_s0 + $0x180] ss:$8 sps:$4 sm:$0xff]   ;;  %v1553_v51 = vld [vmem:[%s2197_s0 + $0x94] ss:$8 sps:$4 sm:$0xff]   ;;  %v1557_v53 = vld [vmem:[%s2197_s0 + $0x90] ss:$8 sps:$4 sm:$0xff]  }
  0x11   :  { %v1555_v52 = vld [vmem:[%s2197_s0 + $0x194] ss:$8 sps:$4 sm:$0xff]   ;;  %v1558_v54 = vld [vmem:[%s2197_s0 + $0x190] ss:$8 sps:$4 sm:$0xff]   ;;  %v1559_v55 = vld [vmem:[%s2197_s0 + $0xa4] ss:$8 sps:$4 sm:$0xff]  }
  0x12   :  { %563 = vmatpush1.bf16.msra.mxu0 %v1493_v7  ;;  %1481 = vmatpush1.bf16.msra.mxu1 %v1493_v7  ;;  %v1561_v56 = vld [vmem:[%s2197_s0 + $0x1a4] ss:$8 sps:$4 sm:$0xff]   ;;  %v1563_v57 = vld [vmem:[%s2197_s0 + $0xa0] ss:$8 sps:$4 sm:$0xff]   ;;  %v1565_v59 = vld [vmem:[%s2197_s0 + $0xb4] ss:$8 sps:$4 sm:$0xff]  }
  0x13   :  { %564 = vmatprep.subr.bf16.mxu0 %v1595_v0  ;;  %1472 = vmatprep.subr.bf16.mxu1 %v1595_v0  ;;  %v1564_v58 = vld [vmem:[%s2197_s0 + $0x1a0] ss:$8 sps:$4 sm:$0xff]   ;;  %v1567_v60 = vld [vmem:[%s2197_s0 + $0x1b4] ss:$8 sps:$4 sm:$0xff]   ;;  %v1569_v61 = vld [vmem:[%s2197_s0 + $0xb0] ss:$8 sps:$4 sm:$0xff]  }
  0x14   :  { %v1570_v62 = vld [vmem:[%s2197_s0 + $0x1b0] ss:$8 sps:$4 sm:$0xff]   ;;  %v1571_v63 = vld [vmem:[%s2197_s0 + $0xc4] ss:$8 sps:$4 sm:$0xff]   ;;  %v1575_v1 = vld [vmem:[%s2197_s0 + $0xc0] ss:$8 sps:$4 sm:$0xff]  }
  0x15   :  { %v1576_v2 = vld [vmem:[%s2197_s0 + $0x1c0] ss:$8 sps:$4 sm:$0xff]   ;;  %v1577_v3 = vld [vmem:[%s2197_s0 + $0xd4] ss:$8 sps:$4 sm:$0xff]   ;;  %v1581_v5 = vld [vmem:[%s2197_s0 + $0xd0] ss:$8 sps:$4 sm:$0xff]  }
  0x16   :  { %565 = vmatpush1.bf16.msra.mxu0 %v1494_v8  ;;  %1482 = vmatpush1.bf16.msra.mxu1 %v1494_v8  ;;  %v1579_v4 = vld [vmem:[%s2197_s0 + $0x1d4] ss:$8 sps:$4 sm:$0xff]   ;;  %v1582_v6 = vld [vmem:[%s2197_s0 + $0x1d0] ss:$8 sps:$4 sm:$0xff]   ;;  %v1583_v7 = vld [vmem:[%s2197_s0 + $0xe4] ss:$8 sps:$4 sm:$0xff]  }
  0x17   :  { %566 = vmatprep.subr.bf16.mxu0 %v1595_v0  ;;  %1473 = vmatprep.subr.bf16.mxu1 %v1595_v0  ;;  %v1585_v8 = vld [vmem:[%s2197_s0 + $0x1e4] ss:$8 sps:$4 sm:$0xff]   ;;  %v1589_v11 = vld [vmem:[%s2197_s0 + $0xf4] ss:$8 sps:$4 sm:$0xff]   ;;  %v1594_v14 = vld [vmem:[%s2197_s0 + $0x1f0] ss:$8 sps:$4 sm:$0xff]  }
  0x18   :  { %v1591_v12 = vld [vmem:[%s2197_s0 + $0x1f4] ss:$8 sps:$4 sm:$0xff]   ;;  %v1874_v15 = vld [vmem:[%s2198_s2] ss:$0 sm:$0xff] }
  0x1a   :  { %567 = vmatpush1.bf16.msra.mxu0 %v1495_v9  ;;  %1483 = vmatpush1.bf16.msra.mxu1 %v1495_v9  ;;  %v1587_v9 = vld [vmem:[%s2197_s0 + $0xe0] ss:$8 sps:$4 sm:$0xff]  }
  0x1b   :  { %568 = vmatprep.subr.bf16.mxu0 %v1595_v0  ;;  %1474 = vmatprep.subr.bf16.mxu1 %v1595_v0 }
  0x1e   :  { %569 = vmatpush1.bf16.msra.mxu0 %v1496_v10  ;;  %1484 = vmatpush1.bf16.msra.mxu1 %v1496_v10  ;;  %v1588_v10 = vld [vmem:[%s2197_s0 + $0x1e0] ss:$8 sps:$4 sm:$0xff]  }
  0x1f   :  { %570 = vmatprep.subr.bf16.mxu0 %v1595_v0  ;;  %1475 = vmatprep.subr.bf16.mxu1 %v1595_v0 }
  0x22   :  { %571 = vmatpush1.bf16.msra.mxu0 %v1497_v13  ;;  %1485 = vmatpush1.bf16.msra.mxu1 %v1497_v13  ;;  %v1593_v13 = vld [vmem:[%s2197_s0 + $0xf0] ss:$8 sps:$4 sm:$0xff]  }
  0x23   :  { %572 = vmatprep.subr.bf16.mxu0 %v1595_v0  ;;  %1476 = vmatprep.subr.bf16.mxu1 %v1595_v0  ;;  %v1573_v0 = vld [vmem:[%s2197_s0 + $0x1c4] ss:$8 sps:$4 sm:$0xff]  }
  0x26   :  { %573 = vmatpush1.bf16.msra.mxu0 %v552_v16  ;;  %1486 = vmatpush1.bf16.msra.mxu1 %v552_v16 }
  0x29   :  { %587 = vmatmul.mubr.bf16.vlgmr.msra.gmra.mrb[0].mxu0 %v1499_v17  ;;  %715 = vmatmul.mubr.bf16.vlgmr.msra.gmra.mrb[0].mxu1 %v1502_v18 }
  0x2a   :  { %1308 = vmatprep.mubr.msk.bf16.mxu0 %vm450_vm0, %v1505_v19  ;;  %1324 = vmatprep.mubr.msk.bf16.mxu1 %vm450_vm0, %v1507_v20 }
  0x31   :  { %595 = vmatmul.mubr.bf16.gmra.mrb[4].mxu0 %v1509_v21  ;;  %723 = vmatmul.mubr.bf16.gmra.mrb[4].mxu1 %v1510_v22 }
  0x32   :  { %1309 = vmatprep.mubr.msk.bf16.mxu0 %vm450_vm0, %v1511_v23  ;;  %1325 = vmatprep.mubr.msk.bf16.mxu1 %vm450_vm0, %v1513_v24 }
  0x39   :  { %603 = vmatmul.mubr.bf16.gmra.mrb[8].mxu0 %v1515_v25  ;;  %731 = vmatmul.mubr.bf16.gmra.mrb[8].mxu1 %v1516_v26 }
  0x3a   :  { %1310 = vmatprep.mubr.msk.bf16.mxu0 %vm450_vm0, %v1517_v27  ;;  %1326 = vmatprep.mubr.msk.bf16.mxu1 %vm450_vm0, %v1519_v28 }
  0x41   :  { %611 = vmatmul.mubr.bf16.gmra.mrb[12].mxu0 %v1521_v29  ;;  %739 = vmatmul.mubr.bf16.gmra.mrb[12].mxu1 %v1522_v30 }
  0x42   :  { %1311 = vmatprep.mubr.msk.bf16.mxu0 %vm450_vm0, %v1523_v31  ;;  %1327 = vmatprep.mubr.msk.bf16.mxu1 %vm450_vm0, %v1525_v32 }
  0x49   :  { %619 = vmatmul.mubr.bf16.gmra.mrb[16].mxu0 %v1527_v33  ;;  %747 = vmatmul.mubr.bf16.gmra.mrb[16].mxu1 %v1528_v34 }
  0x4a   :  { %1312 = vmatprep.mubr.msk.bf16.mxu0 %vm450_vm0, %v1529_v35  ;;  %1328 = vmatprep.mubr.msk.bf16.mxu1 %vm450_vm0, %v1531_v36 }
  0x51   :  { %627 = vmatmul.mubr.bf16.gmra.mrb[20].mxu0 %v1533_v37  ;;  %755 = vmatmul.mubr.bf16.gmra.mrb[20].mxu1 %v1534_v38 }
  0x52   :  { %1313 = vmatprep.mubr.msk.bf16.mxu0 %vm450_vm0, %v1535_v39  ;;  %1329 = vmatprep.mubr.msk.bf16.mxu1 %vm450_vm0, %v1537_v40 }
  0x59   :  { %635 = vmatmul.mubr.bf16.gmra.mrb[24].mxu0 %v1539_v41  ;;  %763 = vmatmul.mubr.bf16.gmra.mrb[24].mxu1 %v1540_v42 }
  0x5a   :  { %1314 = vmatprep.mubr.msk.bf16.mxu0 %vm450_vm0, %v1541_v43  ;;  %1330 = vmatprep.mubr.msk.bf16.mxu1 %vm450_vm0, %v1543_v44 }
  0x61   :  { %643 = vmatmul.mubr.bf16.gmra.mrb[28].mxu0 %v1545_v45  ;;  %771 = vmatmul.mubr.bf16.gmra.mrb[28].mxu1 %v1546_v46 }
  0x62   :  { %1315 = vmatprep.mubr.msk.bf16.mxu0 %vm450_vm0, %v1547_v47  ;;  %1331 = vmatprep.mubr.msk.bf16.mxu1 %vm450_vm0, %v1549_v48 }
  0x69   :  { %651 = vmatmul.mubr.bf16.gmra.mrb[32].mxu0 %v1551_v49  ;;  %779 = vmatmul.mubr.bf16.gmra.mrb[32].mxu1 %v1552_v50 }
  0x6a   :  { %1316 = vmatprep.mubr.msk.bf16.mxu0 %vm450_vm0, %v1553_v51  ;;  %1332 = vmatprep.mubr.msk.bf16.mxu1 %vm450_vm0, %v1555_v52 }
  0x71   :  { %659 = vmatmul.mubr.bf16.gmra.mrb[36].mxu0 %v1557_v53  ;;  %787 = vmatmul.mubr.bf16.gmra.mrb[36].mxu1 %v1558_v54 }
  0x72   :  { %1317 = vmatprep.mubr.msk.bf16.mxu0 %vm450_vm0, %v1559_v55  ;;  %1333 = vmatprep.mubr.msk.bf16.mxu1 %vm450_vm0, %v1561_v56 }
  0x79   :  { %667 = vmatmul.mubr.bf16.gmra.mrb[40].mxu0 %v1563_v57  ;;  %795 = vmatmul.mubr.bf16.gmra.mrb[40].mxu1 %v1564_v58 }
  0x7a   :  { %1318 = vmatprep.mubr.msk.bf16.mxu0 %vm450_vm0, %v1565_v59  ;;  %1334 = vmatprep.mubr.msk.bf16.mxu1 %vm450_vm0, %v1567_v60 }
  0x81   :  { %675 = vmatmul.mubr.bf16.gmra.mrb[44].mxu0 %v1569_v61  ;;  %803 = vmatmul.mubr.bf16.gmra.mrb[44].mxu1 %v1570_v62 }
  0x82   :  { %1319 = vmatprep.mubr.msk.bf16.mxu0 %vm450_vm0, %v1571_v63  ;;  %1335 = vmatprep.mubr.msk.bf16.mxu1 %vm450_vm0, %v1573_v0 }
  0x89   :  { %683 = vmatmul.mubr.bf16.gmra.mrb[48].mxu0 %v1575_v1  ;;  %811 = vmatmul.mubr.bf16.gmra.mrb[48].mxu1 %v1576_v2 }
  0x8a   :  { %1320 = vmatprep.mubr.msk.bf16.mxu0 %vm450_vm0, %v1577_v3  ;;  %1336 = vmatprep.mubr.msk.bf16.mxu1 %vm450_vm0, %v1579_v4 }
  0x91   :  { %691 = vmatmul.mubr.bf16.gmra.mrb[52].mxu0 %v1581_v5  ;;  %819 = vmatmul.mubr.bf16.gmra.mrb[52].mxu1 %v1582_v6 }
  0x92   :  { %1321 = vmatprep.mubr.msk.bf16.mxu0 %vm450_vm0, %v1583_v7  ;;  %1337 = vmatprep.mubr.msk.bf16.mxu1 %vm450_vm0, %v1585_v8 }
  0x99   :  { %699 = vmatmul.mubr.bf16.gmra.mrb[56].mxu0 %v1587_v9  ;;  %827 = vmatmul.mubr.bf16.gmra.mrb[56].mxu1 %v1588_v10 }
  0x9a   :  { %1322 = vmatprep.mubr.msk.bf16.mxu0 %vm450_vm0, %v1589_v11  ;;  %1338 = vmatprep.mubr.msk.bf16.mxu1 %vm450_vm0, %v1591_v12 }
  0xa1   :  { %707 = vmatmul.mubr.bf16.gmra.mrb[60].mxu0 %v1593_v13  ;;  %835 = vmatmul.mubr.bf16.gmra.mrb[60].mxu1 %v1594_v14 }
  0xfc   :  { %v588_v16 = vpop.f32.mrb[0].mxu0  ;;  %v716_v17 = vpop.f32.mrb[0].mxu1 }
  0xfd   :  { %v589_v18 = vadd.f32 %v1874_v15, %v588_v16  ;;  %v717_v19 = vadd.f32 %v1874_v15, %v716_v17  ;;  %v590_v20 = vpop.f32.mrb[1].mxu0  ;;  %v718_v21 = vpop.f32.mrb[1].mxu1 }
  0xfe   :  { %v591_v22 = vpop.f32.mrb[2].mxu0  ;;  %v719_v23 = vpop.f32.mrb[2].mxu1 }
  0xff   :  { %v843_v24 = vmax.f32 %v589_v18, 0.0  ;;  %v875_v25 = vmax.f32 %v717_v19, 0.0  ;;  %v592_v26 = vadd.f32 %v1874_v15, %v591_v22  ;;  %v720_v27 = vadd.f32 %v1874_v15, %v719_v23  ;;  %v593_v28 = vpop.f32.mrb[3].mxu0  ;;  %v721_v29 = vpop.f32.mrb[3].mxu1 }
 0x101   :  { %v1403_v30 = vpack.c.bf16 %v843_v24, %v843_v24  ;;  %v1435_v31 = vpack.c.bf16 %v875_v25, %v875_v25  ;;  %v844_v32 = vmax.f32 %v592_v26, 0.0  ;;  %v876_v33 = vmax.f32 %v720_v27, 0.0 }
 0x103   :  { %1164 = vst.msk [vmem:[%s2199_s3] sm:$0xf] %vm1163_vm3, %v1403_v30  ;;  %1196 = vst.msk [vmem:[%s2199_s3 + $0x80] sm:$0xf] %vm1163_vm3, %v1435_v31  ;;  %v1404_v34 = vpack.c.bf16 %v844_v32, %v844_v32  ;;  %v1436_v35 = vpack.c.bf16 %v876_v33, %v876_v33 }
 0x104   :  { %v596_v36 = vpop.f32.mrb[4].mxu0  ;;  %v724_v37 = vpop.f32.mrb[4].mxu1 }
 0x105   :  { %1165 = vst.msk [vmem:[%s2199_s3 + $0x4] sm:$0xf] %vm1163_vm3, %v1404_v34  ;;  %1197 = vst.msk [vmem:[%s2199_s3 + $0x84] sm:$0xf] %vm1163_vm3, %v1436_v35  ;;  %v597_v38 = vadd.f32 %v1874_v15, %v596_v36  ;;  %v725_v39 = vadd.f32 %v1874_v15, %v724_v37  ;;  %v598_v40 = vpop.f32.mrb[5].mxu0  ;;  %v726_v41 = vpop.f32.mrb[5].mxu1 }
 0x106   :  { %v599_v42 = vpop.f32.mrb[6].mxu0  ;;  %v727_v43 = vpop.f32.mrb[6].mxu1 }
 0x107   :  { %v845_v44 = vmax.f32 %v597_v38, 0.0  ;;  %v877_v45 = vmax.f32 %v725_v39, 0.0  ;;  %v600_v46 = vadd.f32 %v1874_v15, %v599_v42  ;;  %v728_v47 = vadd.f32 %v1874_v15, %v727_v43  ;;  %v601_v48 = vpop.f32.mrb[7].mxu0  ;;  %v729_v49 = vpop.f32.mrb[7].mxu1 }
 0x109   :  { %v1405_v50 = vpack.c.bf16 %v845_v44, %v845_v44  ;;  %v1437_v51 = vpack.c.bf16 %v877_v45, %v877_v45  ;;  %v846_v52 = vmax.f32 %v600_v46, 0.0  ;;  %v878_v53 = vmax.f32 %v728_v47, 0.0 }
 0x10b   :  { %1166 = vst.msk [vmem:[%s2199_s3 + $0x8] sm:$0xf] %vm1163_vm3, %v1405_v50  ;;  %1198 = vst.msk [vmem:[%s2199_s3 + $0x88] sm:$0xf] %vm1163_vm3, %v1437_v51  ;;  %v1406_v54 = vpack.c.bf16 %v846_v52, %v846_v52  ;;  %v1438_v55 = vpack.c.bf16 %v878_v53, %v878_v53 }
 0x10c   :  { %v604_v56 = vpop.f32.mrb[8].mxu0  ;;  %v732_v57 = vpop.f32.mrb[8].mxu1 }
 0x10d   :  { %1167 = vst.msk [vmem:[%s2199_s3 + $0xc] sm:$0xf] %vm1163_vm3, %v1406_v54  ;;  %1199 = vst.msk [vmem:[%s2199_s3 + $0x8c] sm:$0xf] %vm1163_vm3, %v1438_v55  ;;  %v605_v58 = vadd.f32 %v1874_v15, %v604_v56  ;;  %v733_v59 = vadd.f32 %v1874_v15, %v732_v57  ;;  %v606_v60 = vpop.f32.mrb[9].mxu0  ;;  %v734_v61 = vpop.f32.mrb[9].mxu1 }
 0x10e   :  { %v607_v62 = vpop.f32.mrb[10].mxu0  ;;  %v735_v63 = vpop.f32.mrb[10].mxu1 }
 0x10f   :  { %v847_v0 = vmax.f32 %v605_v58, 0.0  ;;  %v879_v1 = vmax.f32 %v733_v59, 0.0  ;;  %v608_v2 = vadd.f32 %v1874_v15, %v607_v62  ;;  %v736_v3 = vadd.f32 %v1874_v15, %v735_v63  ;;  %v609_v4 = vpop.f32.mrb[11].mxu0  ;;  %v737_v5 = vpop.f32.mrb[11].mxu1 }
 0x111   :  { %v1407_v6 = vpack.c.bf16 %v847_v0, %v847_v0  ;;  %v1439_v7 = vpack.c.bf16 %v879_v1, %v879_v1  ;;  %v848_v8 = vmax.f32 %v608_v2, 0.0  ;;  %v880_v9 = vmax.f32 %v736_v3, 0.0 }
 0x113   :  { %1168 = vst.msk [vmem:[%s2199_s3 + $0x10] sm:$0xf] %vm1163_vm3, %v1407_v6  ;;  %1200 = vst.msk [vmem:[%s2199_s3 + $0x90] sm:$0xf] %vm1163_vm3, %v1439_v7  ;;  %v1408_v10 = vpack.c.bf16 %v848_v8, %v848_v8  ;;  %v1440_v11 = vpack.c.bf16 %v880_v9, %v880_v9 }
 0x114   :  { %v612_v12 = vpop.f32.mrb[12].mxu0  ;;  %v740_v13 = vpop.f32.mrb[12].mxu1 }
 0x115   :  { %1169 = vst.msk [vmem:[%s2199_s3 + $0x14] sm:$0xf] %vm1163_vm3, %v1408_v10  ;;  %1201 = vst.msk [vmem:[%s2199_s3 + $0x94] sm:$0xf] %vm1163_vm3, %v1440_v11  ;;  %v613_v14 = vadd.f32 %v1874_v15, %v612_v12  ;;  %v741_v16 = vadd.f32 %v1874_v15, %v740_v13  ;;  %v614_v17 = vpop.f32.mrb[13].mxu0  ;;  %v742_v18 = vpop.f32.mrb[13].mxu1 }
 0x116   :  { %v615_v19 = vpop.f32.mrb[14].mxu0  ;;  %v743_v20 = vpop.f32.mrb[14].mxu1 }
 0x117   :  { %v849_v21 = vmax.f32 %v613_v14, 0.0  ;;  %v881_v22 = vmax.f32 %v741_v16, 0.0  ;;  %v616_v23 = vadd.f32 %v1874_v15, %v615_v19  ;;  %v744_v24 = vadd.f32 %v1874_v15, %v743_v20  ;;  %v617_v25 = vpop.f32.mrb[15].mxu0  ;;  %v745_v26 = vpop.f32.mrb[15].mxu1 }
 0x119   :  { %v1409_v27 = vpack.c.bf16 %v849_v21, %v849_v21  ;;  %v1441_v28 = vpack.c.bf16 %v881_v22, %v881_v22  ;;  %v850_v29 = vmax.f32 %v616_v23, 0.0  ;;  %v882_v30 = vmax.f32 %v744_v24, 0.0 }
 0x11b   :  { %1170 = vst.msk [vmem:[%s2199_s3 + $0x18] sm:$0xf] %vm1163_vm3, %v1409_v27  ;;  %1202 = vst.msk [vmem:[%s2199_s3 + $0x98] sm:$0xf] %vm1163_vm3, %v1441_v28  ;;  %v1410_v31 = vpack.c.bf16 %v850_v29, %v850_v29  ;;  %v1442_v32 = vpack.c.bf16 %v882_v30, %v882_v30 }
 0x11c   :  { %v620_v33 = vpop.f32.mrb[16].mxu0  ;;  %v748_v34 = vpop.f32.mrb[16].mxu1 }
 0x11d   :  { %1171 = vst.msk [vmem:[%s2199_s3 + $0x1c] sm:$0xf] %vm1163_vm3, %v1410_v31  ;;  %1203 = vst.msk [vmem:[%s2199_s3 + $0x9c] sm:$0xf] %vm1163_vm3, %v1442_v32  ;;  %v621_v35 = vadd.f32 %v1874_v15, %v620_v33  ;;  %v749_v36 = vadd.f32 %v1874_v15, %v748_v34  ;;  %v622_v37 = vpop.f32.mrb[17].mxu0  ;;  %v750_v38 = vpop.f32.mrb[17].mxu1 }
 0x11e   :  { %v623_v39 = vpop.f32.mrb[18].mxu0  ;;  %v751_v40 = vpop.f32.mrb[18].mxu1 }
 0x11f   :  { %v851_v41 = vmax.f32 %v621_v35, 0.0  ;;  %v883_v42 = vmax.f32 %v749_v36, 0.0  ;;  %v624_v43 = vadd.f32 %v1874_v15, %v623_v39  ;;  %v752_v44 = vadd.f32 %v1874_v15, %v751_v40  ;;  %v625_v45 = vpop.f32.mrb[19].mxu0  ;;  %v753_v46 = vpop.f32.mrb[19].mxu1 }
 0x121   :  { %v1411_v47 = vpack.c.bf16 %v851_v41, %v851_v41  ;;  %v1443_v48 = vpack.c.bf16 %v883_v42, %v883_v42  ;;  %v852_v49 = vmax.f32 %v624_v43, 0.0  ;;  %v884_v50 = vmax.f32 %v752_v44, 0.0 }
 0x123   :  { %1172 = vst.msk [vmem:[%s2199_s3 + $0x20] sm:$0xf] %vm1163_vm3, %v1411_v47  ;;  %1204 = vst.msk [vmem:[%s2199_s3 + $0xa0] sm:$0xf] %vm1163_vm3, %v1443_v48  ;;  %v1412_v51 = vpack.c.bf16 %v852_v49, %v852_v49  ;;  %v1444_v52 = vpack.c.bf16 %v884_v50, %v884_v50 }
 0x124   :  { %v628_v53 = vpop.f32.mrb[20].mxu0  ;;  %v756_v54 = vpop.f32.mrb[20].mxu1 }
 0x125   :  { %1173 = vst.msk [vmem:[%s2199_s3 + $0x24] sm:$0xf] %vm1163_vm3, %v1412_v51  ;;  %1205 = vst.msk [vmem:[%s2199_s3 + $0xa4] sm:$0xf] %vm1163_vm3, %v1444_v52  ;;  %v629_v55 = vadd.f32 %v1874_v15, %v628_v53  ;;  %v757_v56 = vadd.f32 %v1874_v15, %v756_v54  ;;  %v630_v57 = vpop.f32.mrb[21].mxu0  ;;  %v758_v58 = vpop.f32.mrb[21].mxu1 }
 0x126   :  { %v631_v59 = vpop.f32.mrb[22].mxu0  ;;  %v759_v60 = vpop.f32.mrb[22].mxu1 }
 0x127   :  { %v853_v61 = vmax.f32 %v629_v55, 0.0  ;;  %v885_v62 = vmax.f32 %v757_v56, 0.0  ;;  %v632_v63 = vadd.f32 %v1874_v15, %v631_v59  ;;  %v760_v0 = vadd.f32 %v1874_v15, %v759_v60  ;;  %v633_v1 = vpop.f32.mrb[23].mxu0  ;;  %v761_v2 = vpop.f32.mrb[23].mxu1 }
 0x129   :  { %v1413_v3 = vpack.c.bf16 %v853_v61, %v853_v61  ;;  %v1445_v4 = vpack.c.bf16 %v885_v62, %v885_v62  ;;  %v854_v5 = vmax.f32 %v632_v63, 0.0  ;;  %v886_v6 = vmax.f32 %v760_v0, 0.0 }
 0x12b   :  { %1174 = vst.msk [vmem:[%s2199_s3 + $0x28] sm:$0xf] %vm1163_vm3, %v1413_v3  ;;  %1206 = vst.msk [vmem:[%s2199_s3 + $0xa8] sm:$0xf] %vm1163_vm3, %v1445_v4  ;;  %v1414_v7 = vpack.c.bf16 %v854_v5, %v854_v5  ;;  %v1446_v8 = vpack.c.bf16 %v886_v6, %v886_v6 }
 0x12c   :  { %v636_v9 = vpop.f32.mrb[24].mxu0  ;;  %v764_v10 = vpop.f32.mrb[24].mxu1 }
 0x12d   :  { %1175 = vst.msk [vmem:[%s2199_s3 + $0x2c] sm:$0xf] %vm1163_vm3, %v1414_v7  ;;  %1207 = vst.msk [vmem:[%s2199_s3 + $0xac] sm:$0xf] %vm1163_vm3, %v1446_v8  ;;  %v637_v11 = vadd.f32 %v1874_v15, %v636_v9  ;;  %v765_v12 = vadd.f32 %v1874_v15, %v764_v10  ;;  %v638_v13 = vpop.f32.mrb[25].mxu0  ;;  %v766_v14 = vpop.f32.mrb[25].mxu1 }
 0x12e   :  { %v639_v16 = vpop.f32.mrb[26].mxu0  ;;  %v767_v17 = vpop.f32.mrb[26].mxu1 }
 0x12f   :  { %v855_v18 = vmax.f32 %v637_v11, 0.0  ;;  %v887_v19 = vmax.f32 %v765_v12, 0.0  ;;  %v640_v20 = vadd.f32 %v1874_v15, %v639_v16  ;;  %v768_v21 = vadd.f32 %v1874_v15, %v767_v17  ;;  %v641_v22 = vpop.f32.mrb[27].mxu0  ;;  %v769_v23 = vpop.f32.mrb[27].mxu1 }
 0x131   :  { %v1415_v24 = vpack.c.bf16 %v855_v18, %v855_v18  ;;  %v1447_v25 = vpack.c.bf16 %v887_v19, %v887_v19  ;;  %v856_v26 = vmax.f32 %v640_v20, 0.0  ;;  %v888_v27 = vmax.f32 %v768_v21, 0.0 }
 0x133   :  { %1176 = vst.msk [vmem:[%s2199_s3 + $0x30] sm:$0xf] %vm1163_vm3, %v1415_v24  ;;  %1208 = vst.msk [vmem:[%s2199_s3 + $0xb0] sm:$0xf] %vm1163_vm3, %v1447_v25  ;;  %v1416_v28 = vpack.c.bf16 %v856_v26, %v856_v26  ;;  %v1448_v29 = vpack.c.bf16 %v888_v27, %v888_v27 }
 0x134   :  { %v644_v30 = vpop.f32.mrb[28].mxu0  ;;  %v772_v31 = vpop.f32.mrb[28].mxu1 }
 0x135   :  { %1177 = vst.msk [vmem:[%s2199_s3 + $0x34] sm:$0xf] %vm1163_vm3, %v1416_v28  ;;  %1209 = vst.msk [vmem:[%s2199_s3 + $0xb4] sm:$0xf] %vm1163_vm3, %v1448_v29  ;;  %v645_v32 = vadd.f32 %v1874_v15, %v644_v30  ;;  %v773_v33 = vadd.f32 %v1874_v15, %v772_v31  ;;  %v646_v34 = vpop.f32.mrb[29].mxu0  ;;  %v774_v35 = vpop.f32.mrb[29].mxu1 }
 0x136   :  { %v647_v36 = vpop.f32.mrb[30].mxu0  ;;  %v775_v37 = vpop.f32.mrb[30].mxu1 }
 0x137   :  { %v857_v38 = vmax.f32 %v645_v32, 0.0  ;;  %v889_v39 = vmax.f32 %v773_v33, 0.0  ;;  %v648_v40 = vadd.f32 %v1874_v15, %v647_v36  ;;  %v776_v41 = vadd.f32 %v1874_v15, %v775_v37  ;;  %v649_v42 = vpop.f32.mrb[31].mxu0  ;;  %v777_v43 = vpop.f32.mrb[31].mxu1 }
 0x139   :  { %v1417_v44 = vpack.c.bf16 %v857_v38, %v857_v38  ;;  %v1449_v45 = vpack.c.bf16 %v889_v39, %v889_v39  ;;  %v858_v46 = vmax.f32 %v648_v40, 0.0  ;;  %v890_v47 = vmax.f32 %v776_v41, 0.0 }
 0x13b   :  { %1178 = vst.msk [vmem:[%s2199_s3 + $0x38] sm:$0xf] %vm1163_vm3, %v1417_v44  ;;  %1210 = vst.msk [vmem:[%s2199_s3 + $0xb8] sm:$0xf] %vm1163_vm3, %v1449_v45  ;;  %v1418_v48 = vpack.c.bf16 %v858_v46, %v858_v46  ;;  %v1450_v49 = vpack.c.bf16 %v890_v47, %v890_v47 }
 0x13c   :  { %v652_v50 = vpop.f32.mrb[32].mxu0  ;;  %v780_v51 = vpop.f32.mrb[32].mxu1 }
 0x13d   :  { %1179 = vst.msk [vmem:[%s2199_s3 + $0x3c] sm:$0xf] %vm1163_vm3, %v1418_v48  ;;  %1211 = vst.msk [vmem:[%s2199_s3 + $0xbc] sm:$0xf] %vm1163_vm3, %v1450_v49  ;;  %v653_v52 = vadd.f32 %v1874_v15, %v652_v50  ;;  %v781_v53 = vadd.f32 %v1874_v15, %v780_v51  ;;  %v654_v54 = vpop.f32.mrb[33].mxu0  ;;  %v782_v55 = vpop.f32.mrb[33].mxu1 }
 0x13e   :  { %v655_v56 = vpop.f32.mrb[34].mxu0  ;;  %v783_v57 = vpop.f32.mrb[34].mxu1 }
 0x13f   :  { %v859_v58 = vmax.f32 %v653_v52, 0.0  ;;  %v891_v59 = vmax.f32 %v781_v53, 0.0  ;;  %v656_v60 = vadd.f32 %v1874_v15, %v655_v56  ;;  %v784_v61 = vadd.f32 %v1874_v15, %v783_v57  ;;  %v657_v62 = vpop.f32.mrb[35].mxu0  ;;  %v785_v63 = vpop.f32.mrb[35].mxu1 }
 0x141   :  { %v1419_v0 = vpack.c.bf16 %v859_v58, %v859_v58  ;;  %v1451_v1 = vpack.c.bf16 %v891_v59, %v891_v59  ;;  %v860_v2 = vmax.f32 %v656_v60, 0.0  ;;  %v892_v3 = vmax.f32 %v784_v61, 0.0 }
 0x143   :  { %1180 = vst.msk [vmem:[%s2199_s3 + $0x40] sm:$0xf] %vm1163_vm3, %v1419_v0  ;;  %1212 = vst.msk [vmem:[%s2199_s3 + $0xc0] sm:$0xf] %vm1163_vm3, %v1451_v1  ;;  %v1420_v4 = vpack.c.bf16 %v860_v2, %v860_v2  ;;  %v1452_v5 = vpack.c.bf16 %v892_v3, %v892_v3 }
 0x144   :  { %v660_v6 = vpop.f32.mrb[36].mxu0  ;;  %v788_v7 = vpop.f32.mrb[36].mxu1 }
 0x145   :  { %1181 = vst.msk [vmem:[%s2199_s3 + $0x44] sm:$0xf] %vm1163_vm3, %v1420_v4  ;;  %1213 = vst.msk [vmem:[%s2199_s3 + $0xc4] sm:$0xf] %vm1163_vm3, %v1452_v5  ;;  %v661_v8 = vadd.f32 %v1874_v15, %v660_v6  ;;  %v789_v9 = vadd.f32 %v1874_v15, %v788_v7  ;;  %v662_v10 = vpop.f32.mrb[37].mxu0  ;;  %v790_v11 = vpop.f32.mrb[37].mxu1 }
 0x146   :  { %v663_v12 = vpop.f32.mrb[38].mxu0  ;;  %v791_v13 = vpop.f32.mrb[38].mxu1 }
 0x147   :  { %v861_v14 = vmax.f32 %v661_v8, 0.0  ;;  %v893_v16 = vmax.f32 %v789_v9, 0.0  ;;  %v664_v17 = vadd.f32 %v1874_v15, %v663_v12  ;;  %v792_v18 = vadd.f32 %v1874_v15, %v791_v13  ;;  %v665_v19 = vpop.f32.mrb[39].mxu0  ;;  %v793_v20 = vpop.f32.mrb[39].mxu1 }
 0x149   :  { %v1421_v21 = vpack.c.bf16 %v861_v14, %v861_v14  ;;  %v1453_v22 = vpack.c.bf16 %v893_v16, %v893_v16  ;;  %v862_v23 = vmax.f32 %v664_v17, 0.0  ;;  %v894_v24 = vmax.f32 %v792_v18, 0.0 }
 0x14b   :  { %1182 = vst.msk [vmem:[%s2199_s3 + $0x48] sm:$0xf] %vm1163_vm3, %v1421_v21  ;;  %1214 = vst.msk [vmem:[%s2199_s3 + $0xc8] sm:$0xf] %vm1163_vm3, %v1453_v22  ;;  %v1422_v25 = vpack.c.bf16 %v862_v23, %v862_v23  ;;  %v1454_v26 = vpack.c.bf16 %v894_v24, %v894_v24 }
 0x14c   :  { %v668_v27 = vpop.f32.mrb[40].mxu0  ;;  %v796_v28 = vpop.f32.mrb[40].mxu1 }
 0x14d   :  { %1183 = vst.msk [vmem:[%s2199_s3 + $0x4c] sm:$0xf] %vm1163_vm3, %v1422_v25  ;;  %1215 = vst.msk [vmem:[%s2199_s3 + $0xcc] sm:$0xf] %vm1163_vm3, %v1454_v26  ;;  %v669_v29 = vadd.f32 %v1874_v15, %v668_v27  ;;  %v797_v30 = vadd.f32 %v1874_v15, %v796_v28  ;;  %v670_v31 = vpop.f32.mrb[41].mxu0  ;;  %v798_v32 = vpop.f32.mrb[41].mxu1 }
 0x14e   :  { %v671_v33 = vpop.f32.mrb[42].mxu0  ;;  %v799_v34 = vpop.f32.mrb[42].mxu1 }
 0x14f   :  { %v863_v35 = vmax.f32 %v669_v29, 0.0  ;;  %v895_v36 = vmax.f32 %v797_v30, 0.0  ;;  %v672_v37 = vadd.f32 %v1874_v15, %v671_v33  ;;  %v800_v38 = vadd.f32 %v1874_v15, %v799_v34  ;;  %v673_v39 = vpop.f32.mrb[43].mxu0  ;;  %v801_v40 = vpop.f32.mrb[43].mxu1 }
 0x151   :  { %v1423_v41 = vpack.c.bf16 %v863_v35, %v863_v35  ;;  %v1455_v42 = vpack.c.bf16 %v895_v36, %v895_v36  ;;  %v864_v43 = vmax.f32 %v672_v37, 0.0  ;;  %v896_v44 = vmax.f32 %v800_v38, 0.0 }
 0x153   :  { %1184 = vst.msk [vmem:[%s2199_s3 + $0x50] sm:$0xf] %vm1163_vm3, %v1423_v41  ;;  %1216 = vst.msk [vmem:[%s2199_s3 + $0xd0] sm:$0xf] %vm1163_vm3, %v1455_v42  ;;  %v1424_v45 = vpack.c.bf16 %v864_v43, %v864_v43  ;;  %v1456_v46 = vpack.c.bf16 %v896_v44, %v896_v44 }
 0x154   :  { %v676_v47 = vpop.f32.mrb[44].mxu0  ;;  %v804_v48 = vpop.f32.mrb[44].mxu1 }
 0x155   :  { %1185 = vst.msk [vmem:[%s2199_s3 + $0x54] sm:$0xf] %vm1163_vm3, %v1424_v45  ;;  %1217 = vst.msk [vmem:[%s2199_s3 + $0xd4] sm:$0xf] %vm1163_vm3, %v1456_v46  ;;  %v677_v49 = vadd.f32 %v1874_v15, %v676_v47  ;;  %v805_v50 = vadd.f32 %v1874_v15, %v804_v48  ;;  %v678_v51 = vpop.f32.mrb[45].mxu0  ;;  %v806_v52 = vpop.f32.mrb[45].mxu1 }
 0x156   :  { %v679_v53 = vpop.f32.mrb[46].mxu0  ;;  %v807_v54 = vpop.f32.mrb[46].mxu1 }
 0x157   :  { %v865_v55 = vmax.f32 %v677_v49, 0.0  ;;  %v897_v56 = vmax.f32 %v805_v50, 0.0  ;;  %v680_v57 = vadd.f32 %v1874_v15, %v679_v53  ;;  %v808_v58 = vadd.f32 %v1874_v15, %v807_v54  ;;  %v681_v59 = vpop.f32.mrb[47].mxu0  ;;  %v809_v60 = vpop.f32.mrb[47].mxu1 }
 0x159   :  { %v1425_v61 = vpack.c.bf16 %v865_v55, %v865_v55  ;;  %v1457_v62 = vpack.c.bf16 %v897_v56, %v897_v56  ;;  %v866_v63 = vmax.f32 %v680_v57, 0.0  ;;  %v898_v0 = vmax.f32 %v808_v58, 0.0 }
 0x15b   :  { %1186 = vst.msk [vmem:[%s2199_s3 + $0x58] sm:$0xf] %vm1163_vm3, %v1425_v61  ;;  %1218 = vst.msk [vmem:[%s2199_s3 + $0xd8] sm:$0xf] %vm1163_vm3, %v1457_v62  ;;  %v1426_v1 = vpack.c.bf16 %v866_v63, %v866_v63  ;;  %v1458_v2 = vpack.c.bf16 %v898_v0, %v898_v0 }
 0x15c   :  { %v684_v3 = vpop.f32.mrb[48].mxu0  ;;  %v812_v4 = vpop.f32.mrb[48].mxu1 }
 0x15d   :  { %1187 = vst.msk [vmem:[%s2199_s3 + $0x5c] sm:$0xf] %vm1163_vm3, %v1426_v1  ;;  %1219 = vst.msk [vmem:[%s2199_s3 + $0xdc] sm:$0xf] %vm1163_vm3, %v1458_v2  ;;  %v685_v5 = vadd.f32 %v1874_v15, %v684_v3  ;;  %v813_v6 = vadd.f32 %v1874_v15, %v812_v4  ;;  %v686_v7 = vpop.f32.mrb[49].mxu0  ;;  %v814_v8 = vpop.f32.mrb[49].mxu1 }
 0x15e   :  { %v687_v9 = vpop.f32.mrb[50].mxu0  ;;  %v815_v10 = vpop.f32.mrb[50].mxu1 }
 0x15f   :  { %v867_v11 = vmax.f32 %v685_v5, 0.0  ;;  %v899_v12 = vmax.f32 %v813_v6, 0.0  ;;  %v688_v13 = vadd.f32 %v1874_v15, %v687_v9  ;;  %v816_v14 = vadd.f32 %v1874_v15, %v815_v10  ;;  %v689_v16 = vpop.f32.mrb[51].mxu0  ;;  %v817_v17 = vpop.f32.mrb[51].mxu1 }
 0x161   :  { %v1427_v18 = vpack.c.bf16 %v867_v11, %v867_v11  ;;  %v1459_v19 = vpack.c.bf16 %v899_v12, %v899_v12  ;;  %v868_v20 = vmax.f32 %v688_v13, 0.0  ;;  %v900_v21 = vmax.f32 %v816_v14, 0.0 }
 0x163   :  { %1188 = vst.msk [vmem:[%s2199_s3 + $0x60] sm:$0xf] %vm1163_vm3, %v1427_v18  ;;  %1220 = vst.msk [vmem:[%s2199_s3 + $0xe0] sm:$0xf] %vm1163_vm3, %v1459_v19  ;;  %v1428_v22 = vpack.c.bf16 %v868_v20, %v868_v20  ;;  %v1460_v23 = vpack.c.bf16 %v900_v21, %v900_v21 }
 0x164   :  { %v692_v24 = vpop.f32.mrb[52].mxu0  ;;  %v820_v25 = vpop.f32.mrb[52].mxu1 }
 0x165   :  { %1189 = vst.msk [vmem:[%s2199_s3 + $0x64] sm:$0xf] %vm1163_vm3, %v1428_v22  ;;  %1221 = vst.msk [vmem:[%s2199_s3 + $0xe4] sm:$0xf] %vm1163_vm3, %v1460_v23  ;;  %v693_v26 = vadd.f32 %v1874_v15, %v692_v24  ;;  %v821_v27 = vadd.f32 %v1874_v15, %v820_v25  ;;  %v694_v28 = vpop.f32.mrb[53].mxu0  ;;  %v822_v29 = vpop.f32.mrb[53].mxu1 }
 0x166   :  { %v695_v30 = vpop.f32.mrb[54].mxu0  ;;  %v823_v31 = vpop.f32.mrb[54].mxu1 }
 0x167   :  { %v869_v32 = vmax.f32 %v693_v26, 0.0  ;;  %v901_v33 = vmax.f32 %v821_v27, 0.0  ;;  %v696_v34 = vadd.f32 %v1874_v15, %v695_v30  ;;  %v824_v35 = vadd.f32 %v1874_v15, %v823_v31  ;;  %v697_v36 = vpop.f32.mrb[55].mxu0  ;;  %v825_v37 = vpop.f32.mrb[55].mxu1 }
 0x169   :  { %v1429_v38 = vpack.c.bf16 %v869_v32, %v869_v32  ;;  %v1461_v39 = vpack.c.bf16 %v901_v33, %v901_v33  ;;  %v870_v40 = vmax.f32 %v696_v34, 0.0  ;;  %v902_v41 = vmax.f32 %v824_v35, 0.0 }
 0x16b   :  { %1190 = vst.msk [vmem:[%s2199_s3 + $0x68] sm:$0xf] %vm1163_vm3, %v1429_v38  ;;  %1222 = vst.msk [vmem:[%s2199_s3 + $0xe8] sm:$0xf] %vm1163_vm3, %v1461_v39  ;;  %v1430_v42 = vpack.c.bf16 %v870_v40, %v870_v40  ;;  %v1462_v43 = vpack.c.bf16 %v902_v41, %v902_v41 }
 0x16c   :  { %v700_v44 = vpop.f32.mrb[56].mxu0  ;;  %v828_v45 = vpop.f32.mrb[56].mxu1 }
 0x16d   :  { %1191 = vst.msk [vmem:[%s2199_s3 + $0x6c] sm:$0xf] %vm1163_vm3, %v1430_v42  ;;  %1223 = vst.msk [vmem:[%s2199_s3 + $0xec] sm:$0xf] %vm1163_vm3, %v1462_v43  ;;  %v701_v46 = vadd.f32 %v1874_v15, %v700_v44  ;;  %v829_v47 = vadd.f32 %v1874_v15, %v828_v45  ;;  %v702_v48 = vpop.f32.mrb[57].mxu0  ;;  %v830_v49 = vpop.f32.mrb[57].mxu1 }
 0x16e   :  { %v703_v50 = vpop.f32.mrb[58].mxu0  ;;  %v831_v51 = vpop.f32.mrb[58].mxu1 }
 0x16f   :  { %v871_v52 = vmax.f32 %v701_v46, 0.0  ;;  %v903_v53 = vmax.f32 %v829_v47, 0.0  ;;  %v704_v54 = vadd.f32 %v1874_v15, %v703_v50  ;;  %v832_v55 = vadd.f32 %v1874_v15, %v831_v51  ;;  %v705_v56 = vpop.f32.mrb[59].mxu0  ;;  %v833_v57 = vpop.f32.mrb[59].mxu1 }
 0x171   :  { %v1431_v58 = vpack.c.bf16 %v871_v52, %v871_v52  ;;  %v1463_v59 = vpack.c.bf16 %v903_v53, %v903_v53  ;;  %v872_v60 = vmax.f32 %v704_v54, 0.0  ;;  %v904_v61 = vmax.f32 %v832_v55, 0.0 }
 0x173   :  { %1192 = vst.msk [vmem:[%s2199_s3 + $0x70] sm:$0xf] %vm1163_vm3, %v1431_v58  ;;  %1224 = vst.msk [vmem:[%s2199_s3 + $0xf0] sm:$0xf] %vm1163_vm3, %v1463_v59  ;;  %v1432_v62 = vpack.c.bf16 %v872_v60, %v872_v60  ;;  %v1464_v63 = vpack.c.bf16 %v904_v61, %v904_v61 }
 0x174   :  { %v708_v0 = vpop.f32.mrb[60].mxu0  ;;  %v836_v1 = vpop.f32.mrb[60].mxu1 }
 0x175   :  { %1193 = vst.msk [vmem:[%s2199_s3 + $0x74] sm:$0xf] %vm1163_vm3, %v1432_v62  ;;  %1225 = vst.msk [vmem:[%s2199_s3 + $0xf4] sm:$0xf] %vm1163_vm3, %v1464_v63  ;;  %v709_v2 = vadd.f32 %v1874_v15, %v708_v0  ;;  %v837_v3 = vadd.f32 %v1874_v15, %v836_v1  ;;  %v710_v4 = vpop.f32.mrb[61].mxu0  ;;  %v838_v5 = vpop.f32.mrb[61].mxu1 }
 0x176   :  { %v711_v6 = vpop.f32.mrb[62].mxu0  ;;  %v839_v7 = vpop.f32.mrb[62].mxu1 }
 0x177   :  { %v873_v8 = vmax.f32 %v709_v2, 0.0  ;;  %v905_v9 = vmax.f32 %v837_v3, 0.0  ;;  %v712_v10 = vadd.f32 %v1874_v15, %v711_v6  ;;  %v840_v11 = vadd.f32 %v1874_v15, %v839_v7  ;;  %v713_v12 = vpop.f32.mrb[63].mxu0  ;;  %v841_v13 = vpop.f32.mrb[63].mxu1 }
 0x179   :  { %v1433_v14 = vpack.c.bf16 %v873_v8, %v873_v8  ;;  %v1465_v16 = vpack.c.bf16 %v905_v9, %v905_v9  ;;  %v874_v17 = vmax.f32 %v712_v10, 0.0  ;;  %v906_v18 = vmax.f32 %v840_v11, 0.0 }
 0x17b   :  { %1194 = vst.msk [vmem:[%s2199_s3 + $0x78] sm:$0xf] %vm1163_vm3, %v1433_v14  ;;  %1226 = vst.msk [vmem:[%s2199_s3 + $0xf8] sm:$0xf] %vm1163_vm3, %v1465_v16  ;;  %v1434_v19 = vpack.c.bf16 %v874_v17, %v874_v17  ;;  %v1466_v20 = vpack.c.bf16 %v906_v18, %v906_v18 }
 0x17d   :  { %1195 = vst.msk [vmem:[%s2199_s3 + $0x7c] sm:$0xf] %vm1163_vm3, %v1434_v19  ;;  %1227 = vst.msk [vmem:[%s2199_s3 + $0xfc] sm:$0xf] %vm1163_vm3, %v1466_v20 }

// kernel: apsnet_forward.8
= control target key start
LH: loop header
LB: loop body
LE: loop exit
PB: predicated region body
PF: predicated region fallthrough
CT: control target
= control target key end

     0   :  { %vm558_vm0 = vcmask 523264   ;;  %vm954_vm1 = vcmask 519168   ;;  %s1730_s1 = inlined_call_operand.vmem [shape: bf16[576,64], index: 1, kind: input, shape index: {}]   ;;  %s1731_s0 = inlined_call_operand.vmem [shape: bf16[128,576], index: 0, kind: input, shape index: {}]   ;;  %s1732_s2 = inlined_call_operand.vmem [shape: f32[1,64], index: 2, kind: input, shape index: {}]   ;;  %s1733_s3 = inlined_call_operand.vmem [shape: bf16[128,64], index: 3, kind: output, shape index: {}]  }
   0x1   :  { %v1264_v0 = vld [vmem:[%s1730_s1 + $0x40] sm:$0xff]   ;;  %v1268_v4 = vld [vmem:[%s1730_s1 + $0x48] sm:$0xff]   ;;  %v1272_v8 = vld [vmem:[%s1730_s1 + $0x50] sm:$0xff]  }
   0x2   :  { %v1265_v1 = vld [vmem:[%s1730_s1 + $0xc0] sm:$0xff]   ;;  %1092 = vmatprep.subr.bf16.mxu0 %v1264_v0  ;;  %v1269_v5 = vld [vmem:[%s1730_s1 + $0xc8] sm:$0xff]   ;;  %v1273_v9 = vld [vmem:[%s1730_s1 + $0xd0] sm:$0xff]  }
   0x3   :  { %v1266_v2 = vld [vmem:[%s1730_s1] sm:$0xff]   ;;  %1156 = vmatprep.subr.bf16.mxu1 %v1265_v1  ;;  %v1270_v6 = vld [vmem:[%s1730_s1 + $0x8] sm:$0xff]   ;;  %v1274_v10 = vld [vmem:[%s1730_s1 + $0x10] sm:$0xff]  }
   0x4   :  { %v1267_v3 = vld [vmem:[%s1730_s1 + $0x80] sm:$0xff]   ;;  %1093 = vmatpush3.bf16.msra.mxu0 %v1266_v2  ;;  %v1271_v7 = vld [vmem:[%s1730_s1 + $0x88] sm:$0xff]   ;;  %v1275_v11 = vld [vmem:[%s1730_s1 + $0x90] sm:$0xff]  }
   0x5   :  { %1157 = vmatpush3.bf16.msra.mxu1 %v1267_v3  ;;  %1094 = vmatprep.subr.bf16.mxu0 %v1268_v4  ;;  %v1276_v12 = vld [vmem:[%s1730_s1 + $0x58] sm:$0xff]   ;;  %v1280_v16 = vld [vmem:[%s1730_s1 + $0x60] sm:$0xff]   ;;  %v1284_v20 = vld [vmem:[%s1730_s1 + $0x68] sm:$0xff]  }
   0x6   :  { %1158 = vmatprep.subr.bf16.mxu1 %v1269_v5  ;;  %v1277_v13 = vld [vmem:[%s1730_s1 + $0xd8] sm:$0xff]   ;;  %v1281_v17 = vld [vmem:[%s1730_s1 + $0xe0] sm:$0xff]   ;;  %v1285_v21 = vld [vmem:[%s1730_s1 + $0xe8] sm:$0xff]  }
   0x7   :  { %v1278_v14 = vld [vmem:[%s1730_s1 + $0x18] sm:$0xff]   ;;  %v1282_v18 = vld [vmem:[%s1730_s1 + $0x20] sm:$0xff]   ;;  %v1286_v22 = vld [vmem:[%s1730_s1 + $0x28] sm:$0xff]  }
   0x8   :  { %1095 = vmatpush3.bf16.msra.mxu0 %v1270_v6  ;;  %v1279_v15 = vld [vmem:[%s1730_s1 + $0x98] sm:$0xff]   ;;  %v1283_v19 = vld [vmem:[%s1730_s1 + $0xa0] sm:$0xff]   ;;  %v1287_v23 = vld [vmem:[%s1730_s1 + $0xa8] sm:$0xff]  }
   0x9   :  { %1159 = vmatpush3.bf16.msra.mxu1 %v1271_v7  ;;  %1096 = vmatprep.subr.bf16.mxu0 %v1272_v8  ;;  %v1288_v24 = vld [vmem:[%s1730_s1 + $0x70] sm:$0xff]   ;;  %v1292_v28 = vld [vmem:[%s1730_s1 + $0x78] sm:$0xff]   ;;  %v1301_v35 = vld [vmem:[%s1731_s0 + $0xc] ss:$20 sps:$4 sm:$0xff]  }
   0xa   :  { %1160 = vmatprep.subr.bf16.mxu1 %v1273_v9  ;;  %v1289_v25 = vld [vmem:[%s1730_s1 + $0xf0] sm:$0xff]   ;;  %v1293_v29 = vld [vmem:[%s1730_s1 + $0xf8] sm:$0xff]   ;;  %v1302_v36 = vld [vmem:[%s1730_s1 + $0x100] sm:$0xff]   ;;  %712 = vmatprep.mubr.bf16.mxu1 %v1301_v35 }
   0xb   :  { %v1290_v26 = vld [vmem:[%s1730_s1 + $0x30] sm:$0xff]   ;;  %v1294_v30 = vld [vmem:[%s1730_s1 + $0x38] sm:$0xff]   ;;  %v1303_v37 = vld [vmem:[%s1731_s0 + $0x2c] ss:$20 sps:$4 sm:$0xff]  }
   0xc   :  { %1097 = vmatpush3.bf16.msra.mxu0 %v1274_v10  ;;  %v1291_v27 = vld [vmem:[%s1730_s1 + $0xb0] sm:$0xff]   ;;  %v1295_v31 = vld [vmem:[%s1730_s1 + $0xb8] sm:$0xff]   ;;  %v1315_v42 = vld [vmem:[%s1730_s1 + $0x108] sm:$0xff]  }
   0xd   :  { %1161 = vmatpush3.bf16.msra.mxu1 %v1275_v11  ;;  %1098 = vmatprep.subr.bf16.mxu0 %v1276_v12  ;;  %v1296_v32 = vld [vmem:[%s1731_s0] ss:$20 sps:$4 sm:$0xff]   ;;  %v1298_v33 = vld [vmem:[%s1731_s0 + $0x4] ss:$20 sps:$4 sm:$0xff]   ;;  %v1299_v34 = vld [vmem:[%s1731_s0 + $0x8] ss:$20 sps:$4 sm:$0xff]  }
   0xe   :  { %1162 = vmatprep.subr.bf16.mxu1 %v1277_v13  ;;  %615 = vmatprep.mubr.bf16.mxu0 %v1298_v33  ;;  %v1305_v38 = vld [vmem:[%s1731_s0 + $0x34] ss:$20 sps:$4 sm:$0xff]   ;;  %v1308_v40 = vld [vmem:[%s1731_s0 + $0x30] ss:$20 sps:$4 sm:$0xff]   ;;  %v1314_v45 = vld [vmem:[%s1731_s0 + $0x58] ss:$20 sps:$4 sm:$0xff]  }
   0xf   :  { %v1307_v39 = vld [vmem:[%s1731_s0 + $0x28] ss:$20 sps:$4 sm:$0xff]   ;;  %v1313_v44 = vld [vmem:[%s1731_s0 + $0x50] ss:$20 sps:$4 sm:$0xff]   ;;  %v1320_v50 = vld [vmem:[%s1731_s0 + $0x78] ss:$20 sps:$4 sm:$0xff]  }
  0x10   :  { %1099 = vmatpush3.bf16.msra.mxu0 %v1278_v14  ;;  %v1309_v41 = vld [vmem:[%s1731_s0 + $0x54] ss:$20 sps:$4 sm:$0xff]   ;;  %v1311_v43 = vld [vmem:[%s1731_s0 + $0x5c] ss:$20 sps:$4 sm:$0xff]   ;;  %v1318_v48 = vld [vmem:[%s1731_s0 + $0x84] ss:$20 sps:$4 sm:$0xff]  }
  0x11   :  { %1163 = vmatpush3.bf16.msra.mxu1 %v1279_v15  ;;  %1100 = vmatprep.subr.bf16.mxu0 %v1280_v16  ;;  %v1328_v46 = vld [vmem:[%s1730_s1 + $0x110] sm:$0xff]   ;;  %v1341_v49 = vld [vmem:[%s1730_s1 + $0x118] sm:$0xff]   ;;  %v1324_v53 = vld [vmem:[%s1731_s0 + $0xac] ss:$20 sps:$4 sm:$0xff]  }
  0x12   :  { %1164 = vmatprep.subr.bf16.mxu1 %v1281_v17  ;;  %v1316_v47 = vld [vmem:[%s1731_s0 + $0x7c] ss:$20 sps:$4 sm:$0xff]   ;;  %v1321_v51 = vld [vmem:[%s1731_s0 + $0x80] ss:$20 sps:$4 sm:$0xff]   ;;  %v1322_v52 = vld [vmem:[%s1731_s0 + $0xa4] ss:$20 sps:$4 sm:$0xff]  }
  0x13   :  { %v1326_v54 = vld [vmem:[%s1731_s0 + $0xa0] ss:$20 sps:$4 sm:$0xff]   ;;  %v1327_v55 = vld [vmem:[%s1731_s0 + $0xa8] ss:$20 sps:$4 sm:$0xff]   ;;  %v1334_v59 = vld [vmem:[%s1731_s0 + $0xd0] ss:$20 sps:$4 sm:$0xff]  }
  0x14   :  { %1101 = vmatpush3.bf16.msra.mxu0 %v1282_v18  ;;  %v1329_v56 = vld [vmem:[%s1731_s0 + $0xcc] ss:$20 sps:$4 sm:$0xff]   ;;  %v1331_v57 = vld [vmem:[%s1731_s0 + $0xd4] ss:$20 sps:$4 sm:$0xff]   ;;  %v1337_v61 = vld [vmem:[%s1731_s0 + $0xfc] ss:$20 sps:$4 sm:$0xff]  }
  0x15   :  { %1165 = vmatpush3.bf16.msra.mxu1 %v1283_v19  ;;  %1102 = vmatprep.subr.bf16.mxu0 %v1284_v20  ;;  %v1333_v58 = vld [vmem:[%s1731_s0 + $0xc8] ss:$20 sps:$4 sm:$0xff]   ;;  %v1339_v62 = vld [vmem:[%s1731_s0 + $0xf0] ss:$20 sps:$4 sm:$0xff]   ;;  %v1340_v63 = vld [vmem:[%s1731_s0 + $0xf8] ss:$20 sps:$4 sm:$0xff]  }
  0x16   :  { %1166 = vmatprep.subr.bf16.mxu1 %v1285_v21  ;;  %v1335_v60 = vld [vmem:[%s1731_s0 + $0xf4] ss:$20 sps:$4 sm:$0xff]   ;;  %v1342_v0 = vld [vmem:[%s1731_s0 + $0x11c] ss:$20 sps:$4 sm:$0xff]   ;;  %v1344_v1 = vld [vmem:[%s1731_s0 + $0x124] ss:$20 sps:$4 sm:$0xff]  }
  0x17   :  { %v1346_v2 = vld [vmem:[%s1731_s0 + $0x118] ss:$20 sps:$4 sm:$0xff]   ;;  %v1347_v3 = vld [vmem:[%s1731_s0 + $0x120] ss:$20 sps:$4 sm:$0xff]   ;;  %v1348_v4 = vld [vmem:[%s1731_s0 + $0x10] ss:$20 sps:$4 sm:$0xff]  }
  0x18   :  { %1103 = vmatpush3.bf16.msra.mxu0 %v1286_v22  ;;  %v1349_v5 = vld [vmem:[%s1731_s0 + $0xb0] ss:$20 sps:$4 sm:$0xff]   ;;  %v1350_v6 = vld [vmem:[%s1731_s0 + $0x38] ss:$20 sps:$4 sm:$0xff]   ;;  %v1352_v8 = vld [vmem:[%s1731_s0 + $0x60] ss:$20 sps:$4 sm:$0xff]  }
  0x19   :  { %1167 = vmatpush3.bf16.msra.mxu1 %v1287_v23  ;;  %1104 = vmatprep.subr.bf16.mxu0 %v1288_v24  ;;  %v1351_v7 = vld [vmem:[%s1731_s0 + $0xd8] ss:$20 sps:$4 sm:$0xff]   ;;  %v1353_v9 = vld [vmem:[%s1731_s0 + $0x100] ss:$20 sps:$4 sm:$0xff]   ;;  %v1354_v10 = vld [vmem:[%s1731_s0 + $0x88] ss:$20 sps:$4 sm:$0xff]  }
  0x1a   :  { %1168 = vmatprep.subr.bf16.mxu1 %v1289_v25  ;;  %v1355_v11 = vld [vmem:[%s1731_s0 + $0x128] ss:$20 sps:$4 sm:$0xff]   ;;  %v1615_v14 = vld [vmem:[%s1732_s2] ss:$0 sm:$0xff] }
  0x1c   :  { %1105 = vmatpush3.bf16.msra.mxu0 %v1290_v26 }
  0x1d   :  { %1169 = vmatpush3.bf16.msra.mxu1 %v1291_v27  ;;  %1106 = vmatprep.subr.bf16.mxu0 %v1292_v28 }
  0x1e   :  { %1170 = vmatprep.subr.bf16.mxu1 %v1293_v29 }
  0x20   :  { %1107 = vmatpush3.bf16.msra.mxu0 %v1294_v30 }
  0x21   :  { %1171 = vmatpush3.bf16.msra.mxu1 %v1295_v31  ;;  %1232 = vmatprep.subr.bf16.mxu0 %v1302_v36 }
  0x22   :  { %1256 = vmatprep.subr.bf16.mxu1 %v1302_v36 }
  0x23   :  { %616 = vmatmul.mubr.bf16.vlgmr.msra.gmra.mrb[0].mxu0 %v1296_v32 }
  0x24   :  { %713 = vmatmul.mubr.bf16.vlgmr.msra.gmra.mrb[0].mxu1 %v1299_v34  ;;  %1233 = vmatpush3.bf16.msra.mxu0 %v1302_v36 }
  0x25   :  { %1260 = vmatpush3.bf16.msra.mxu1 %v1302_v36  ;;  %623 = vmatprep.mubr.bf16.mxu0 %v1303_v37 }
  0x26   :  { %720 = vmatprep.mubr.bf16.mxu1 %v1305_v38  ;;  %1234 = vmatprep.subr.bf16.mxu0 %v1315_v42 }
  0x27   :  { %1257 = vmatprep.subr.bf16.mxu1 %v1315_v42 }
  0x28   :  { %1235 = vmatpush3.bf16.msra.mxu0 %v1315_v42 }
  0x29   :  { %1261 = vmatpush3.bf16.msra.mxu1 %v1315_v42  ;;  %1236 = vmatprep.subr.bf16.mxu0 %v1328_v46 }
  0x2a   :  { %1258 = vmatprep.subr.bf16.mxu1 %v1328_v46 }
  0x2b   :  { %624 = vmatmul.mubr.bf16.gmra.mrb[4].mxu0 %v1307_v39 }
  0x2c   :  { %721 = vmatmul.mubr.bf16.gmra.mrb[4].mxu1 %v1308_v40  ;;  %631 = vmatprep.mubr.bf16.mxu0 %v1309_v41 }
  0x2d   :  { %728 = vmatprep.mubr.bf16.mxu1 %v1311_v43  ;;  %1237 = vmatpush3.bf16.msra.mxu0 %v1328_v46 }
  0x2e   :  { %1262 = vmatpush3.bf16.msra.mxu1 %v1328_v46  ;;  %1238 = vmatprep.subr.bf16.mxu0 %v1341_v49 }
  0x2f   :  { %1259 = vmatprep.subr.bf16.mxu1 %v1341_v49 }
  0x31   :  { %1239 = vmatpush3.bf16.msra.mxu0 %v1341_v49 }
  0x32   :  { %1263 = vmatpush3.bf16.msra.mxu1 %v1341_v49 }
  0x33   :  { %632 = vmatmul.mubr.bf16.gmra.mrb[8].mxu0 %v1313_v44 }
  0x34   :  { %729 = vmatmul.mubr.bf16.gmra.mrb[8].mxu1 %v1314_v45  ;;  %639 = vmatprep.mubr.bf16.mxu0 %v1316_v47 }
  0x35   :  { %736 = vmatprep.mubr.bf16.mxu1 %v1318_v48 }
  0x3b   :  { %640 = vmatmul.mubr.bf16.gmra.mrb[12].mxu0 %v1320_v50 }
  0x3c   :  { %737 = vmatmul.mubr.bf16.gmra.mrb[12].mxu1 %v1321_v51  ;;  %647 = vmatprep.mubr.bf16.mxu0 %v1322_v52 }
  0x3d   :  { %744 = vmatprep.mubr.bf16.mxu1 %v1324_v53 }
  0x43   :  { %648 = vmatmul.mubr.bf16.gmra.mrb[16].mxu0 %v1326_v54 }
  0x44   :  { %745 = vmatmul.mubr.bf16.gmra.mrb[16].mxu1 %v1327_v55  ;;  %655 = vmatprep.mubr.bf16.mxu0 %v1329_v56 }
  0x45   :  { %752 = vmatprep.mubr.bf16.mxu1 %v1331_v57 }
  0x4b   :  { %656 = vmatmul.mubr.bf16.gmra.mrb[20].mxu0 %v1333_v58 }
  0x4c   :  { %753 = vmatmul.mubr.bf16.gmra.mrb[20].mxu1 %v1334_v59  ;;  %663 = vmatprep.mubr.bf16.mxu0 %v1335_v60 }
  0x4d   :  { %760 = vmatprep.mubr.bf16.mxu1 %v1337_v61 }
  0x53   :  { %664 = vmatmul.mubr.bf16.gmra.mrb[24].mxu0 %v1339_v62 }
  0x54   :  { %761 = vmatmul.mubr.bf16.gmra.mrb[24].mxu1 %v1340_v63  ;;  %671 = vmatprep.mubr.bf16.mxu0 %v1342_v0 }
  0x55   :  { %768 = vmatprep.mubr.bf16.mxu1 %v1344_v1 }
  0x5b   :  { %672 = vmatmul.mubr.bf16.gmra.mrb[28].mxu0 %v1346_v2 }
  0x5c   :  { %769 = vmatmul.mubr.bf16.gmra.mrb[28].mxu1 %v1347_v3  ;;  %1240 = vmatprep.mubr.msk.bf16.mxu0 %vm558_vm0, %v1348_v4 }
  0x5d   :  { %1248 = vmatprep.mubr.msk.bf16.mxu1 %vm558_vm0, %v1349_v5 }
  0x63   :  { %1241 = vmatmul.mubr.msk.bf16.vlgmr.msra.gmra.mrb[32].mxu0 %vm558_vm0, %v1350_v6 }
  0x64   :  { %1249 = vmatmul.mubr.msk.bf16.vlgmr.msra.gmra.mrb[32].mxu1 %vm558_vm0, %v1351_v7  ;;  %1244 = vmatprep.mubr.msk.bf16.mxu0 %vm558_vm0, %v1352_v8 }
  0x65   :  { %1252 = vmatprep.mubr.msk.bf16.mxu1 %vm558_vm0, %v1353_v9 }
  0x6b   :  { %1245 = vmatmul.mubr.msk.bf16.gmra.mrb[36].mxu0 %vm558_vm0, %v1354_v10 }
  0x6c   :  { %1253 = vmatmul.mubr.msk.bf16.gmra.mrb[36].mxu1 %vm558_vm0, %v1355_v11 }
  0xf6   :  { %v1108_v12 = vpop.f32.mrb[0].mxu0 }
  0xf7   :  { %v1172_v13 = vpop.f32.mrb[0].mxu1  ;;  %v1109_v15 = vpop.f32.mrb[1].mxu0 }
  0xf8   :  { %v1110_v16 = vadd.f32 %v1109_v15, %v1108_v12  ;;  %v1173_v17 = vpop.f32.mrb[1].mxu1  ;;  %v1111_v18 = vpop.f32.mrb[2].mxu0 }
  0xf9   :  { %v1174_v19 = vadd.f32 %v1173_v17, %v1172_v13  ;;  %v1175_v20 = vpop.f32.mrb[2].mxu1  ;;  %v1112_v21 = vpop.f32.mrb[3].mxu0 }
  0xfa   :  { %v618_v22 = vadd.f32 %v1110_v16, %v1615_v14  ;;  %v1113_v23 = vadd.f32 %v1112_v21, %v1111_v18  ;;  %v1176_v24 = vpop.f32.mrb[3].mxu1 }
  0xfb   :  { %v1177_v25 = vadd.f32 %v1176_v24, %v1175_v20 }
  0xfc   :  { %v621_v26 = vadd.f32 %v1113_v23, %v1615_v14  ;;  %v1619_v27 = vadd.f32 %v1174_v19, %v618_v22 }
  0xfe   :  { %v1114_v28 = vpop.f32.mrb[4].mxu0  ;;  %v1621_v29 = vadd.f32 %v1177_v25, %v621_v26 }
  0xff   :  { %v1178_v30 = vpop.f32.mrb[4].mxu1  ;;  %v1115_v31 = vpop.f32.mrb[5].mxu0 }
 0x100   :  { %v1116_v32 = vadd.f32 %v1115_v31, %v1114_v28  ;;  %v1179_v33 = vpop.f32.mrb[5].mxu1  ;;  %v1117_v34 = vpop.f32.mrb[6].mxu0 }
 0x101   :  { %v1180_v35 = vadd.f32 %v1179_v33, %v1178_v30  ;;  %v1181_v36 = vpop.f32.mrb[6].mxu1  ;;  %v1118_v37 = vpop.f32.mrb[7].mxu0 }
 0x102   :  { %v626_v38 = vadd.f32 %v1116_v32, %v1615_v14  ;;  %v1119_v39 = vadd.f32 %v1118_v37, %v1117_v34  ;;  %v1182_v40 = vpop.f32.mrb[7].mxu1 }
 0x103   :  { %v1183_v41 = vadd.f32 %v1182_v40, %v1181_v36 }
 0x104   :  { %v629_v42 = vadd.f32 %v1119_v39, %v1615_v14  ;;  %v1625_v43 = vadd.f32 %v1180_v35, %v626_v38 }
 0x106   :  { %v1120_v44 = vpop.f32.mrb[8].mxu0  ;;  %v1627_v45 = vadd.f32 %v1183_v41, %v629_v42 }
 0x107   :  { %v1184_v46 = vpop.f32.mrb[8].mxu1  ;;  %v1121_v47 = vpop.f32.mrb[9].mxu0 }
 0x108   :  { %v1122_v48 = vadd.f32 %v1121_v47, %v1120_v44  ;;  %v1185_v49 = vpop.f32.mrb[9].mxu1  ;;  %v1123_v50 = vpop.f32.mrb[10].mxu0 }
 0x109   :  { %v1186_v51 = vadd.f32 %v1185_v49, %v1184_v46  ;;  %v1187_v52 = vpop.f32.mrb[10].mxu1  ;;  %v1124_v53 = vpop.f32.mrb[11].mxu0 }
 0x10a   :  { %v634_v54 = vadd.f32 %v1122_v48, %v1615_v14  ;;  %v1125_v55 = vadd.f32 %v1124_v53, %v1123_v50  ;;  %v1188_v56 = vpop.f32.mrb[11].mxu1 }
 0x10b   :  { %v1189_v57 = vadd.f32 %v1188_v56, %v1187_v52 }
 0x10c   :  { %v637_v58 = vadd.f32 %v1125_v55, %v1615_v14  ;;  %v1631_v59 = vadd.f32 %v1186_v51, %v634_v54 }
 0x10e   :  { %v1126_v60 = vpop.f32.mrb[12].mxu0  ;;  %v1633_v61 = vadd.f32 %v1189_v57, %v637_v58 }
 0x10f   :  { %v1190_v62 = vpop.f32.mrb[12].mxu1  ;;  %v1127_v63 = vpop.f32.mrb[13].mxu0 }
 0x110   :  { %v1128_v0 = vadd.f32 %v1127_v63, %v1126_v60  ;;  %v1191_v1 = vpop.f32.mrb[13].mxu1  ;;  %v1129_v2 = vpop.f32.mrb[14].mxu0 }
 0x111   :  { %v1192_v3 = vadd.f32 %v1191_v1, %v1190_v62  ;;  %v1193_v4 = vpop.f32.mrb[14].mxu1  ;;  %v1130_v5 = vpop.f32.mrb[15].mxu0 }
 0x112   :  { %v642_v6 = vadd.f32 %v1128_v0, %v1615_v14  ;;  %v1131_v7 = vadd.f32 %v1130_v5, %v1129_v2  ;;  %v1194_v8 = vpop.f32.mrb[15].mxu1 }
 0x113   :  { %v1195_v9 = vadd.f32 %v1194_v8, %v1193_v4 }
 0x114   :  { %v645_v10 = vadd.f32 %v1131_v7, %v1615_v14  ;;  %v1637_v11 = vadd.f32 %v1192_v3, %v642_v6 }
 0x116   :  { %v1132_v12 = vpop.f32.mrb[16].mxu0  ;;  %v1639_v13 = vadd.f32 %v1195_v9, %v645_v10 }
 0x117   :  { %v1196_v15 = vpop.f32.mrb[16].mxu1  ;;  %v1133_v16 = vpop.f32.mrb[17].mxu0 }
 0x118   :  { %v1134_v17 = vadd.f32 %v1133_v16, %v1132_v12  ;;  %v1197_v18 = vpop.f32.mrb[17].mxu1  ;;  %v1135_v19 = vpop.f32.mrb[18].mxu0 }
 0x119   :  { %v1198_v20 = vadd.f32 %v1197_v18, %v1196_v15  ;;  %v1199_v21 = vpop.f32.mrb[18].mxu1  ;;  %v1136_v22 = vpop.f32.mrb[19].mxu0 }
 0x11a   :  { %v650_v23 = vadd.f32 %v1134_v17, %v1615_v14  ;;  %v1137_v24 = vadd.f32 %v1136_v22, %v1135_v19  ;;  %v1200_v25 = vpop.f32.mrb[19].mxu1 }
 0x11b   :  { %v1201_v26 = vadd.f32 %v1200_v25, %v1199_v21 }
 0x11c   :  { %v653_v28 = vadd.f32 %v1137_v24, %v1615_v14  ;;  %v747_v30 = vadd.f32 %v1198_v20, %v650_v23 }
 0x11e   :  { %v1138_v31 = vpop.f32.mrb[20].mxu0  ;;  %v1643_v32 = vadd.f32 %v1201_v26, %v653_v28 }
 0x11f   :  { %v1202_v33 = vpop.f32.mrb[20].mxu1  ;;  %v1139_v34 = vpop.f32.mrb[21].mxu0 }
 0x120   :  { %v1140_v35 = vadd.f32 %v1139_v34, %v1138_v31  ;;  %v1203_v36 = vpop.f32.mrb[21].mxu1  ;;  %v1141_v37 = vpop.f32.mrb[22].mxu0 }
 0x121   :  { %v1204_v38 = vadd.f32 %v1203_v36, %v1202_v33  ;;  %v1205_v39 = vpop.f32.mrb[22].mxu1  ;;  %v1142_v40 = vpop.f32.mrb[23].mxu0 }
 0x122   :  { %v658_v41 = vadd.f32 %v1140_v35, %v1615_v14  ;;  %v1143_v42 = vadd.f32 %v1142_v40, %v1141_v37  ;;  %v1206_v44 = vpop.f32.mrb[23].mxu1 }
 0x123   :  { %v1207_v46 = vadd.f32 %v1206_v44, %v1205_v39 }
 0x124   :  { %v661_v47 = vadd.f32 %v1143_v42, %v1615_v14  ;;  %v755_v48 = vadd.f32 %v1204_v38, %v658_v41 }
 0x126   :  { %v1144_v49 = vpop.f32.mrb[24].mxu0  ;;  %v758_v50 = vadd.f32 %v1207_v46, %v661_v47 }
 0x127   :  { %v1208_v51 = vpop.f32.mrb[24].mxu1  ;;  %v1145_v52 = vpop.f32.mrb[25].mxu0 }
 0x128   :  { %v1146_v53 = vadd.f32 %v1145_v52, %v1144_v49  ;;  %v1209_v54 = vpop.f32.mrb[25].mxu1  ;;  %v1147_v55 = vpop.f32.mrb[26].mxu0 }
 0x129   :  { %v1210_v56 = vadd.f32 %v1209_v54, %v1208_v51  ;;  %v1211_v57 = vpop.f32.mrb[26].mxu1  ;;  %v1148_v58 = vpop.f32.mrb[27].mxu0 }
 0x12a   :  { %v666_v60 = vadd.f32 %v1146_v53, %v1615_v14  ;;  %v1149_v62 = vadd.f32 %v1148_v58, %v1147_v55  ;;  %v1212_v63 = vpop.f32.mrb[27].mxu1 }
 0x12b   :  { %v1213_v0 = vadd.f32 %v1212_v63, %v1211_v57 }
 0x12c   :  { %v669_v1 = vadd.f32 %v1149_v62, %v1615_v14  ;;  %v1649_v2 = vadd.f32 %v1210_v56, %v666_v60 }
 0x12e   :  { %v1150_v3 = vpop.f32.mrb[28].mxu0  ;;  %v1651_v4 = vadd.f32 %v1213_v0, %v669_v1 }
 0x12f   :  { %v1214_v5 = vpop.f32.mrb[28].mxu1  ;;  %v1151_v6 = vpop.f32.mrb[29].mxu0 }
 0x130   :  { %v1152_v7 = vadd.f32 %v1151_v6, %v1150_v3  ;;  %v1215_v8 = vpop.f32.mrb[29].mxu1  ;;  %v1153_v9 = vpop.f32.mrb[30].mxu0 }
 0x131   :  { %v1216_v10 = vadd.f32 %v1215_v8, %v1214_v5  ;;  %v1217_v12 = vpop.f32.mrb[30].mxu1  ;;  %v1154_v15 = vpop.f32.mrb[31].mxu0 }
 0x132   :  { %v674_v16 = vadd.f32 %v1152_v7, %v1615_v14  ;;  %v1155_v17 = vadd.f32 %v1154_v15, %v1153_v9  ;;  %v1218_v18 = vpop.f32.mrb[31].mxu1 }
 0x133   :  { %v1219_v19 = vadd.f32 %v1218_v18, %v1217_v12 }
 0x134   :  { %v677_v20 = vadd.f32 %v1155_v17, %v1615_v14  ;;  %v771_v21 = vadd.f32 %v1216_v10, %v674_v16 }
 0x136   :  { %v1242_v22 = vpop.f32.mrb[32].mxu0  ;;  %v774_v23 = vadd.f32 %v1219_v19, %v677_v20 }
 0x137   :  { %v820_v24 = vadd.f32 %v1242_v22, %v1625_v43  ;;  %v1250_v25 = vpop.f32.mrb[32].mxu1  ;;  %v811_v26 = vpop.f32.mrb[33].mxu0 }
 0x138   :  { %v852_v28 = vadd.f32 %v1250_v25, %v755_v48  ;;  %v812_v31 = vadd.f32 %v811_v26, %v1619_v27  ;;  %v843_v33 = vpop.f32.mrb[33].mxu1  ;;  %v1243_v34 = vpop.f32.mrb[34].mxu0 }
 0x139   :  { %v876_v35 = vmax.f32 %v820_v24, 0.0  ;;  %v844_v36 = vadd.f32 %v843_v33, %v747_v30  ;;  %v823_v37 = vadd.f32 %v1243_v34, %v1627_v45  ;;  %v1251_v38 = vpop.f32.mrb[34].mxu1  ;;  %v814_v39 = vpop.f32.mrb[35].mxu0 }
 0x13a   :  { %v884_v14 = vmax.f32 %v852_v28, 0.0  ;;  %v874_v40 = vmax.f32 %v812_v31, 0.0  ;;  %v855_v41 = vadd.f32 %v1251_v38, %v758_v50  ;;  %v815_v42 = vadd.f32 %v814_v39, %v1621_v29  ;;  %v846_v43 = vpop.f32.mrb[35].mxu1 }
 0x13b   :  { %v1078_v44 = vpack.c.bf16 %v876_v35, %v876_v35  ;;  %v882_v46 = vmax.f32 %v844_v36, 0.0  ;;  %v877_v47 = vmax.f32 %v823_v37, 0.0  ;;  %v847_v27 = vadd.f32 %v846_v43, %v1643_v32 }
 0x13c   :  { %v1086_v48 = vpack.c.bf16 %v884_v14, %v884_v14  ;;  %v1076_v49 = vpack.c.bf16 %v874_v40, %v874_v40  ;;  %v885_v51 = vmax.f32 %v855_v41, 0.0  ;;  %v875_v52 = vmax.f32 %v815_v42, 0.0 }
 0x13d   :  { %957 = vst.msk [vmem:[%s1733_s3 + $0x8] sm:$0xf] %vm954_vm1, %v1078_v44  ;;  %v1084_v45 = vpack.c.bf16 %v882_v46, %v882_v46  ;;  %v1079_v30 = vpack.c.bf16 %v877_v47, %v877_v47  ;;  %v883_v50 = vmax.f32 %v847_v27, 0.0 }
 0x13e   :  { %965 = vst.msk [vmem:[%s1733_s3 + $0x28] sm:$0xf] %vm954_vm1, %v1086_v48  ;;  %955 = vst.msk [vmem:[%s1733_s3] sm:$0xf] %vm954_vm1, %v1076_v49  ;;  %v1087_v29 = vpack.c.bf16 %v885_v51, %v885_v51  ;;  %v1077_v32 = vpack.c.bf16 %v875_v52, %v875_v52  ;;  %v1246_v53 = vpop.f32.mrb[36].mxu0 }
 0x13f   :  { %963 = vst.msk [vmem:[%s1733_s3 + $0x20] sm:$0xf] %vm954_vm1, %v1084_v45  ;;  %958 = vst.msk [vmem:[%s1733_s3 + $0xc] sm:$0xf] %vm954_vm1, %v1079_v30  ;;  %v1085_v54 = vpack.c.bf16 %v883_v50, %v883_v50  ;;  %v836_v55 = vadd.f32 %v1246_v53, %v1637_v11  ;;  %v1254_v56 = vpop.f32.mrb[36].mxu1  ;;  %v827_v57 = vpop.f32.mrb[37].mxu0 }
 0x140   :  { %966 = vst.msk [vmem:[%s1733_s3 + $0x2c] sm:$0xf] %vm954_vm1, %v1087_v29  ;;  %956 = vst.msk [vmem:[%s1733_s3 + $0x4] sm:$0xf] %vm954_vm1, %v1077_v32  ;;  %v868_v58 = vadd.f32 %v1254_v56, %v771_v21  ;;  %v828_v60 = vadd.f32 %v827_v57, %v1631_v59  ;;  %v859_v62 = vpop.f32.mrb[37].mxu1  ;;  %v1247_v63 = vpop.f32.mrb[38].mxu0 }
 0x141   :  { %964 = vst.msk [vmem:[%s1733_s3 + $0x24] sm:$0xf] %vm954_vm1, %v1085_v54  ;;  %v880_v11 = vmax.f32 %v836_v55, 0.0  ;;  %v860_v0 = vadd.f32 %v859_v62, %v1649_v2  ;;  %v839_v1 = vadd.f32 %v1247_v63, %v1639_v13  ;;  %v1255_v3 = vpop.f32.mrb[38].mxu1  ;;  %v830_v5 = vpop.f32.mrb[39].mxu0 }
 0x142   :  { %v888_v6 = vmax.f32 %v868_v58, 0.0  ;;  %v878_v7 = vmax.f32 %v828_v60, 0.0  ;;  %v871_v8 = vadd.f32 %v1255_v3, %v774_v23  ;;  %v831_v9 = vadd.f32 %v830_v5, %v1633_v61  ;;  %v862_v59 = vpop.f32.mrb[39].mxu1 }
 0x143   :  { %v1082_v10 = vpack.c.bf16 %v880_v11, %v880_v11  ;;  %v886_v12 = vmax.f32 %v860_v0, 0.0  ;;  %v881_v15 = vmax.f32 %v839_v1, 0.0  ;;  %v863_v16 = vadd.f32 %v862_v59, %v1651_v4 }
 0x144   :  { %v1090_v17 = vpack.c.bf16 %v888_v6, %v888_v6  ;;  %v1080_v18 = vpack.c.bf16 %v878_v7, %v878_v7  ;;  %v889_v19 = vmax.f32 %v871_v8, 0.0  ;;  %v879_v20 = vmax.f32 %v831_v9, 0.0 }
 0x145   :  { %961 = vst.msk [vmem:[%s1733_s3 + $0x18] sm:$0xf] %vm954_vm1, %v1082_v10  ;;  %v1088_v13 = vpack.c.bf16 %v886_v12, %v886_v12  ;;  %v1083_v2 = vpack.c.bf16 %v881_v15, %v881_v15  ;;  %v887_v21 = vmax.f32 %v863_v16, 0.0 }
 0x146   :  { %969 = vst.msk [vmem:[%s1733_s3 + $0x38] sm:$0xf] %vm954_vm1, %v1090_v17  ;;  %959 = vst.msk [vmem:[%s1733_s3 + $0x10] sm:$0xf] %vm954_vm1, %v1080_v18  ;;  %v1091_v61 = vpack.c.bf16 %v889_v19, %v889_v19  ;;  %v1081_v4 = vpack.c.bf16 %v879_v20, %v879_v20 }
 0x147   :  { %967 = vst.msk [vmem:[%s1733_s3 + $0x30] sm:$0xf] %vm954_vm1, %v1088_v13  ;;  %962 = vst.msk [vmem:[%s1733_s3 + $0x1c] sm:$0xf] %vm954_vm1, %v1083_v2  ;;  %v1089_v22 = vpack.c.bf16 %v887_v21, %v887_v21 }
 0x148   :  { %970 = vst.msk [vmem:[%s1733_s3 + $0x3c] sm:$0xf] %vm954_vm1, %v1091_v61  ;;  %960 = vst.msk [vmem:[%s1733_s3 + $0x14] sm:$0xf] %vm954_vm1, %v1081_v4 }
 0x149   :  { %968 = vst.msk [vmem:[%s1733_s3 + $0x34] sm:$0xf] %vm954_vm1, %v1089_v22 }

// kernel: apsnet_forward.9
= control target key start
LH: loop header
LB: loop body
LE: loop exit
PB: predicated region body
PF: predicated region fallthrough
CT: control target
= control target key end

     0   :  { %vm561_vm0 = vcmask 523264   ;;  %vm1005_vm1 = vcmask 519168   ;;  %s1891_s1 = inlined_call_operand.vmem [shape: bf16[576,64], index: 1, kind: input, shape index: {}]   ;;  %s1892_s0 = inlined_call_operand.vmem [shape: bf16[128,576], index: 0, kind: input, shape index: {}]   ;;  %s1893_s2 = inlined_call_operand.vmem [shape: f32[1,64], index: 2, kind: input, shape index: {}]   ;;  %s1894_s3 = inlined_call_operand.vmem [shape: bf16[128,64], index: 3, kind: input, shape index: {}]   ;;  %s1895_s4 = inlined_call_operand.vmem [shape: bf16[128,64], index: 4, kind: output, shape index: {}]  }
   0x1   :  { %v1354_v0 = vld [vmem:[%s1891_s1 + $0x40] sm:$0xff]   ;;  %v1358_v4 = vld [vmem:[%s1891_s1 + $0x48] sm:$0xff]   ;;  %v1362_v8 = vld [vmem:[%s1891_s1 + $0x50] sm:$0xff]  }
   0x2   :  { %v1355_v1 = vld [vmem:[%s1891_s1 + $0xc0] sm:$0xff]   ;;  %1182 = vmatprep.subr.bf16.mxu0 %v1354_v0  ;;  %v1359_v5 = vld [vmem:[%s1891_s1 + $0xc8] sm:$0xff]   ;;  %v1363_v9 = vld [vmem:[%s1891_s1 + $0xd0] sm:$0xff]  }
   0x3   :  { %v1356_v2 = vld [vmem:[%s1891_s1] sm:$0xff]   ;;  %1246 = vmatprep.subr.bf16.mxu1 %v1355_v1  ;;  %v1360_v6 = vld [vmem:[%s1891_s1 + $0x8] sm:$0xff]   ;;  %v1364_v10 = vld [vmem:[%s1891_s1 + $0x10] sm:$0xff]  }
   0x4   :  { %v1357_v3 = vld [vmem:[%s1891_s1 + $0x80] sm:$0xff]   ;;  %1183 = vmatpush3.bf16.msra.mxu0 %v1356_v2  ;;  %v1361_v7 = vld [vmem:[%s1891_s1 + $0x88] sm:$0xff]   ;;  %v1365_v11 = vld [vmem:[%s1891_s1 + $0x90] sm:$0xff]  }
   0x5   :  { %1247 = vmatpush3.bf16.msra.mxu1 %v1357_v3  ;;  %1184 = vmatprep.subr.bf16.mxu0 %v1358_v4  ;;  %v1366_v12 = vld [vmem:[%s1891_s1 + $0x58] sm:$0xff]   ;;  %v1370_v16 = vld [vmem:[%s1891_s1 + $0x60] sm:$0xff]   ;;  %v1374_v20 = vld [vmem:[%s1891_s1 + $0x68] sm:$0xff]  }
   0x6   :  { %1248 = vmatprep.subr.bf16.mxu1 %v1359_v5  ;;  %v1367_v13 = vld [vmem:[%s1891_s1 + $0xd8] sm:$0xff]   ;;  %v1371_v17 = vld [vmem:[%s1891_s1 + $0xe0] sm:$0xff]   ;;  %v1375_v21 = vld [vmem:[%s1891_s1 + $0xe8] sm:$0xff]  }
   0x7   :  { %v1368_v14 = vld [vmem:[%s1891_s1 + $0x18] sm:$0xff]   ;;  %v1372_v18 = vld [vmem:[%s1891_s1 + $0x20] sm:$0xff]   ;;  %v1376_v22 = vld [vmem:[%s1891_s1 + $0x28] sm:$0xff]  }
   0x8   :  { %1185 = vmatpush3.bf16.msra.mxu0 %v1360_v6  ;;  %v1369_v15 = vld [vmem:[%s1891_s1 + $0x98] sm:$0xff]   ;;  %v1373_v19 = vld [vmem:[%s1891_s1 + $0xa0] sm:$0xff]   ;;  %v1377_v23 = vld [vmem:[%s1891_s1 + $0xa8] sm:$0xff]  }
   0x9   :  { %1249 = vmatpush3.bf16.msra.mxu1 %v1361_v7  ;;  %1186 = vmatprep.subr.bf16.mxu0 %v1362_v8  ;;  %v1378_v24 = vld [vmem:[%s1891_s1 + $0x70] sm:$0xff]   ;;  %v1382_v28 = vld [vmem:[%s1891_s1 + $0x78] sm:$0xff]   ;;  %v1391_v35 = vld [vmem:[%s1892_s0 + $0xc] ss:$20 sps:$4 sm:$0xff]  }
   0xa   :  { %1250 = vmatprep.subr.bf16.mxu1 %v1363_v9  ;;  %v1379_v25 = vld [vmem:[%s1891_s1 + $0xf0] sm:$0xff]   ;;  %v1383_v29 = vld [vmem:[%s1891_s1 + $0xf8] sm:$0xff]   ;;  %v1392_v36 = vld [vmem:[%s1891_s1 + $0x100] sm:$0xff]   ;;  %715 = vmatprep.mubr.bf16.mxu1 %v1391_v35 }
   0xb   :  { %v1380_v26 = vld [vmem:[%s1891_s1 + $0x30] sm:$0xff]   ;;  %v1384_v30 = vld [vmem:[%s1891_s1 + $0x38] sm:$0xff]   ;;  %v1393_v37 = vld [vmem:[%s1892_s0 + $0x2c] ss:$20 sps:$4 sm:$0xff]  }
   0xc   :  { %1187 = vmatpush3.bf16.msra.mxu0 %v1364_v10  ;;  %v1381_v27 = vld [vmem:[%s1891_s1 + $0xb0] sm:$0xff]   ;;  %v1385_v31 = vld [vmem:[%s1891_s1 + $0xb8] sm:$0xff]   ;;  %v1405_v42 = vld [vmem:[%s1891_s1 + $0x108] sm:$0xff]  }
   0xd   :  { %1251 = vmatpush3.bf16.msra.mxu1 %v1365_v11  ;;  %1188 = vmatprep.subr.bf16.mxu0 %v1366_v12  ;;  %v1386_v32 = vld [vmem:[%s1892_s0] ss:$20 sps:$4 sm:$0xff]   ;;  %v1388_v33 = vld [vmem:[%s1892_s0 + $0x4] ss:$20 sps:$4 sm:$0xff]   ;;  %v1389_v34 = vld [vmem:[%s1892_s0 + $0x8] ss:$20 sps:$4 sm:$0xff]  }
   0xe   :  { %1252 = vmatprep.subr.bf16.mxu1 %v1367_v13  ;;  %618 = vmatprep.mubr.bf16.mxu0 %v1388_v33  ;;  %v1395_v38 = vld [vmem:[%s1892_s0 + $0x34] ss:$20 sps:$4 sm:$0xff]   ;;  %v1398_v40 = vld [vmem:[%s1892_s0 + $0x30] ss:$20 sps:$4 sm:$0xff]   ;;  %v1404_v45 = vld [vmem:[%s1892_s0 + $0x58] ss:$20 sps:$4 sm:$0xff]  }
   0xf   :  { %v1397_v39 = vld [vmem:[%s1892_s0 + $0x28] ss:$20 sps:$4 sm:$0xff]   ;;  %v1403_v44 = vld [vmem:[%s1892_s0 + $0x50] ss:$20 sps:$4 sm:$0xff]   ;;  %v1410_v50 = vld [vmem:[%s1892_s0 + $0x78] ss:$20 sps:$4 sm:$0xff]  }
  0x10   :  { %1189 = vmatpush3.bf16.msra.mxu0 %v1368_v14  ;;  %v1399_v41 = vld [vmem:[%s1892_s0 + $0x54] ss:$20 sps:$4 sm:$0xff]   ;;  %v1401_v43 = vld [vmem:[%s1892_s0 + $0x5c] ss:$20 sps:$4 sm:$0xff]   ;;  %v1408_v48 = vld [vmem:[%s1892_s0 + $0x84] ss:$20 sps:$4 sm:$0xff]  }
  0x11   :  { %1253 = vmatpush3.bf16.msra.mxu1 %v1369_v15  ;;  %1190 = vmatprep.subr.bf16.mxu0 %v1370_v16  ;;  %v1418_v46 = vld [vmem:[%s1891_s1 + $0x110] sm:$0xff]   ;;  %v1431_v49 = vld [vmem:[%s1891_s1 + $0x118] sm:$0xff]   ;;  %v1414_v53 = vld [vmem:[%s1892_s0 + $0xac] ss:$20 sps:$4 sm:$0xff]  }
  0x12   :  { %1254 = vmatprep.subr.bf16.mxu1 %v1371_v17  ;;  %v1406_v47 = vld [vmem:[%s1892_s0 + $0x7c] ss:$20 sps:$4 sm:$0xff]   ;;  %v1411_v51 = vld [vmem:[%s1892_s0 + $0x80] ss:$20 sps:$4 sm:$0xff]   ;;  %v1412_v52 = vld [vmem:[%s1892_s0 + $0xa4] ss:$20 sps:$4 sm:$0xff]  }
  0x13   :  { %v1416_v54 = vld [vmem:[%s1892_s0 + $0xa0] ss:$20 sps:$4 sm:$0xff]   ;;  %v1417_v55 = vld [vmem:[%s1892_s0 + $0xa8] ss:$20 sps:$4 sm:$0xff]   ;;  %v1424_v59 = vld [vmem:[%s1892_s0 + $0xd0] ss:$20 sps:$4 sm:$0xff]  }
  0x14   :  { %1191 = vmatpush3.bf16.msra.mxu0 %v1372_v18  ;;  %v1419_v56 = vld [vmem:[%s1892_s0 + $0xcc] ss:$20 sps:$4 sm:$0xff]   ;;  %v1421_v57 = vld [vmem:[%s1892_s0 + $0xd4] ss:$20 sps:$4 sm:$0xff]   ;;  %v1427_v61 = vld [vmem:[%s1892_s0 + $0xfc] ss:$20 sps:$4 sm:$0xff]  }
  0x15   :  { %1255 = vmatpush3.bf16.msra.mxu1 %v1373_v19  ;;  %1192 = vmatprep.subr.bf16.mxu0 %v1374_v20  ;;  %v1423_v58 = vld [vmem:[%s1892_s0 + $0xc8] ss:$20 sps:$4 sm:$0xff]   ;;  %v1429_v62 = vld [vmem:[%s1892_s0 + $0xf0] ss:$20 sps:$4 sm:$0xff]   ;;  %v1430_v63 = vld [vmem:[%s1892_s0 + $0xf8] ss:$20 sps:$4 sm:$0xff]  }
  0x16   :  { %1256 = vmatprep.subr.bf16.mxu1 %v1375_v21  ;;  %v1425_v60 = vld [vmem:[%s1892_s0 + $0xf4] ss:$20 sps:$4 sm:$0xff]   ;;  %v1432_v0 = vld [vmem:[%s1892_s0 + $0x11c] ss:$20 sps:$4 sm:$0xff]   ;;  %v1434_v1 = vld [vmem:[%s1892_s0 + $0x124] ss:$20 sps:$4 sm:$0xff]  }
  0x17   :  { %v1436_v2 = vld [vmem:[%s1892_s0 + $0x118] ss:$20 sps:$4 sm:$0xff]   ;;  %v1437_v3 = vld [vmem:[%s1892_s0 + $0x120] ss:$20 sps:$4 sm:$0xff]   ;;  %v1438_v4 = vld [vmem:[%s1892_s0 + $0x10] ss:$20 sps:$4 sm:$0xff]  }
  0x18   :  { %1193 = vmatpush3.bf16.msra.mxu0 %v1376_v22  ;;  %v1439_v5 = vld [vmem:[%s1892_s0 + $0xb0] ss:$20 sps:$4 sm:$0xff]   ;;  %v1440_v6 = vld [vmem:[%s1892_s0 + $0x38] ss:$20 sps:$4 sm:$0xff]   ;;  %v1442_v8 = vld [vmem:[%s1892_s0 + $0x60] ss:$20 sps:$4 sm:$0xff]  }
  0x19   :  { %1257 = vmatpush3.bf16.msra.mxu1 %v1377_v23  ;;  %1194 = vmatprep.subr.bf16.mxu0 %v1378_v24  ;;  %v1441_v7 = vld [vmem:[%s1892_s0 + $0xd8] ss:$20 sps:$4 sm:$0xff]   ;;  %v1443_v9 = vld [vmem:[%s1892_s0 + $0x100] ss:$20 sps:$4 sm:$0xff]   ;;  %v1444_v10 = vld [vmem:[%s1892_s0 + $0x88] ss:$20 sps:$4 sm:$0xff]  }
  0x1a   :  { %1258 = vmatprep.subr.bf16.mxu1 %v1379_v25  ;;  %v1445_v11 = vld [vmem:[%s1892_s0 + $0x128] ss:$20 sps:$4 sm:$0xff]   ;;  %v1710_v14 = vld [vmem:[%s1893_s2] ss:$0 sm:$0xff] }
  0x1c   :  { %1195 = vmatpush3.bf16.msra.mxu0 %v1380_v26 }
  0x1d   :  { %1259 = vmatpush3.bf16.msra.mxu1 %v1381_v27  ;;  %1196 = vmatprep.subr.bf16.mxu0 %v1382_v28 }
  0x1e   :  { %1260 = vmatprep.subr.bf16.mxu1 %v1383_v29 }
  0x20   :  { %1197 = vmatpush3.bf16.msra.mxu0 %v1384_v30 }
  0x21   :  { %1261 = vmatpush3.bf16.msra.mxu1 %v1385_v31  ;;  %1322 = vmatprep.subr.bf16.mxu0 %v1392_v36 }
  0x22   :  { %1346 = vmatprep.subr.bf16.mxu1 %v1392_v36 }
  0x23   :  { %619 = vmatmul.mubr.bf16.vlgmr.msra.gmra.mrb[0].mxu0 %v1386_v32 }
  0x24   :  { %716 = vmatmul.mubr.bf16.vlgmr.msra.gmra.mrb[0].mxu1 %v1389_v34  ;;  %1323 = vmatpush3.bf16.msra.mxu0 %v1392_v36 }
  0x25   :  { %1350 = vmatpush3.bf16.msra.mxu1 %v1392_v36  ;;  %626 = vmatprep.mubr.bf16.mxu0 %v1393_v37 }
  0x26   :  { %723 = vmatprep.mubr.bf16.mxu1 %v1395_v38  ;;  %1324 = vmatprep.subr.bf16.mxu0 %v1405_v42 }
  0x27   :  { %1347 = vmatprep.subr.bf16.mxu1 %v1405_v42 }
  0x28   :  { %1325 = vmatpush3.bf16.msra.mxu0 %v1405_v42 }
  0x29   :  { %1351 = vmatpush3.bf16.msra.mxu1 %v1405_v42  ;;  %1326 = vmatprep.subr.bf16.mxu0 %v1418_v46 }
  0x2a   :  { %1348 = vmatprep.subr.bf16.mxu1 %v1418_v46 }
  0x2b   :  { %627 = vmatmul.mubr.bf16.gmra.mrb[4].mxu0 %v1397_v39 }
  0x2c   :  { %724 = vmatmul.mubr.bf16.gmra.mrb[4].mxu1 %v1398_v40  ;;  %634 = vmatprep.mubr.bf16.mxu0 %v1399_v41 }
  0x2d   :  { %731 = vmatprep.mubr.bf16.mxu1 %v1401_v43  ;;  %1327 = vmatpush3.bf16.msra.mxu0 %v1418_v46 }
  0x2e   :  { %1352 = vmatpush3.bf16.msra.mxu1 %v1418_v46  ;;  %1328 = vmatprep.subr.bf16.mxu0 %v1431_v49 }
  0x2f   :  { %1349 = vmatprep.subr.bf16.mxu1 %v1431_v49 }
  0x31   :  { %1329 = vmatpush3.bf16.msra.mxu0 %v1431_v49 }
  0x32   :  { %1353 = vmatpush3.bf16.msra.mxu1 %v1431_v49 }
  0x33   :  { %635 = vmatmul.mubr.bf16.gmra.mrb[8].mxu0 %v1403_v44 }
  0x34   :  { %732 = vmatmul.mubr.bf16.gmra.mrb[8].mxu1 %v1404_v45  ;;  %642 = vmatprep.mubr.bf16.mxu0 %v1406_v47 }
  0x35   :  { %739 = vmatprep.mubr.bf16.mxu1 %v1408_v48 }
  0x3b   :  { %643 = vmatmul.mubr.bf16.gmra.mrb[12].mxu0 %v1410_v50 }
  0x3c   :  { %740 = vmatmul.mubr.bf16.gmra.mrb[12].mxu1 %v1411_v51  ;;  %650 = vmatprep.mubr.bf16.mxu0 %v1412_v52 }
  0x3d   :  { %747 = vmatprep.mubr.bf16.mxu1 %v1414_v53 }
  0x43   :  { %651 = vmatmul.mubr.bf16.gmra.mrb[16].mxu0 %v1416_v54 }
  0x44   :  { %748 = vmatmul.mubr.bf16.gmra.mrb[16].mxu1 %v1417_v55  ;;  %658 = vmatprep.mubr.bf16.mxu0 %v1419_v56 }
  0x45   :  { %755 = vmatprep.mubr.bf16.mxu1 %v1421_v57 }
  0x4b   :  { %659 = vmatmul.mubr.bf16.gmra.mrb[20].mxu0 %v1423_v58 }
  0x4c   :  { %756 = vmatmul.mubr.bf16.gmra.mrb[20].mxu1 %v1424_v59  ;;  %666 = vmatprep.mubr.bf16.mxu0 %v1425_v60 }
  0x4d   :  { %763 = vmatprep.mubr.bf16.mxu1 %v1427_v61 }
  0x53   :  { %667 = vmatmul.mubr.bf16.gmra.mrb[24].mxu0 %v1429_v62 }
  0x54   :  { %764 = vmatmul.mubr.bf16.gmra.mrb[24].mxu1 %v1430_v63  ;;  %674 = vmatprep.mubr.bf16.mxu0 %v1432_v0 }
  0x55   :  { %771 = vmatprep.mubr.bf16.mxu1 %v1434_v1 }
  0x5b   :  { %675 = vmatmul.mubr.bf16.gmra.mrb[28].mxu0 %v1436_v2 }
  0x5c   :  { %772 = vmatmul.mubr.bf16.gmra.mrb[28].mxu1 %v1437_v3  ;;  %1330 = vmatprep.mubr.msk.bf16.mxu0 %vm561_vm0, %v1438_v4 }
  0x5d   :  { %1338 = vmatprep.mubr.msk.bf16.mxu1 %vm561_vm0, %v1439_v5 }
  0x63   :  { %1331 = vmatmul.mubr.msk.bf16.vlgmr.msra.gmra.mrb[32].mxu0 %vm561_vm0, %v1440_v6 }
  0x64   :  { %1339 = vmatmul.mubr.msk.bf16.vlgmr.msra.gmra.mrb[32].mxu1 %vm561_vm0, %v1441_v7  ;;  %1334 = vmatprep.mubr.msk.bf16.mxu0 %vm561_vm0, %v1442_v8 }
  0x65   :  { %1342 = vmatprep.mubr.msk.bf16.mxu1 %vm561_vm0, %v1443_v9 }
  0x6b   :  { %1335 = vmatmul.mubr.msk.bf16.gmra.mrb[36].mxu0 %vm561_vm0, %v1444_v10 }
  0x6c   :  { %1343 = vmatmul.mubr.msk.bf16.gmra.mrb[36].mxu1 %vm561_vm0, %v1445_v11 }
  0xf6   :  { %v1198_v12 = vpop.f32.mrb[0].mxu0 }
  0xf7   :  { %v1262_v13 = vpop.f32.mrb[0].mxu1  ;;  %v1199_v15 = vpop.f32.mrb[1].mxu0 }
  0xf8   :  { %v1200_v16 = vadd.f32 %v1199_v15, %v1198_v12  ;;  %v1263_v17 = vpop.f32.mrb[1].mxu1  ;;  %v1201_v18 = vpop.f32.mrb[2].mxu0 }
  0xf9   :  { %v1264_v19 = vadd.f32 %v1263_v17, %v1262_v13  ;;  %v1265_v20 = vpop.f32.mrb[2].mxu1  ;;  %v1202_v21 = vpop.f32.mrb[3].mxu0 }
  0xfa   :  { %v621_v22 = vadd.f32 %v1200_v16, %v1710_v14  ;;  %v1203_v23 = vadd.f32 %v1202_v21, %v1201_v18  ;;  %v1266_v24 = vpop.f32.mrb[3].mxu1 }
  0xfb   :  { %v1267_v25 = vadd.f32 %v1266_v24, %v1265_v20 }
  0xfc   :  { %v624_v26 = vadd.f32 %v1203_v23, %v1710_v14  ;;  %v1714_v27 = vadd.f32 %v1264_v19, %v621_v22 }
  0xfe   :  { %v1204_v28 = vpop.f32.mrb[4].mxu0  ;;  %v1716_v29 = vadd.f32 %v1267_v25, %v624_v26 }
  0xff   :  { %v1268_v30 = vpop.f32.mrb[4].mxu1  ;;  %v1205_v31 = vpop.f32.mrb[5].mxu0 }
 0x100   :  { %v1206_v32 = vadd.f32 %v1205_v31, %v1204_v28  ;;  %v1269_v33 = vpop.f32.mrb[5].mxu1  ;;  %v1207_v34 = vpop.f32.mrb[6].mxu0 }
 0x101   :  { %v1270_v35 = vadd.f32 %v1269_v33, %v1268_v30  ;;  %v1271_v36 = vpop.f32.mrb[6].mxu1  ;;  %v1208_v37 = vpop.f32.mrb[7].mxu0 }
 0x102   :  { %v629_v38 = vadd.f32 %v1206_v32, %v1710_v14  ;;  %v1209_v39 = vadd.f32 %v1208_v37, %v1207_v34  ;;  %v1272_v40 = vpop.f32.mrb[7].mxu1 }
 0x103   :  { %v1273_v41 = vadd.f32 %v1272_v40, %v1271_v36 }
 0x104   :  { %v632_v42 = vadd.f32 %v1209_v39, %v1710_v14  ;;  %v1720_v43 = vadd.f32 %v1270_v35, %v629_v38 }
 0x106   :  { %v1210_v44 = vpop.f32.mrb[8].mxu0  ;;  %v1722_v45 = vadd.f32 %v1273_v41, %v632_v42 }
 0x107   :  { %v1274_v46 = vpop.f32.mrb[8].mxu1  ;;  %v1211_v47 = vpop.f32.mrb[9].mxu0 }
 0x108   :  { %v1212_v48 = vadd.f32 %v1211_v47, %v1210_v44  ;;  %v1275_v49 = vpop.f32.mrb[9].mxu1  ;;  %v1213_v50 = vpop.f32.mrb[10].mxu0 }
 0x109   :  { %v1276_v51 = vadd.f32 %v1275_v49, %v1274_v46  ;;  %v1277_v52 = vpop.f32.mrb[10].mxu1  ;;  %v1214_v53 = vpop.f32.mrb[11].mxu0 }
 0x10a   :  { %v637_v54 = vadd.f32 %v1212_v48, %v1710_v14  ;;  %v1215_v55 = vadd.f32 %v1214_v53, %v1213_v50  ;;  %v1278_v56 = vpop.f32.mrb[11].mxu1 }
 0x10b   :  { %v1279_v57 = vadd.f32 %v1278_v56, %v1277_v52 }
 0x10c   :  { %v640_v58 = vadd.f32 %v1215_v55, %v1710_v14  ;;  %v1726_v59 = vadd.f32 %v1276_v51, %v637_v54 }
 0x10e   :  { %v1216_v60 = vpop.f32.mrb[12].mxu0  ;;  %v1728_v61 = vadd.f32 %v1279_v57, %v640_v58 }
 0x10f   :  { %v1280_v62 = vpop.f32.mrb[12].mxu1  ;;  %v1217_v63 = vpop.f32.mrb[13].mxu0 }
 0x110   :  { %v1218_v0 = vadd.f32 %v1217_v63, %v1216_v60  ;;  %v1281_v1 = vpop.f32.mrb[13].mxu1  ;;  %v1219_v2 = vpop.f32.mrb[14].mxu0 }
 0x111   :  { %v1282_v3 = vadd.f32 %v1281_v1, %v1280_v62  ;;  %v1283_v4 = vpop.f32.mrb[14].mxu1  ;;  %v1220_v5 = vpop.f32.mrb[15].mxu0 }
 0x112   :  { %v645_v6 = vadd.f32 %v1218_v0, %v1710_v14  ;;  %v1221_v7 = vadd.f32 %v1220_v5, %v1219_v2  ;;  %v1284_v8 = vpop.f32.mrb[15].mxu1 }
 0x113   :  { %v1285_v9 = vadd.f32 %v1284_v8, %v1283_v4 }
 0x114   :  { %v648_v10 = vadd.f32 %v1221_v7, %v1710_v14  ;;  %v1732_v11 = vadd.f32 %v1282_v3, %v645_v6 }
 0x116   :  { %v1222_v12 = vpop.f32.mrb[16].mxu0  ;;  %v1734_v13 = vadd.f32 %v1285_v9, %v648_v10  ;;  %v1175_v10 = vld [vmem:[%s1894_s3 + $0x8] sm:$0xff]  }
 0x117   :  { %v1286_v15 = vpop.f32.mrb[16].mxu1  ;;  %v1223_v16 = vpop.f32.mrb[17].mxu0 }
 0x118   :  { %v1224_v17 = vadd.f32 %v1223_v16, %v1222_v12  ;;  %v1287_v18 = vpop.f32.mrb[17].mxu1  ;;  %v1225_v19 = vpop.f32.mrb[18].mxu0  ;;  %v1179_v12 = vld [vmem:[%s1894_s3 + $0x28] sm:$0xff]  }
 0x119   :  { %v1288_v20 = vadd.f32 %v1287_v18, %v1286_v15  ;;  %v1289_v21 = vpop.f32.mrb[18].mxu1  ;;  %v1226_v22 = vpop.f32.mrb[19].mxu0  ;;  %v1144_v18 = vld [vmem:[%s1894_s3] sm:$0xff]  }
 0x11a   :  { %v653_v23 = vadd.f32 %v1224_v17, %v1710_v14  ;;  %v1227_v24 = vadd.f32 %v1226_v22, %v1225_v19  ;;  %v1290_v25 = vpop.f32.mrb[19].mxu1  ;;  %v1178_v19 = vld [vmem:[%s1894_s3 + $0x20] sm:$0xff]  }
 0x11b   :  { %v1291_v26 = vadd.f32 %v1290_v25, %v1289_v21  ;;  %v1165_v25 = vunpack.c.l.bf16 %v1179_v12 }
 0x11c   :  { %v656_v28 = vadd.f32 %v1227_v24, %v1710_v14  ;;  %v1738_v30 = vadd.f32 %v1288_v20, %v653_v23  ;;  %v1149_v24 = vunpack.c.l.bf16 %v1175_v10 }
 0x11e   :  { %v1228_v31 = vpop.f32.mrb[20].mxu0  ;;  %v1740_v32 = vadd.f32 %v1291_v26, %v656_v28  ;;  %v1768_v26 = vld [vmem:[%s1894_s3 + $0x18] sm:$0xff]  }
 0x11f   :  { %v1292_v33 = vpop.f32.mrb[20].mxu1  ;;  %v1229_v34 = vpop.f32.mrb[21].mxu0  ;;  %v1773_v28 = vld [vmem:[%s1894_s3 + $0x38] sm:$0xff]  }
 0x120   :  { %v1230_v35 = vadd.f32 %v1229_v34, %v1228_v31  ;;  %v1293_v36 = vpop.f32.mrb[21].mxu1  ;;  %v1231_v37 = vpop.f32.mrb[22].mxu0  ;;  %v1161_v34 = vunpack.c.l.bf16 %v1178_v19 }
 0x121   :  { %v1294_v38 = vadd.f32 %v1293_v36, %v1292_v33  ;;  %v1295_v39 = vpop.f32.mrb[22].mxu1  ;;  %v1232_v40 = vpop.f32.mrb[23].mxu0  ;;  %v1145_v33 = vunpack.c.l.bf16 %v1144_v18  ;;  %v1781_v36 = vld [vmem:[%s1894_s3 + $0x10] sm:$0xff]  }
 0x122   :  { %v661_v41 = vadd.f32 %v1230_v35, %v1710_v14  ;;  %v1233_v42 = vadd.f32 %v1232_v40, %v1231_v37  ;;  %v1296_v44 = vpop.f32.mrb[23].mxu1  ;;  %v1786_v37 = vld [vmem:[%s1894_s3 + $0x30] sm:$0xff]   ;;  %v1146_v40 = vunpack.c.h.bf16 %v1144_v18 }
 0x123   :  { %v1297_v46 = vadd.f32 %v1296_v44, %v1295_v39  ;;  %v1166_v39 = vunpack.c.h.bf16 %v1179_v12  ;;  %v1173_v44 = vunpack.c.l.bf16 %v1773_v28 }
 0x124   :  { %v664_v47 = vadd.f32 %v1233_v42, %v1710_v14  ;;  %v758_v48 = vadd.f32 %v1294_v38, %v661_v41  ;;  %v1150_v38 = vunpack.c.h.bf16 %v1175_v10  ;;  %v1162_v41 = vunpack.c.h.bf16 %v1178_v19 }
 0x126   :  { %v1234_v49 = vpop.f32.mrb[24].mxu0  ;;  %v1744_v50 = vadd.f32 %v1297_v46, %v664_v47 }
 0x127   :  { %v1298_v51 = vpop.f32.mrb[24].mxu1  ;;  %v1235_v52 = vpop.f32.mrb[25].mxu0 }
 0x128   :  { %v1236_v53 = vadd.f32 %v1235_v52, %v1234_v49  ;;  %v1299_v54 = vpop.f32.mrb[25].mxu1  ;;  %v1237_v55 = vpop.f32.mrb[26].mxu0  ;;  %v1153_v52 = vunpack.c.l.bf16 %v1781_v36 }
 0x129   :  { %v1300_v56 = vadd.f32 %v1299_v54, %v1298_v51  ;;  %v1301_v57 = vpop.f32.mrb[26].mxu1  ;;  %v1238_v58 = vpop.f32.mrb[27].mxu0  ;;  %v1158_v54 = vunpack.c.h.bf16 %v1768_v26 }
 0x12a   :  { %v669_v60 = vadd.f32 %v1236_v53, %v1710_v14  ;;  %v1239_v62 = vadd.f32 %v1238_v58, %v1237_v55  ;;  %v1302_v63 = vpop.f32.mrb[27].mxu1  ;;  %v1169_v53 = vunpack.c.l.bf16 %v1786_v37 }
 0x12b   :  { %v1303_v0 = vadd.f32 %v1302_v63, %v1301_v57 }
 0x12c   :  { %v672_v1 = vadd.f32 %v1239_v62, %v1710_v14  ;;  %v1748_v2 = vadd.f32 %v1300_v56, %v669_v60  ;;  %v1174_v60 = vunpack.c.h.bf16 %v1773_v28  ;;  %v1154_v62 = vunpack.c.h.bf16 %v1781_v36 }
 0x12e   :  { %v1240_v3 = vpop.f32.mrb[28].mxu0  ;;  %v1750_v4 = vadd.f32 %v1303_v0, %v672_v1 }
 0x12f   :  { %v1304_v5 = vpop.f32.mrb[28].mxu1  ;;  %v1241_v6 = vpop.f32.mrb[29].mxu0 }
 0x130   :  { %v1242_v7 = vadd.f32 %v1241_v6, %v1240_v3  ;;  %v1305_v8 = vpop.f32.mrb[29].mxu1  ;;  %v1243_v9 = vpop.f32.mrb[30].mxu0 }
 0x131   :  { %v1306_v15 = vadd.f32 %v1305_v8, %v1304_v5  ;;  %v1307_v16 = vpop.f32.mrb[30].mxu1  ;;  %v1244_v17 = vpop.f32.mrb[31].mxu0  ;;  %v1170_v5 = vunpack.c.h.bf16 %v1786_v37 }
 0x132   :  { %v677_v20 = vadd.f32 %v1242_v7, %v1710_v14  ;;  %v1245_v21 = vadd.f32 %v1244_v17, %v1243_v9  ;;  %v1308_v22 = vpop.f32.mrb[31].mxu1 }
 0x133   :  { %v1309_v23 = vadd.f32 %v1308_v22, %v1307_v16 }
 0x134   :  { %v680_v31 = vadd.f32 %v1245_v21, %v1710_v14  ;;  %v1776_v35 = vadd.f32 %v1306_v15, %v677_v20  ;;  %v1157_v14 = vunpack.c.l.bf16 %v1768_v26 }
 0x136   :  { %v1332_v42 = vpop.f32.mrb[32].mxu0  ;;  %v1790_v46 = vadd.f32 %v1309_v23, %v680_v31 }
 0x137   :  { %v823_v47 = vadd.f32 %v1332_v42, %v1720_v43  ;;  %v1340_v49 = vpop.f32.mrb[32].mxu1  ;;  %v814_v51 = vpop.f32.mrb[33].mxu0 }
 0x138   :  { %v855_v55 = vadd.f32 %v1340_v49, %v758_v48  ;;  %v815_v56 = vadd.f32 %v814_v51, %v1714_v27  ;;  %v846_v57 = vpop.f32.mrb[33].mxu1  ;;  %v1333_v58 = vpop.f32.mrb[34].mxu0 }
 0x139   :  { %v911_v63 = vadd.f32 %v1149_v24, %v823_v47  ;;  %v847_v43 = vadd.f32 %v846_v57, %v1738_v30  ;;  %v826_v0 = vadd.f32 %v1333_v58, %v1722_v45  ;;  %v1341_v1 = vpop.f32.mrb[34].mxu1  ;;  %v817_v3 = vpop.f32.mrb[35].mxu0 }
 0x13a   :  { %v919_v6 = vadd.f32 %v1165_v25, %v855_v55  ;;  %v909_v7 = vadd.f32 %v1145_v33, %v815_v56  ;;  %v858_v48 = vadd.f32 %v1341_v1, %v1744_v50  ;;  %v818_v27 = vadd.f32 %v817_v3, %v1716_v29  ;;  %v849_v8 = vpop.f32.mrb[35].mxu1 }
 0x13b   :  { %v927_v9 = vmax.f32 %v911_v63, 0.0  ;;  %v917_v10 = vadd.f32 %v1161_v34, %v847_v43  ;;  %v912_v12 = vadd.f32 %v1150_v38, %v826_v0  ;;  %v850_v15 = vadd.f32 %v849_v8, %v1740_v32 }
 0x13c   :  { %v935_v16 = vmax.f32 %v919_v6, 0.0  ;;  %v925_v30 = vmax.f32 %v909_v7, 0.0  ;;  %v920_v17 = vadd.f32 %v1166_v39, %v858_v48  ;;  %v910_v45 = vadd.f32 %v1146_v40, %v818_v27 }
 0x13d   :  { %v1129_v18 = vpack.c.bf16 %v927_v9, %v927_v9  ;;  %v933_v19 = vmax.f32 %v917_v10, 0.0  ;;  %v928_v20 = vmax.f32 %v912_v12, 0.0  ;;  %v918_v21 = vadd.f32 %v1162_v41, %v850_v15 }
 0x13e   :  { %v1137_v22 = vpack.c.bf16 %v935_v16, %v935_v16  ;;  %v1127_v23 = vpack.c.bf16 %v925_v30, %v925_v30  ;;  %v936_v24 = vmax.f32 %v920_v17, 0.0  ;;  %v926_v50 = vmax.f32 %v910_v45, 0.0  ;;  %v1336_v25 = vpop.f32.mrb[36].mxu0 }
 0x13f   :  { %1008 = vst.msk [vmem:[%s1895_s4 + $0x8] sm:$0xf] %vm1005_vm1, %v1129_v18  ;;  %v1135_v29 = vpack.c.bf16 %v933_v19, %v933_v19  ;;  %v1130_v32 = vpack.c.bf16 %v928_v20, %v928_v20  ;;  %v934_v31 = vmax.f32 %v918_v21, 0.0  ;;  %v839_v33 = vadd.f32 %v1336_v25, %v1732_v11  ;;  %v1344_v34 = vpop.f32.mrb[36].mxu1  ;;  %v830_v38 = vpop.f32.mrb[37].mxu0 }
 0x140   :  { %1016 = vst.msk [vmem:[%s1895_s4 + $0x28] sm:$0xf] %vm1005_vm1, %v1137_v22  ;;  %1006 = vst.msk [vmem:[%s1895_s4] sm:$0xf] %vm1005_vm1, %v1127_v23  ;;  %v1138_v39 = vpack.c.bf16 %v936_v24, %v936_v24  ;;  %v1128_v40 = vpack.c.bf16 %v926_v50, %v926_v50  ;;  %v871_v41 = vadd.f32 %v1344_v34, %v1776_v35  ;;  %v862_v47 = vpop.f32.mrb[37].mxu1  ;;  %v1337_v11 = vpop.f32.mrb[38].mxu0 }
 0x141   :  { %v831_v42 = vadd.f32 %v830_v38, %v1726_v59  ;;  %1014 = vst.msk [vmem:[%s1895_s4 + $0x20] sm:$0xf] %vm1005_vm1, %v1135_v29  ;;  %1009 = vst.msk [vmem:[%s1895_s4 + $0xc] sm:$0xf] %vm1005_vm1, %v1130_v32  ;;  %v1136_v49 = vpack.c.bf16 %v934_v31, %v934_v31  ;;  %v915_v51 = vadd.f32 %v1157_v14, %v839_v33  ;;  %v1345_v56 = vpop.f32.mrb[38].mxu1  ;;  %v833_v59 = vpop.f32.mrb[39].mxu0 }
 0x142   :  { %v863_v55 = vadd.f32 %v862_v47, %v1748_v2  ;;  %v842_v35 = vadd.f32 %v1337_v11, %v1734_v13  ;;  %1017 = vst.msk [vmem:[%s1895_s4 + $0x2c] sm:$0xf] %vm1005_vm1, %v1138_v39  ;;  %1007 = vst.msk [vmem:[%s1895_s4 + $0x4] sm:$0xf] %vm1005_vm1, %v1128_v40  ;;  %v923_v57 = vadd.f32 %v1173_v44, %v871_v41  ;;  %v865_v58 = vpop.f32.mrb[39].mxu1 }
 0x143   :  { %v913_v2 = vadd.f32 %v1153_v52, %v831_v42  ;;  %v874_v13 = vadd.f32 %v1345_v56, %v1790_v46  ;;  %v834_v14 = vadd.f32 %v833_v59, %v1728_v61  ;;  %1015 = vst.msk [vmem:[%s1895_s4 + $0x24] sm:$0xf] %vm1005_vm1, %v1136_v49  ;;  %v931_v63 = vmax.f32 %v915_v51, 0.0 }
 0x144   :  { %v921_v43 = vadd.f32 %v1169_v53, %v863_v55  ;;  %v916_v44 = vadd.f32 %v1158_v54, %v842_v35  ;;  %v866_v0 = vadd.f32 %v865_v58, %v1750_v4  ;;  %v939_v52 = vmax.f32 %v923_v57, 0.0 }
 0x145   :  { %v929_v1 = vmax.f32 %v913_v2, 0.0  ;;  %v924_v61 = vadd.f32 %v1174_v60, %v874_v13  ;;  %v914_v46 = vadd.f32 %v1154_v62, %v834_v14  ;;  %v1133_v3 = vpack.c.bf16 %v931_v63, %v931_v63 }
 0x146   :  { %v937_v6 = vmax.f32 %v921_v43, 0.0  ;;  %v932_v7 = vmax.f32 %v916_v44, 0.0  ;;  %v922_v48 = vadd.f32 %v1170_v5, %v866_v0  ;;  %v1141_v53 = vpack.c.bf16 %v939_v52, %v939_v52 }
 0x147   :  { %v1131_v27 = vpack.c.bf16 %v929_v1, %v929_v1  ;;  %v940_v26 = vmax.f32 %v924_v61, 0.0  ;;  %v930_v54 = vmax.f32 %v914_v46, 0.0  ;;  %1012 = vst.msk [vmem:[%s1895_s4 + $0x18] sm:$0xf] %vm1005_vm1, %v1133_v3 }
 0x148   :  { %v1139_v4 = vpack.c.bf16 %v937_v6, %v937_v6  ;;  %v1134_v28 = vpack.c.bf16 %v932_v7, %v932_v7  ;;  %v938_v60 = vmax.f32 %v922_v48, 0.0  ;;  %1020 = vst.msk [vmem:[%s1895_s4 + $0x38] sm:$0xf] %vm1005_vm1, %v1141_v53 }
 0x149   :  { %1010 = vst.msk [vmem:[%s1895_s4 + $0x10] sm:$0xf] %vm1005_vm1, %v1131_v27  ;;  %v1142_v36 = vpack.c.bf16 %v940_v26, %v940_v26  ;;  %v1132_v37 = vpack.c.bf16 %v930_v54, %v930_v54 }
 0x14a   :  { %1018 = vst.msk [vmem:[%s1895_s4 + $0x30] sm:$0xf] %vm1005_vm1, %v1139_v4  ;;  %1013 = vst.msk [vmem:[%s1895_s4 + $0x1c] sm:$0xf] %vm1005_vm1, %v1134_v28  ;;  %v1140_v62 = vpack.c.bf16 %v938_v60, %v938_v60 }
 0x14b   :  { %1021 = vst.msk [vmem:[%s1895_s4 + $0x3c] sm:$0xf] %vm1005_vm1, %v1142_v36  ;;  %1011 = vst.msk [vmem:[%s1895_s4 + $0x14] sm:$0xf] %vm1005_vm1, %v1132_v37 }
 0x14c   :  { %1019 = vst.msk [vmem:[%s1895_s4 + $0x34] sm:$0xf] %vm1005_vm1, %v1140_v62 }

// kernel: apsnet_forward.12
= control target key start
LH: loop header
LB: loop body
LE: loop exit
PB: predicated region body
PF: predicated region fallthrough
CT: control target
= control target key end

     0   :  { %vm1550_vm0 = vcmask 523264   ;;  %vm2334_vm1 = vcmask 519168   ;;  %s4205_s1 = inlined_call_operand.vmem [shape: bf16[1728,64], index: 1, kind: input, shape index: {}]   ;;  %s4206_s0 = inlined_call_operand.vmem [shape: bf16[128,1728], index: 0, kind: input, shape index: {}]   ;;  %s4207_s2 = inlined_call_operand.vmem [shape: f32[1,64], index: 2, kind: input, shape index: {}]   ;;  %s4208_s3 = inlined_call_operand.vmem [shape: bf16[128,64], index: 3, kind: output, shape index: {}]  }
   0x1   :  { %v3017_v0 = vld [vmem:[%s4205_s1 + $0x40] sm:$0xff]   ;;  %v3019_v2 = vld [vmem:[%s4205_s1 + $0x48] sm:$0xff]   ;;  %v3021_v4 = vld [vmem:[%s4205_s1 + $0x50] sm:$0xff]  }
   0x2   :  { %v3018_v1 = vld [vmem:[%s4205_s1] sm:$0xff]   ;;  %3000 = vmatprep.subr.bf16.mxu1 %v3017_v0  ;;  %2616 = vmatprep.subr.bf16.mxu0 %v3017_v0  ;;  %v3020_v3 = vld [vmem:[%s4205_s1 + $0x8] sm:$0xff]   ;;  %v3022_v5 = vld [vmem:[%s4205_s1 + $0x10] sm:$0xff]  }
   0x3   :  { %3008 = vmatpush3.bf16.msra.mxu1 %v3018_v1  ;;  %2617 = vmatpush3.bf16.msra.mxu0 %v3018_v1  ;;  %v3023_v6 = vld [vmem:[%s4205_s1 + $0x58] sm:$0xff]   ;;  %v3025_v8 = vld [vmem:[%s4205_s1 + $0x60] sm:$0xff]   ;;  %v3027_v10 = vld [vmem:[%s4205_s1 + $0x68] sm:$0xff]  }
   0x4   :  { %3001 = vmatprep.subr.bf16.mxu1 %v3019_v2  ;;  %2618 = vmatprep.subr.bf16.mxu0 %v3019_v2  ;;  %v3024_v7 = vld [vmem:[%s4205_s1 + $0x18] sm:$0xff]   ;;  %v3026_v9 = vld [vmem:[%s4205_s1 + $0x20] sm:$0xff]   ;;  %v3028_v12 = vld [vmem:[%s4205_s1 + $0x28] sm:$0xff]  }
   0x5   :  { %v3035_v11 = vld [vmem:[%s4206_s0 + $0x1c4] ss:$56 sps:$4 sm:$0xff]   ;;  %v3029_v14 = vld [vmem:[%s4205_s1 + $0x70] sm:$0xff]   ;;  %v3033_v19 = vld [vmem:[%s4206_s0 + $0x1c0] ss:$56 sps:$4 sm:$0xff]  }
   0x6   :  { %v3039_v13 = vld [vmem:[%s4206_s0 + $0x4] ss:$56 sps:$4 sm:$0xff]   ;;  %1639 = vmatprep.mubr.bf16.mxu1 %v3035_v11  ;;  %v3030_v15 = vld [vmem:[%s4205_s1 + $0x30] sm:$0xff]   ;;  %v3037_v20 = vld [vmem:[%s4206_s0] ss:$56 sps:$4 sm:$0xff]  }
   0x7   :  { %3009 = vmatpush3.bf16.msra.mxu1 %v3020_v3  ;;  %2619 = vmatpush3.bf16.msra.mxu0 %v3020_v3  ;;  %v3031_v16 = vld [vmem:[%s4205_s1 + $0x78] sm:$0xff]   ;;  %v3036_v18 = vld [vmem:[%s4205_s1 + $0xc0] sm:$0xff]   ;;  %v3043_v24 = vld [vmem:[%s4205_s1 + $0xc8] sm:$0xff]  }
   0x8   :  { %3002 = vmatprep.subr.bf16.mxu1 %v3021_v4  ;;  %2620 = vmatprep.subr.bf16.mxu0 %v3021_v4  ;;  %v3032_v17 = vld [vmem:[%s4205_s1 + $0x38] sm:$0xff]   ;;  %v3041_v21 = vld [vmem:[%s4205_s1 + $0x140] sm:$0xff]   ;;  %v3045_v25 = vld [vmem:[%s4205_s1 + $0x148] sm:$0xff]  }
   0x9   :  { %1607 = vmatprep.mubr.bf16.mxu0 %v3039_v13  ;;  %v3040_v22 = vld [vmem:[%s4205_s1 + $0x80] sm:$0xff]   ;;  %v3046_v26 = vld [vmem:[%s4206_s0 + $0x234] ss:$56 sps:$4 sm:$0xff]   ;;  %v3049_v31 = vld [vmem:[%s4206_s0 + $0x230] ss:$56 sps:$4 sm:$0xff]  }
   0xa   :  { %v3042_v23 = vld [vmem:[%s4205_s1 + $0x100] sm:$0xff]   ;;  %v3044_v27 = vld [vmem:[%s4205_s1 + $0x88] sm:$0xff]   ;;  %v3050_v30 = vld [vmem:[%s4205_s1 + $0xd0] sm:$0xff]  }
   0xb   :  { %3010 = vmatpush3.bf16.msra.mxu1 %v3022_v5  ;;  %2621 = vmatpush3.bf16.msra.mxu0 %v3022_v5  ;;  %v3051_v28 = vld [vmem:[%s4206_s0 + $0x74] ss:$56 sps:$4 sm:$0xff]   ;;  %v3054_v34 = vld [vmem:[%s4206_s0 + $0x70] ss:$56 sps:$4 sm:$0xff]   ;;  %v3057_v36 = vld [vmem:[%s4205_s1 + $0xd8] sm:$0xff]  }
   0xc   :  { %3003 = vmatprep.subr.bf16.mxu1 %v3023_v6  ;;  %2622 = vmatprep.subr.bf16.mxu0 %v3023_v6  ;;  %v3048_v29 = vld [vmem:[%s4205_s1 + $0x108] sm:$0xff]   ;;  %v3055_v32 = vld [vmem:[%s4205_s1 + $0x150] sm:$0xff]   ;;  %v3059_v37 = vld [vmem:[%s4205_s1 + $0x158] sm:$0xff]  }
   0xd   :  { %v3053_v33 = vld [vmem:[%s4205_s1 + $0x90] sm:$0xff]   ;;  %v3058_v38 = vld [vmem:[%s4205_s1 + $0x98] sm:$0xff]   ;;  %v3064_v42 = vld [vmem:[%s4205_s1 + $0xe0] sm:$0xff]  }
   0xe   :  { %v3056_v35 = vld [vmem:[%s4205_s1 + $0x110] sm:$0xff]   ;;  %v3060_v39 = vld [vmem:[%s4206_s0 + $0x2a4] ss:$56 sps:$4 sm:$0xff]   ;;  %v3063_v43 = vld [vmem:[%s4206_s0 + $0x2a0] ss:$56 sps:$4 sm:$0xff]  }
   0xf   :  { %3011 = vmatpush3.bf16.msra.mxu1 %v3024_v7  ;;  %2623 = vmatpush3.bf16.msra.mxu0 %v3024_v7  ;;  %v3065_v40 = vld [vmem:[%s4206_s0 + $0xe4] ss:$56 sps:$4 sm:$0xff]   ;;  %v3068_v46 = vld [vmem:[%s4206_s0 + $0xe0] ss:$56 sps:$4 sm:$0xff]   ;;  %v3071_v48 = vld [vmem:[%s4205_s1 + $0xe8] sm:$0xff]  }
  0x10   :  { %3004 = vmatprep.subr.bf16.mxu1 %v3025_v8  ;;  %2624 = vmatprep.subr.bf16.mxu0 %v3025_v8  ;;  %v3062_v41 = vld [vmem:[%s4205_s1 + $0x118] sm:$0xff]   ;;  %v3069_v44 = vld [vmem:[%s4205_s1 + $0x160] sm:$0xff]   ;;  %v3073_v49 = vld [vmem:[%s4205_s1 + $0x168] sm:$0xff]  }
  0x11   :  { %v3067_v45 = vld [vmem:[%s4205_s1 + $0xa0] sm:$0xff]   ;;  %v3072_v50 = vld [vmem:[%s4205_s1 + $0xa8] sm:$0xff]   ;;  %v3078_v55 = vld [vmem:[%s4205_s1 + $0xf0] sm:$0xff]  }
  0x12   :  { %v3070_v47 = vld [vmem:[%s4205_s1 + $0x120] sm:$0xff]   ;;  %v3074_v51 = vld [vmem:[%s4206_s0 + $0x314] ss:$56 sps:$4 sm:$0xff]   ;;  %v3077_v54 = vld [vmem:[%s4206_s0 + $0x310] ss:$56 sps:$4 sm:$0xff]  }
  0x13   :  { %3012 = vmatpush3.bf16.msra.mxu1 %v3026_v9  ;;  %2625 = vmatpush3.bf16.msra.mxu0 %v3026_v9  ;;  %v3076_v52 = vld [vmem:[%s4205_s1 + $0x128] sm:$0xff]   ;;  %v3081_v56 = vld [vmem:[%s4205_s1 + $0xb0] sm:$0xff]   ;;  %v3085_v60 = vld [vmem:[%s4205_s1 + $0xf8] sm:$0xff]  }
  0x14   :  { %3005 = vmatprep.subr.bf16.mxu1 %v3027_v10  ;;  %2626 = vmatprep.subr.bf16.mxu0 %v3027_v10  ;;  %v3079_v53 = vld [vmem:[%s4206_s0 + $0x154] ss:$56 sps:$4 sm:$0xff]   ;;  %v3082_v58 = vld [vmem:[%s4206_s0 + $0x150] ss:$56 sps:$4 sm:$0xff]   ;;  %v3087_v61 = vld [vmem:[%s4205_s1 + $0x178] sm:$0xff]  }
  0x15   :  { %v3083_v57 = vld [vmem:[%s4205_s1 + $0x170] sm:$0xff]   ;;  %v3086_v62 = vld [vmem:[%s4205_s1 + $0xb8] sm:$0xff]   ;;  %v3090_v63 = vld [vmem:[%s4206_s0 + $0xc] ss:$56 sps:$4 sm:$0xff]  }
  0x16   :  { %v3084_v59 = vld [vmem:[%s4205_s1 + $0x130] sm:$0xff]   ;;  %v3091_v0 = vld [vmem:[%s4205_s1 + $0x138] sm:$0xff]   ;;  %v3088_v1 = vld [vmem:[%s4206_s0 + $0x8] ss:$56 sps:$4 sm:$0xff]  }
  0x17   :  { %3013 = vmatpush3.bf16.msra.mxu1 %v3028_v12  ;;  %2627 = vmatpush3.bf16.msra.mxu0 %v3028_v12  ;;  %v3092_v2 = vld [vmem:[%s4205_s1 + $0x1c0] sm:$0xff]   ;;  %v3093_v3 = vld [vmem:[%s4206_s0 + $0x10] ss:$56 sps:$4 sm:$0xff]   ;;  %v3095_v4 = vld [vmem:[%s4206_s0 + $0x14] ss:$56 sps:$4 sm:$0xff]  }
  0x18   :  { %3006 = vmatprep.subr.bf16.mxu1 %v3029_v14  ;;  %2628 = vmatprep.subr.bf16.mxu0 %v3029_v14  ;;  %v3096_v5 = vld [vmem:[%s4205_s1 + $0x180] sm:$0xff]   ;;  %v3099_v8 = vld [vmem:[%s4206_s0 + $0x7c] ss:$56 sps:$4 sm:$0xff]   ;;  %v3102_v9 = vld [vmem:[%s4205_s1 + $0x1c8] sm:$0xff]  }
  0x19   :  { %v3097_v6 = vld [vmem:[%s4205_s1 + $0x240] sm:$0xff]   ;;  %v3101_v10 = vld [vmem:[%s4206_s0 + $0x78] ss:$56 sps:$4 sm:$0xff]   ;;  %v3105_v12 = vld [vmem:[%s4205_s1 + $0x188] sm:$0xff]  }
  0x1a   :  { %v3098_v7 = vld [vmem:[%s4205_s1 + $0x200] sm:$0xff]   ;;  %v3107_v14 = vld [vmem:[%s4205_s1 + $0x248] sm:$0xff]  }
  0x1b   :  { %3014 = vmatpush3.bf16.msra.mxu1 %v3030_v15  ;;  %2629 = vmatpush3.bf16.msra.mxu0 %v3030_v15  ;;  %v3103_v11 = vld [vmem:[%s4206_s0 + $0x84] ss:$56 sps:$4 sm:$0xff]   ;;  %v3106_v13 = vld [vmem:[%s4206_s0 + $0x80] ss:$56 sps:$4 sm:$0xff]   ;;  %v3108_v15 = vld [vmem:[%s4205_s1 + $0x208] sm:$0xff]  }
  0x1c   :  { %3007 = vmatprep.subr.bf16.mxu1 %v3031_v16  ;;  %2630 = vmatprep.subr.bf16.mxu0 %v3031_v16  ;;  %v3109_v16 = vld [vmem:[%s4206_s0 + $0xec] ss:$56 sps:$4 sm:$0xff]  }
  0x1f   :  { %3015 = vmatpush3.bf16.msra.mxu1 %v3032_v17  ;;  %2631 = vmatpush3.bf16.msra.mxu0 %v3032_v17  ;;  %v3112_v17 = vld [vmem:[%s4205_s1 + $0x1d0] sm:$0xff]  }
  0x20   :  { %2680 = vmatprep.subr.bf16.mxu1 %v3036_v18  ;;  %2744 = vmatprep.subr.bf16.mxu0 %v3041_v21  ;;  %v3113_v18 = vld [vmem:[%s4206_s0 + $0xf4] ss:$56 sps:$4 sm:$0xff]   ;;  %v3116_v21 = vld [vmem:[%s4206_s0 + $0xf0] ss:$56 sps:$4 sm:$0xff]  }
  0x22   :  { %1640 = vmatmul.mubr.bf16.vlgmr.msra.gmra.mrb[0].mxu1 %v3033_v19  ;;  %1608 = vmatmul.mubr.bf16.vlgmr.msra.gmra.mrb[0].mxu0 %v3037_v20  ;;  %v3111_v19 = vld [vmem:[%s4206_s0 + $0xe8] ss:$56 sps:$4 sm:$0xff]   ;;  %v3115_v20 = vld [vmem:[%s4205_s1 + $0x190] sm:$0xff]  }
  0x23   :  { %2681 = vmatpush3.bf16.msra.mxu1 %v3040_v22  ;;  %2745 = vmatpush3.bf16.msra.mxu0 %v3042_v23  ;;  %v3117_v22 = vld [vmem:[%s4205_s1 + $0x250] sm:$0xff]  }
  0x24   :  { %2682 = vmatprep.subr.bf16.mxu1 %v3043_v24  ;;  %2746 = vmatprep.subr.bf16.mxu0 %v3045_v25  ;;  %v3118_v23 = vld [vmem:[%s4205_s1 + $0x210] sm:$0xff]   ;;  %v3122_v25 = vld [vmem:[%s4205_s1 + $0x1d8] sm:$0xff]  }
  0x25   :  { %1647 = vmatprep.mubr.bf16.mxu1 %v3046_v26  ;;  %1615 = vmatprep.mubr.bf16.mxu0 %v3051_v28  ;;  %v3119_v24 = vld [vmem:[%s4206_s0 + $0x15c] ss:$56 sps:$4 sm:$0xff]   ;;  %v3121_v28 = vld [vmem:[%s4206_s0 + $0x158] ss:$56 sps:$4 sm:$0xff]  }
  0x26   :  { %v3123_v26 = vld [vmem:[%s4206_s0 + $0x164] ss:$56 sps:$4 sm:$0xff]  }
  0x27   :  { %2683 = vmatpush3.bf16.msra.mxu1 %v3044_v27  ;;  %2747 = vmatpush3.bf16.msra.mxu0 %v3048_v29  ;;  %v3125_v27 = vld [vmem:[%s4205_s1 + $0x198] sm:$0xff]  }
  0x28   :  { %2684 = vmatprep.subr.bf16.mxu1 %v3050_v30  ;;  %2748 = vmatprep.subr.bf16.mxu0 %v3055_v32  ;;  %v3127_v29 = vld [vmem:[%s4205_s1 + $0x258] sm:$0xff]   ;;  %v3129_v32 = vld [vmem:[%s4206_s0 + $0x1cc] ss:$56 sps:$4 sm:$0xff]  }
  0x29   :  { %v3128_v30 = vld [vmem:[%s4205_s1 + $0x218] sm:$0xff]  }
  0x2a   :  { %1648 = vmatmul.mubr.bf16.gmra.mrb[4].mxu1 %v3049_v31  ;;  %1616 = vmatmul.mubr.bf16.gmra.mrb[4].mxu0 %v3054_v34  ;;  %v3126_v31 = vld [vmem:[%s4206_s0 + $0x160] ss:$56 sps:$4 sm:$0xff]   ;;  %v3133_v34 = vld [vmem:[%s4206_s0 + $0x1d4] ss:$56 sps:$4 sm:$0xff]  }
  0x2b   :  { %2685 = vmatpush3.bf16.msra.mxu1 %v3053_v33  ;;  %2749 = vmatpush3.bf16.msra.mxu0 %v3056_v35  ;;  %v3132_v33 = vld [vmem:[%s4205_s1 + $0x1e0] sm:$0xff]  }
  0x2c   :  { %2686 = vmatprep.subr.bf16.mxu1 %v3057_v36  ;;  %2750 = vmatprep.subr.bf16.mxu0 %v3059_v37  ;;  %v3135_v35 = vld [vmem:[%s4205_s1 + $0x1a0] sm:$0xff]  }
  0x2d   :  { %1655 = vmatprep.mubr.bf16.mxu1 %v3060_v39  ;;  %1623 = vmatprep.mubr.bf16.mxu0 %v3065_v40  ;;  %v3137_v36 = vld [vmem:[%s4205_s1 + $0x260] sm:$0xff]   ;;  %v3136_v39 = vld [vmem:[%s4206_s0 + $0x1d0] ss:$56 sps:$4 sm:$0xff]   ;;  %v3139_v40 = vld [vmem:[%s4206_s0 + $0x23c] ss:$56 sps:$4 sm:$0xff]  }
  0x2e   :  { %v3138_v37 = vld [vmem:[%s4205_s1 + $0x220] sm:$0xff]  }
  0x2f   :  { %2687 = vmatpush3.bf16.msra.mxu1 %v3058_v38  ;;  %2751 = vmatpush3.bf16.msra.mxu0 %v3062_v41  ;;  %v3131_v38 = vld [vmem:[%s4206_s0 + $0x1c8] ss:$56 sps:$4 sm:$0xff]  }
  0x30   :  { %2688 = vmatprep.subr.bf16.mxu1 %v3064_v42  ;;  %2752 = vmatprep.subr.bf16.mxu0 %v3069_v44  ;;  %v3142_v41 = vld [vmem:[%s4205_s1 + $0x1e8] sm:$0xff]   ;;  %v3143_v42 = vld [vmem:[%s4206_s0 + $0x244] ss:$56 sps:$4 sm:$0xff]  }
  0x31   :  { %v3147_v44 = vld [vmem:[%s4205_s1 + $0x268] sm:$0xff]  }
  0x32   :  { %1656 = vmatmul.mubr.bf16.gmra.mrb[8].mxu1 %v3063_v43  ;;  %1624 = vmatmul.mubr.bf16.gmra.mrb[8].mxu0 %v3068_v46  ;;  %v3145_v43 = vld [vmem:[%s4205_s1 + $0x1a8] sm:$0xff]   ;;  %v3141_v46 = vld [vmem:[%s4206_s0 + $0x238] ss:$56 sps:$4 sm:$0xff]  }
  0x33   :  { %2689 = vmatpush3.bf16.msra.mxu1 %v3067_v45  ;;  %2753 = vmatpush3.bf16.msra.mxu0 %v3070_v47  ;;  %v3148_v45 = vld [vmem:[%s4205_s1 + $0x228] sm:$0xff]   ;;  %v3146_v47 = vld [vmem:[%s4206_s0 + $0x240] ss:$56 sps:$4 sm:$0xff]  }
  0x34   :  { %2690 = vmatprep.subr.bf16.mxu1 %v3071_v48  ;;  %2754 = vmatprep.subr.bf16.mxu0 %v3073_v49  ;;  %v3152_v48 = vld [vmem:[%s4205_s1 + $0x1f0] sm:$0xff]   ;;  %v3149_v49 = vld [vmem:[%s4206_s0 + $0x2ac] ss:$56 sps:$4 sm:$0xff]  }
  0x35   :  { %1663 = vmatprep.mubr.bf16.mxu1 %v3074_v51  ;;  %1631 = vmatprep.mubr.bf16.mxu0 %v3079_v53  ;;  %v3153_v51 = vld [vmem:[%s4206_s0 + $0x2b4] ss:$56 sps:$4 sm:$0xff]  }
  0x36   :  { %v3158_v53 = vld [vmem:[%s4205_s1 + $0x230] sm:$0xff]  }
  0x37   :  { %2691 = vmatpush3.bf16.msra.mxu1 %v3072_v50  ;;  %2755 = vmatpush3.bf16.msra.mxu0 %v3076_v52  ;;  %v3155_v50 = vld [vmem:[%s4205_s1 + $0x1b0] sm:$0xff]  }
  0x38   :  { %2692 = vmatprep.subr.bf16.mxu1 %v3078_v55  ;;  %2756 = vmatprep.subr.bf16.mxu0 %v3083_v57  ;;  %v3157_v52 = vld [vmem:[%s4205_s1 + $0x270] sm:$0xff]   ;;  %v3151_v55 = vld [vmem:[%s4206_s0 + $0x2a8] ss:$56 sps:$4 sm:$0xff]  }
  0x39   :  { %v3159_v57 = vld [vmem:[%s4206_s0 + $0x31c] ss:$56 sps:$4 sm:$0xff]  }
  0x3a   :  { %1664 = vmatmul.mubr.bf16.gmra.mrb[12].mxu1 %v3077_v54  ;;  %1632 = vmatmul.mubr.bf16.gmra.mrb[12].mxu0 %v3082_v58  ;;  %v3162_v54 = vld [vmem:[%s4205_s1 + $0x1f8] sm:$0xff]  }
  0x3b   :  { %2693 = vmatpush3.bf16.msra.mxu1 %v3081_v56  ;;  %2757 = vmatpush3.bf16.msra.mxu0 %v3084_v59  ;;  %v3156_v56 = vld [vmem:[%s4206_s0 + $0x2b0] ss:$56 sps:$4 sm:$0xff]   ;;  %v3163_v58 = vld [vmem:[%s4206_s0 + $0x324] ss:$56 sps:$4 sm:$0xff]  }
  0x3c   :  { %2694 = vmatprep.subr.bf16.mxu1 %v3085_v60  ;;  %2758 = vmatprep.subr.bf16.mxu0 %v3087_v61  ;;  %v3165_v59 = vld [vmem:[%s4205_s1 + $0x1b8] sm:$0xff]  }
  0x3d   :  { %1704 = vmatprep.mubr.bf16.mxu1 %v3090_v63  ;;  %1801 = vmatprep.mubr.bf16.mxu0 %v3095_v4  ;;  %v3167_v60 = vld [vmem:[%s4205_s1 + $0x278] sm:$0xff]   ;;  %v3293_v63 = vmov 0  }
  0x3e   :  { %v3168_v61 = vld [vmem:[%s4205_s1 + $0x238] sm:$0xff]  }
  0x3f   :  { %2695 = vmatpush3.bf16.msra.mxu1 %v3086_v62  ;;  %2759 = vmatpush3.bf16.msra.mxu0 %v3091_v0  ;;  %v3172_v62 = vld [vmem:[%s4205_s1 + $0x2c0] sm:$0xff]   ;;  %v3161_v0 = vld [vmem:[%s4206_s0 + $0x318] ss:$56 sps:$4 sm:$0xff]  }
  0x40   :  { %2808 = vmatprep.subr.bf16.mxu1 %v3092_v2  ;;  %2872 = vmatprep.subr.bf16.mxu0 %v3097_v6  ;;  %v3171_v2 = vld [vmem:[%s4206_s0 + $0x1c] ss:$56 sps:$4 sm:$0xff]   ;;  %v3169_v4 = vld [vmem:[%s4206_s0 + $0x18] ss:$56 sps:$4 sm:$0xff]   ;;  %v3176_v6 = vld [vmem:[%s4205_s1 + $0x280] sm:$0xff]  }
  0x42   :  { %1705 = vmatmul.mubr.bf16.vlgmr.msra.gmra.mrb[16].mxu1 %v3088_v1  ;;  %1802 = vmatmul.mubr.bf16.vlgmr.msra.gmra.mrb[16].mxu0 %v3093_v3  ;;  %v3166_v1 = vld [vmem:[%s4206_s0 + $0x320] ss:$56 sps:$4 sm:$0xff]   ;;  %v3175_v3 = vld [vmem:[%s4206_s0 + $0x24] ss:$56 sps:$4 sm:$0xff]  }
  0x43   :  { %2809 = vmatpush3.bf16.msra.mxu1 %v3096_v5  ;;  %2873 = vmatpush3.bf16.msra.mxu0 %v3098_v7  ;;  %v3173_v5 = vld [vmem:[%s4206_s0 + $0x20] ss:$56 sps:$4 sm:$0xff]  }
  0x44   :  { %1712 = vmatprep.mubr.bf16.mxu1 %v3099_v8  ;;  %2810 = vmatprep.subr.bf16.mxu1 %v3102_v9  ;;  %v3177_v7 = vld [vmem:[%s4205_s1 + $0x300] sm:$0xff]   ;;  %v3181_v9 = vld [vmem:[%s4205_s1 + $0x2c8] sm:$0xff]  }
  0x45   :  { %1809 = vmatprep.mubr.bf16.mxu0 %v3103_v11  ;;  %2874 = vmatprep.subr.bf16.mxu0 %v3107_v14  ;;  %v3178_v8 = vld [vmem:[%s4206_s0 + $0x8c] ss:$56 sps:$4 sm:$0xff]   ;;  %v3180_v14 = vld [vmem:[%s4206_s0 + $0x88] ss:$56 sps:$4 sm:$0xff]  }
  0x46   :  { %v3184_v11 = vld [vmem:[%s4205_s1 + $0x288] sm:$0xff]  }
  0x47   :  { %2811 = vmatpush3.bf16.msra.mxu1 %v3105_v12  ;;  %2875 = vmatpush3.bf16.msra.mxu0 %v3108_v15  ;;  %v3186_v12 = vld [vmem:[%s4205_s1 + $0x308] sm:$0xff]  }
  0x48   :  { %2812 = vmatprep.subr.bf16.mxu1 %v3112_v17  ;;  %2876 = vmatprep.subr.bf16.mxu0 %v3117_v22  ;;  %v3185_v15 = vld [vmem:[%s4206_s0 + $0x90] ss:$56 sps:$4 sm:$0xff]   ;;  %v3191_v17 = vld [vmem:[%s4206_s0 + $0x104] ss:$56 sps:$4 sm:$0xff]  }
  0x49   :  { %v3189_v22 = vld [vmem:[%s4206_s0 + $0xf8] ss:$56 sps:$4 sm:$0xff]  }
  0x4a   :  { %1713 = vmatmul.mubr.bf16.gmra.mrb[20].mxu1 %v3101_v10  ;;  %1810 = vmatmul.mubr.bf16.gmra.mrb[20].mxu0 %v3106_v13  ;;  %v3182_v10 = vld [vmem:[%s4206_s0 + $0x94] ss:$56 sps:$4 sm:$0xff]  }
  0x4b   :  { %1720 = vmatprep.mubr.bf16.mxu1 %v3109_v16  ;;  %1817 = vmatprep.mubr.bf16.mxu0 %v3113_v18  ;;  %v3190_v13 = vld [vmem:[%s4205_s1 + $0x2d0] sm:$0xff]  }
  0x4c   :  { %2813 = vmatpush3.bf16.msra.mxu1 %v3115_v20  ;;  %2877 = vmatpush3.bf16.msra.mxu0 %v3118_v23  ;;  %v3187_v16 = vld [vmem:[%s4206_s0 + $0xfc] ss:$56 sps:$4 sm:$0xff]   ;;  %v3195_v23 = vld [vmem:[%s4206_s0 + $0x100] ss:$56 sps:$4 sm:$0xff]  }
  0x4d   :  { %2814 = vmatprep.subr.bf16.mxu1 %v3122_v25  ;;  %2878 = vmatprep.subr.bf16.mxu0 %v3127_v29  ;;  %v3193_v18 = vld [vmem:[%s4205_s1 + $0x290] sm:$0xff]   ;;  %v3200_v20 = vld [vmem:[%s4205_s1 + $0x2d8] sm:$0xff]   ;;  %v3209_v25 = vld [vmem:[%s4205_s1 + $0x2e0] sm:$0xff]  }
  0x4e   :  { %v3212_v29 = vld [vmem:[%s4205_s1 + $0x2a0] sm:$0xff]  }
  0x50   :  { %2815 = vmatpush3.bf16.msra.mxu1 %v3125_v27  ;;  %2879 = vmatpush3.bf16.msra.mxu0 %v3128_v30  ;;  %v3201_v27 = vld [vmem:[%s4206_s0 + $0x174] ss:$56 sps:$4 sm:$0xff]  }
  0x51   :  { %2816 = vmatprep.subr.bf16.mxu1 %v3132_v33  ;;  %2880 = vmatprep.subr.bf16.mxu0 %v3137_v36  ;;  %v3219_v30 = vld [vmem:[%s4205_s1 + $0x2e8] sm:$0xff]   ;;  %v3210_v36 = vld [vmem:[%s4206_s0 + $0x1e4] ss:$56 sps:$4 sm:$0xff]  }
  0x52   :  { %1721 = vmatmul.mubr.bf16.gmra.mrb[24].mxu1 %v3111_v19  ;;  %1818 = vmatmul.mubr.bf16.gmra.mrb[24].mxu0 %v3116_v21  ;;  %v3194_v19 = vld [vmem:[%s4205_s1 + $0x310] sm:$0xff]   ;;  %v3196_v21 = vld [vmem:[%s4205_s1 + $0x318] sm:$0xff]  }
  0x53   :  { %1728 = vmatprep.mubr.bf16.mxu1 %v3119_v24  ;;  %1825 = vmatprep.mubr.bf16.mxu0 %v3123_v26  ;;  %v3203_v24 = vld [vmem:[%s4205_s1 + $0x298] sm:$0xff]   ;;  %v3197_v26 = vld [vmem:[%s4206_s0 + $0x16c] ss:$56 sps:$4 sm:$0xff]   ;;  %v3204_v33 = vld [vmem:[%s4206_s0 + $0x170] ss:$56 sps:$4 sm:$0xff]  }
  0x54   :  { %2817 = vmatpush3.bf16.msra.mxu1 %v3135_v35  ;;  %2881 = vmatpush3.bf16.msra.mxu0 %v3138_v37  ;;  %v3206_v35 = vld [vmem:[%s4206_s0 + $0x1dc] ss:$56 sps:$4 sm:$0xff]  }
  0x55   :  { %2818 = vmatprep.subr.bf16.mxu1 %v3142_v41  ;;  %2882 = vmatprep.subr.bf16.mxu0 %v3147_v44  ;;  %v3228_v37 = vld [vmem:[%s4205_s1 + $0x2f0] sm:$0xff]   ;;  %v3216_v44 = vld [vmem:[%s4206_s0 + $0x24c] ss:$56 sps:$4 sm:$0xff]  }
  0x56   :  { %v3208_v41 = vld [vmem:[%s4206_s0 + $0x1d8] ss:$56 sps:$4 sm:$0xff]  }
  0x58   :  { %2819 = vmatpush3.bf16.msra.mxu1 %v3145_v43  ;;  %2883 = vmatpush3.bf16.msra.mxu0 %v3148_v45  ;;  %v3238_v43 = vld [vmem:[%s4205_s1 + $0x2f8] sm:$0xff]  }
  0x59   :  { %2820 = vmatprep.subr.bf16.mxu1 %v3152_v48  ;;  %2884 = vmatprep.subr.bf16.mxu0 %v3157_v52  ;;  %v3241_v45 = vld [vmem:[%s4205_s1 + $0x2b8] sm:$0xff]   ;;  %v3234_v48 = vld [vmem:[%s4205_s1 + $0x348] sm:$0xff]  }
  0x5a   :  { %1729 = vmatmul.mubr.bf16.gmra.mrb[28].mxu1 %v3121_v28  ;;  %1826 = vmatmul.mubr.bf16.gmra.mrb[28].mxu0 %v3126_v31  ;;  %v3205_v28 = vld [vmem:[%s4205_s1 + $0x320] sm:$0xff]   ;;  %v3213_v31 = vld [vmem:[%s4205_s1 + $0x328] sm:$0xff]  }
  0x5b   :  { %1736 = vmatprep.mubr.bf16.mxu1 %v3129_v32  ;;  %1833 = vmatprep.mubr.bf16.mxu0 %v3133_v34  ;;  %v3199_v32 = vld [vmem:[%s4206_s0 + $0x168] ss:$56 sps:$4 sm:$0xff]   ;;  %v3229_v52 = vld [vmem:[%s4206_s0 + $0x2c4] ss:$56 sps:$4 sm:$0xff]  }
  0x5c   :  { %2821 = vmatpush3.bf16.msra.mxu1 %v3155_v50  ;;  %2885 = vmatpush3.bf16.msra.mxu0 %v3158_v53  ;;  %v3222_v34 = vld [vmem:[%s4205_s1 + $0x2a8] sm:$0xff]   ;;  %v3243_v53 = vld [vmem:[%s4205_s1 + $0x350] sm:$0xff]  }
  0x5d   :  { %2822 = vmatprep.subr.bf16.mxu1 %v3162_v54  ;;  %2886 = vmatprep.subr.bf16.mxu0 %v3167_v60  ;;  %v3223_v50 = vld [vmem:[%s4206_s0 + $0x250] ss:$56 sps:$4 sm:$0xff]   ;;  %v3247_v54 = vld [vmem:[%s4205_s1 + $0x358] sm:$0xff]  }
  0x5e   :  { %v3242_v60 = vld [vmem:[%s4206_s0 + $0x330] ss:$56 sps:$4 sm:$0xff]  }
  0x60   :  { %2823 = vmatpush3.bf16.msra.mxu1 %v3165_v59  ;;  %2887 = vmatpush3.bf16.msra.mxu0 %v3168_v61  ;;  %v3237_v59 = vld [vmem:[%s4206_s0 + $0x328] ss:$56 sps:$4 sm:$0xff]   ;;  %v3246_v61 = vld [vmem:[%s4206_s0 + $0x2c] ss:$56 sps:$4 sm:$0xff]  }
  0x61   :  { %2936 = vmatprep.subr.bf16.mxu1 %v3172_v62  ;;  %2157 = vmatprep.subr.bf16.mxu0 %v3293_v63  ;;  %v3250_v62 = vld [vmem:[%s4206_s0 + $0x34] ss:$56 sps:$4 sm:$0xff]  }
  0x62   :  { %1737 = vmatmul.mubr.bf16.gmra.mrb[32].mxu1 %v3131_v38  ;;  %1834 = vmatmul.mubr.bf16.gmra.mrb[32].mxu0 %v3136_v39  ;;  %v3215_v38 = vld [vmem:[%s4205_s1 + $0x330] sm:$0xff]  }
  0x63   :  { %1744 = vmatprep.mubr.bf16.mxu1 %v3139_v40  ;;  %1841 = vmatprep.mubr.bf16.mxu0 %v3143_v42  ;;  %v3231_v39 = vld [vmem:[%s4205_s1 + $0x2b0] sm:$0xff]   ;;  %v3224_v40 = vld [vmem:[%s4205_s1 + $0x338] sm:$0xff]  }
  0x64   :  { %v3214_v42 = vld [vmem:[%s4206_s0 + $0x1e0] ss:$56 sps:$4 sm:$0xff]  }
  0x6a   :  { %1745 = vmatmul.mubr.bf16.gmra.mrb[36].mxu1 %v3141_v46  ;;  %1842 = vmatmul.mubr.bf16.gmra.mrb[36].mxu0 %v3146_v47  ;;  %v3220_v46 = vld [vmem:[%s4206_s0 + $0x254] ss:$56 sps:$4 sm:$0xff]   ;;  %v3232_v47 = vld [vmem:[%s4205_s1 + $0x340] sm:$0xff]  }
  0x6b   :  { %1752 = vmatprep.mubr.bf16.mxu1 %v3149_v49  ;;  %1849 = vmatprep.mubr.bf16.mxu0 %v3153_v51  ;;  %v3218_v49 = vld [vmem:[%s4206_s0 + $0x248] ss:$56 sps:$4 sm:$0xff]   ;;  %v3225_v51 = vld [vmem:[%s4206_s0 + $0x2bc] ss:$56 sps:$4 sm:$0xff]  }
  0x72   :  { %1753 = vmatmul.mubr.bf16.gmra.mrb[40].mxu1 %v3151_v55  ;;  %1850 = vmatmul.mubr.bf16.gmra.mrb[40].mxu0 %v3156_v56  ;;  %v3227_v55 = vld [vmem:[%s4206_s0 + $0x2b8] ss:$56 sps:$4 sm:$0xff]  }
  0x73   :  { %1760 = vmatprep.mubr.bf16.mxu1 %v3159_v57  ;;  %1857 = vmatprep.mubr.bf16.mxu0 %v3163_v58  ;;  %v3233_v56 = vld [vmem:[%s4206_s0 + $0x2c0] ss:$56 sps:$4 sm:$0xff]   ;;  %v3235_v57 = vld [vmem:[%s4206_s0 + $0x32c] ss:$56 sps:$4 sm:$0xff]  }
  0x74   :  { %v3239_v58 = vld [vmem:[%s4206_s0 + $0x334] ss:$56 sps:$4 sm:$0xff]  }
  0x7a   :  { %1761 = vmatmul.mubr.bf16.gmra.mrb[44].mxu1 %v3161_v0  ;;  %1858 = vmatmul.mubr.bf16.gmra.mrb[44].mxu0 %v3166_v1  ;;  %v3248_v0 = vld [vmem:[%s4206_s0 + $0x30] ss:$56 sps:$4 sm:$0xff]   ;;  %v3251_v1 = vld [vmem:[%s4206_s0 + $0x9c] ss:$56 sps:$4 sm:$0xff]  }
  0x7b   :  { %1898 = vmatprep.mubr.bf16.mxu1 %v3171_v2  ;;  %1995 = vmatprep.mubr.bf16.mxu0 %v3175_v3  ;;  %v3254_v2 = vld [vmem:[%s4206_s0 + $0xa4] ss:$56 sps:$4 sm:$0xff]   ;;  %v3253_v3 = vld [vmem:[%s4206_s0 + $0x98] ss:$56 sps:$4 sm:$0xff]  }
  0x82   :  { %1899 = vmatmul.mubr.bf16.vlgmr.msra.gmra.mrb[48].mxu1 %v3169_v4  ;;  %1996 = vmatmul.mubr.bf16.vlgmr.msra.gmra.mrb[48].mxu0 %v3173_v5  ;;  %v3256_v4 = vld [vmem:[%s4206_s0 + $0xa0] ss:$56 sps:$4 sm:$0xff]   ;;  %v3257_v5 = vld [vmem:[%s4206_s0 + $0x10c] ss:$56 sps:$4 sm:$0xff]  }
  0x83   :  { %2937 = vmatpush3.bf16.msra.mxu1 %v3176_v6  ;;  %2158 = vmatpush1.bf16.msra.mxu0 %v3177_v7  ;;  %v3260_v6 = vld [vmem:[%s4206_s0 + $0x114] ss:$56 sps:$4 sm:$0xff]   ;;  %v3259_v7 = vld [vmem:[%s4206_s0 + $0x108] ss:$56 sps:$4 sm:$0xff]  }
  0x84   :  { %1906 = vmatprep.mubr.bf16.mxu1 %v3178_v8  ;;  %2938 = vmatprep.subr.bf16.mxu1 %v3181_v9  ;;  %v3262_v8 = vld [vmem:[%s4206_s0 + $0x110] ss:$56 sps:$4 sm:$0xff]   ;;  %v3263_v9 = vld [vmem:[%s4206_s0 + $0x17c] ss:$56 sps:$4 sm:$0xff]  }
  0x85   :  { %2003 = vmatprep.mubr.bf16.mxu0 %v3182_v10  ;;  %2159 = vmatprep.subr.bf16.mxu0 %v3293_v63  ;;  %v3266_v10 = vld [vmem:[%s4206_s0 + $0x184] ss:$56 sps:$4 sm:$0xff]  }
  0x87   :  { %2939 = vmatpush3.bf16.msra.mxu1 %v3184_v11  ;;  %2160 = vmatpush1.bf16.msra.mxu0 %v3186_v12  ;;  %v3265_v11 = vld [vmem:[%s4206_s0 + $0x178] ss:$56 sps:$4 sm:$0xff]  }
  0x88   :  { %2940 = vmatprep.subr.bf16.mxu1 %v3190_v13  ;;  %2161 = vmatprep.subr.bf16.mxu0 %v3293_v63  ;;  %v3268_v12 = vld [vmem:[%s4206_s0 + $0x180] ss:$56 sps:$4 sm:$0xff]   ;;  %v3269_v13 = vld [vmem:[%s4206_s0 + $0x1ec] ss:$56 sps:$4 sm:$0xff]  }
  0x8a   :  { %1907 = vmatmul.mubr.bf16.gmra.mrb[52].mxu1 %v3180_v14  ;;  %2004 = vmatmul.mubr.bf16.gmra.mrb[52].mxu0 %v3185_v15  ;;  %v3272_v14 = vld [vmem:[%s4206_s0 + $0x1f4] ss:$56 sps:$4 sm:$0xff]   ;;  %v3271_v15 = vld [vmem:[%s4206_s0 + $0x1e8] ss:$56 sps:$4 sm:$0xff]  }
  0x8b   :  { %1914 = vmatprep.mubr.bf16.mxu1 %v3187_v16  ;;  %2011 = vmatprep.mubr.bf16.mxu0 %v3191_v17  ;;  %v3274_v16 = vld [vmem:[%s4206_s0 + $0x1f0] ss:$56 sps:$4 sm:$0xff]   ;;  %v3275_v17 = vld [vmem:[%s4206_s0 + $0x25c] ss:$56 sps:$4 sm:$0xff]  }
  0x8c   :  { %2941 = vmatpush3.bf16.msra.mxu1 %v3193_v18  ;;  %2162 = vmatpush1.bf16.msra.mxu0 %v3194_v19  ;;  %v3278_v18 = vld [vmem:[%s4206_s0 + $0x264] ss:$56 sps:$4 sm:$0xff]   ;;  %v3277_v19 = vld [vmem:[%s4206_s0 + $0x258] ss:$56 sps:$4 sm:$0xff]  }
  0x8d   :  { %2163 = vmatprep.subr.bf16.mxu0 %v3293_v63  ;;  %2942 = vmatprep.subr.bf16.mxu1 %v3200_v20  ;;  %v3280_v20 = vld [vmem:[%s4206_s0 + $0x260] ss:$56 sps:$4 sm:$0xff]  }
  0x90   :  { %2164 = vmatpush1.bf16.msra.mxu0 %v3196_v21  ;;  %2943 = vmatpush3.bf16.msra.mxu1 %v3203_v24  ;;  %v3281_v21 = vld [vmem:[%s4206_s0 + $0x2cc] ss:$56 sps:$4 sm:$0xff]   ;;  %v3286_v24 = vld [vmem:[%s4206_s0 + $0x2d0] ss:$56 sps:$4 sm:$0xff]  }
  0x91   :  { %2165 = vmatprep.subr.bf16.mxu0 %v3293_v63  ;;  %2944 = vmatprep.subr.bf16.mxu1 %v3209_v25  ;;  %v3287_v25 = vld [vmem:[%s4206_s0 + $0x33c] ss:$56 sps:$4 sm:$0xff]  }
  0x92   :  { %1915 = vmatmul.mubr.bf16.gmra.mrb[56].mxu1 %v3189_v22  ;;  %2012 = vmatmul.mubr.bf16.gmra.mrb[56].mxu0 %v3195_v23  ;;  %v3284_v22 = vld [vmem:[%s4206_s0 + $0x2d4] ss:$56 sps:$4 sm:$0xff]   ;;  %v3283_v23 = vld [vmem:[%s4206_s0 + $0x2c8] ss:$56 sps:$4 sm:$0xff]  }
  0x93   :  { %1922 = vmatprep.mubr.bf16.mxu1 %v3197_v26  ;;  %2019 = vmatprep.mubr.bf16.mxu0 %v3201_v27  ;;  %v3290_v26 = vld [vmem:[%s4206_s0 + $0x344] ss:$56 sps:$4 sm:$0xff]  }
  0x94   :  { %2166 = vmatpush1.bf16.msra.mxu0 %v3205_v28  ;;  %2945 = vmatpush3.bf16.msra.mxu1 %v3212_v29 }
  0x95   :  { %2167 = vmatprep.subr.bf16.mxu0 %v3293_v63  ;;  %2946 = vmatprep.subr.bf16.mxu1 %v3219_v30 }
  0x98   :  { %2168 = vmatpush1.bf16.msra.mxu0 %v3213_v31  ;;  %2947 = vmatpush3.bf16.msra.mxu1 %v3222_v34  ;;  %v3289_v31 = vld [vmem:[%s4206_s0 + $0x338] ss:$56 sps:$4 sm:$0xff]  }
  0x99   :  { %2169 = vmatprep.subr.bf16.mxu0 %v3293_v63  ;;  %2948 = vmatprep.subr.bf16.mxu1 %v3228_v37 }
  0x9a   :  { %1923 = vmatmul.mubr.bf16.gmra.mrb[60].mxu1 %v3199_v32  ;;  %2020 = vmatmul.mubr.bf16.gmra.mrb[60].mxu0 %v3204_v33  ;;  %v3292_v32 = vld [vmem:[%s4206_s0 + $0x340] ss:$56 sps:$4 sm:$0xff]  }
  0x9b   :  { %1930 = vmatprep.mubr.bf16.mxu1 %v3206_v35  ;;  %2027 = vmatprep.mubr.bf16.mxu0 %v3210_v36 }
  0x9c   :  { %2170 = vmatpush1.bf16.msra.mxu0 %v3215_v38  ;;  %2949 = vmatpush3.bf16.msra.mxu1 %v3231_v39 }
  0x9d   :  { %2171 = vmatprep.subr.bf16.mxu0 %v3293_v63  ;;  %2950 = vmatprep.subr.bf16.mxu1 %v3238_v43 }
  0xa0   :  { %2172 = vmatpush1.bf16.msra.mxu0 %v3224_v40  ;;  %2951 = vmatpush3.bf16.msra.mxu1 %v3241_v45 }
  0xa1   :  { %2173 = vmatprep.subr.bf16.mxu0 %v3293_v63 }
  0xa2   :  { %1931 = vmatmul.mubr.bf16.gmra.mrb[64].mxu1 %v3208_v41  ;;  %2028 = vmatmul.mubr.bf16.gmra.mrb[64].mxu0 %v3214_v42 }
  0xa3   :  { %1938 = vmatprep.mubr.bf16.mxu1 %v3216_v44  ;;  %2035 = vmatprep.mubr.bf16.mxu0 %v3220_v46 }
  0xa4   :  { %2174 = vmatpush1.bf16.msra.mxu0 %v3232_v47 }
  0xa5   :  { %2175 = vmatprep.subr.bf16.mxu0 %v3293_v63 }
  0xa8   :  { %2176 = vmatpush1.bf16.msra.mxu0 %v3234_v48 }
  0xa9   :  { %2177 = vmatprep.subr.bf16.mxu0 %v3293_v63 }
  0xaa   :  { %1939 = vmatmul.mubr.bf16.gmra.mrb[68].mxu1 %v3218_v49  ;;  %2036 = vmatmul.mubr.bf16.gmra.mrb[68].mxu0 %v3223_v50 }
  0xab   :  { %1946 = vmatprep.mubr.bf16.mxu1 %v3225_v51  ;;  %2043 = vmatprep.mubr.bf16.mxu0 %v3229_v52 }
  0xac   :  { %2178 = vmatpush1.bf16.msra.mxu0 %v3243_v53 }
  0xad   :  { %2179 = vmatprep.subr.bf16.mxu0 %v3293_v63  ;;  %v3244_v63 = vld [vmem:[%s4206_s0 + $0x28] ss:$56 sps:$4 sm:$0xff]  }
  0xb0   :  { %2180 = vmatpush1.bf16.msra.mxu0 %v3247_v54 }
  0xb2   :  { %1947 = vmatmul.mubr.bf16.gmra.mrb[72].mxu1 %v3227_v55  ;;  %2044 = vmatmul.mubr.bf16.gmra.mrb[72].mxu0 %v3233_v56 }
  0xb3   :  { %1954 = vmatprep.mubr.bf16.mxu1 %v3235_v57  ;;  %2051 = vmatprep.mubr.bf16.mxu0 %v3239_v58 }
  0xba   :  { %1955 = vmatmul.mubr.bf16.gmra.mrb[76].mxu1 %v3237_v59  ;;  %2052 = vmatmul.mubr.bf16.gmra.mrb[76].mxu0 %v3242_v60 }
  0xbb   :  { %2092 = vmatprep.mubr.bf16.mxu1 %v3246_v61  ;;  %2576 = vmatprep.mubr.msk.bf16.mxu0 %vm1550_vm0, %v3250_v62 }
  0xc2   :  { %2093 = vmatmul.mubr.bf16.vlgmr.msra.gmra.mrb[80].mxu1 %v3244_v63  ;;  %2190 = vmatmul.mubr.bf16.vlgmr.msra.gmra.mrb[80].mxu0 %v3248_v0 }
  0xc3   :  { %2100 = vmatprep.mubr.bf16.mxu1 %v3251_v1  ;;  %2577 = vmatprep.mubr.msk.bf16.mxu0 %vm1550_vm0, %v3254_v2 }
  0xca   :  { %2101 = vmatmul.mubr.bf16.gmra.mrb[84].mxu1 %v3253_v3  ;;  %2198 = vmatmul.mubr.bf16.gmra.mrb[84].mxu0 %v3256_v4 }
  0xcb   :  { %2108 = vmatprep.mubr.bf16.mxu1 %v3257_v5  ;;  %2578 = vmatprep.mubr.msk.bf16.mxu0 %vm1550_vm0, %v3260_v6 }
  0xd2   :  { %2109 = vmatmul.mubr.bf16.gmra.mrb[88].mxu1 %v3259_v7  ;;  %2206 = vmatmul.mubr.bf16.gmra.mrb[88].mxu0 %v3262_v8 }
  0xd3   :  { %2116 = vmatprep.mubr.bf16.mxu1 %v3263_v9  ;;  %2579 = vmatprep.mubr.msk.bf16.mxu0 %vm1550_vm0, %v3266_v10 }
  0xda   :  { %2117 = vmatmul.mubr.bf16.gmra.mrb[92].mxu1 %v3265_v11  ;;  %2214 = vmatmul.mubr.bf16.gmra.mrb[92].mxu0 %v3268_v12 }
  0xdb   :  { %2124 = vmatprep.mubr.bf16.mxu1 %v3269_v13  ;;  %2580 = vmatprep.mubr.msk.bf16.mxu0 %vm1550_vm0, %v3272_v14 }
  0xe2   :  { %2125 = vmatmul.mubr.bf16.gmra.mrb[96].mxu1 %v3271_v15  ;;  %2222 = vmatmul.mubr.bf16.gmra.mrb[96].mxu0 %v3274_v16  ;;  %v4017_v15 = vld [vmem:[%s4207_s2] ss:$0 sm:$0xff] }
  0xe3   :  { %2132 = vmatprep.mubr.bf16.mxu1 %v3275_v17  ;;  %2581 = vmatprep.mubr.msk.bf16.mxu0 %vm1550_vm0, %v3278_v18 }
  0xea   :  { %2133 = vmatmul.mubr.bf16.gmra.mrb[100].mxu1 %v3277_v19  ;;  %2230 = vmatmul.mubr.bf16.gmra.mrb[100].mxu0 %v3280_v20 }
  0xeb   :  { %2140 = vmatprep.mubr.bf16.mxu1 %v3281_v21  ;;  %2582 = vmatprep.mubr.msk.bf16.mxu0 %vm1550_vm0, %v3284_v22 }
  0xf2   :  { %2141 = vmatmul.mubr.bf16.gmra.mrb[104].mxu1 %v3283_v23  ;;  %2238 = vmatmul.mubr.bf16.gmra.mrb[104].mxu0 %v3286_v24 }
  0xf3   :  { %2148 = vmatprep.mubr.bf16.mxu1 %v3287_v25  ;;  %2583 = vmatprep.mubr.msk.bf16.mxu0 %vm1550_vm0, %v3290_v26 }
  0xf5   :  { %v2656_v27 = vpop.f32.mrb[0].mxu1  ;;  %v2632_v28 = vpop.f32.mrb[0].mxu0 }
  0xf6   :  { %v2657_v29 = vpop.f32.mrb[1].mxu1  ;;  %v2633_v30 = vpop.f32.mrb[1].mxu0 }
  0xf7   :  { %v3994_v33 = vadd.f32 %v2657_v29, %v2656_v27  ;;  %v2659_v34 = vpop.f32.mrb[2].mxu1  ;;  %v2634_v35 = vadd.f32 %v2633_v30, %v2632_v28  ;;  %v2635_v36 = vpop.f32.mrb[2].mxu0 }
  0xf8   :  { %v2660_v37 = vpop.f32.mrb[3].mxu1  ;;  %v2636_v38 = vpop.f32.mrb[3].mxu0 }
  0xf9   :  { %v3996_v39 = vadd.f32 %v2660_v37, %v2659_v34  ;;  %v2637_v40 = vadd.f32 %v2636_v38, %v2635_v36  ;;  %v1610_v18 = vadd.f32 %v2634_v35, %v4017_v15 }
  0xfa   :  { %2149 = vmatmul.mubr.bf16.gmra.mrb[108].mxu1 %v3289_v31  ;;  %2246 = vmatmul.mubr.bf16.gmra.mrb[108].mxu0 %v3292_v32 }
  0xfb   :  { %v1613_v25 = vadd.f32 %v2637_v40, %v4017_v15 }
  0xfd   :  { %v2662_v41 = vpop.f32.mrb[4].mxu1  ;;  %v2638_v42 = vpop.f32.mrb[4].mxu0 }
  0xfe   :  { %v2663_v43 = vpop.f32.mrb[5].mxu1  ;;  %v2639_v44 = vpop.f32.mrb[5].mxu0 }
  0xff   :  { %v3998_v45 = vadd.f32 %v2663_v43, %v2662_v41  ;;  %v2665_v46 = vpop.f32.mrb[6].mxu1  ;;  %v2640_v47 = vadd.f32 %v2639_v44, %v2638_v42  ;;  %v2641_v48 = vpop.f32.mrb[6].mxu0 }
 0x100   :  { %v2666_v49 = vpop.f32.mrb[7].mxu1  ;;  %v2642_v50 = vpop.f32.mrb[7].mxu0 }
 0x101   :  { %v4000_v51 = vadd.f32 %v2666_v49, %v2665_v46  ;;  %v2643_v52 = vadd.f32 %v2642_v50, %v2641_v48  ;;  %v1618_v37 = vadd.f32 %v2640_v47, %v4017_v15 }
 0x103   :  { %v1621_v46 = vadd.f32 %v2643_v52, %v4017_v15 }
 0x105   :  { %v2668_v53 = vpop.f32.mrb[8].mxu1  ;;  %v2644_v54 = vpop.f32.mrb[8].mxu0 }
 0x106   :  { %v2669_v55 = vpop.f32.mrb[9].mxu1  ;;  %v2645_v56 = vpop.f32.mrb[9].mxu0 }
 0x107   :  { %v4002_v57 = vadd.f32 %v2669_v55, %v2668_v53  ;;  %v2671_v58 = vpop.f32.mrb[10].mxu1  ;;  %v2646_v59 = vadd.f32 %v2645_v56, %v2644_v54  ;;  %v2647_v60 = vpop.f32.mrb[10].mxu0 }
 0x108   :  { %v2672_v61 = vpop.f32.mrb[11].mxu1  ;;  %v2648_v62 = vpop.f32.mrb[11].mxu0 }
 0x109   :  { %v4004_v63 = vadd.f32 %v2672_v61, %v2671_v58  ;;  %v2649_v0 = vadd.f32 %v2648_v62, %v2647_v60  ;;  %v1626_v61 = vadd.f32 %v2646_v59, %v4017_v15 }
 0x10d   :  { %v2674_v1 = vpop.f32.mrb[12].mxu1  ;;  %v2650_v2 = vpop.f32.mrb[12].mxu0 }
 0x10e   :  { %v2675_v3 = vpop.f32.mrb[13].mxu1  ;;  %v2651_v4 = vpop.f32.mrb[13].mxu0 }
 0x10f   :  { %v4006_v5 = vadd.f32 %v2675_v3, %v2674_v1  ;;  %v2677_v6 = vpop.f32.mrb[14].mxu1  ;;  %v4008_v7 = vadd.f32 %v2651_v4, %v2650_v2  ;;  %v2653_v8 = vpop.f32.mrb[14].mxu0 }
 0x110   :  { %v2678_v9 = vpop.f32.mrb[15].mxu1  ;;  %v2654_v10 = vpop.f32.mrb[15].mxu0 }
 0x111   :  { %v4010_v11 = vadd.f32 %v2678_v9, %v2677_v6  ;;  %v4012_v12 = vadd.f32 %v2654_v10, %v2653_v8  ;;  %v1629_v6 = vadd.f32 %v2649_v0, %v4017_v15 }
 0x115   :  { %v2696_v13 = vpop.f32.mrb[16].mxu1  ;;  %v2760_v14 = vpop.f32.mrb[16].mxu0 }
 0x116   :  { %v2697_v16 = vpop.f32.mrb[17].mxu1  ;;  %v2761_v17 = vpop.f32.mrb[17].mxu0 }
 0x117   :  { %v2698_v19 = vadd.f32 %v2697_v16, %v2696_v13  ;;  %v2699_v20 = vpop.f32.mrb[18].mxu1  ;;  %v2762_v21 = vadd.f32 %v2761_v17, %v2760_v14  ;;  %v2763_v22 = vpop.f32.mrb[18].mxu0 }
 0x118   :  { %v2700_v23 = vpop.f32.mrb[19].mxu1  ;;  %v2764_v24 = vpop.f32.mrb[19].mxu0 }
 0x119   :  { %v1707_v26 = vadd.f32 %v2698_v19, %v1610_v18  ;;  %v2701_v27 = vadd.f32 %v2700_v23, %v2699_v20  ;;  %v2765_v28 = vadd.f32 %v2764_v24, %v2763_v22  ;;  %v1634_v20 = vadd.f32 %v4008_v7, %v4017_v15 }
 0x11b   :  { %v1710_v29 = vadd.f32 %v2701_v27, %v1613_v25  ;;  %v4021_v30 = vadd.f32 %v2762_v21, %v1707_v26  ;;  %v1637_v26 = vadd.f32 %v4012_v12, %v4017_v15 }
 0x11d   :  { %v4023_v31 = vadd.f32 %v2765_v28, %v1710_v29  ;;  %v2702_v32 = vpop.f32.mrb[20].mxu1  ;;  %v2766_v34 = vpop.f32.mrb[20].mxu0 }
 0x11e   :  { %v2703_v36 = vpop.f32.mrb[21].mxu1  ;;  %v2767_v35 = vpop.f32.mrb[21].mxu0 }
 0x11f   :  { %v2704_v38 = vadd.f32 %v2703_v36, %v2702_v32  ;;  %v2705_v41 = vpop.f32.mrb[22].mxu1  ;;  %v2768_v42 = vadd.f32 %v2767_v35, %v2766_v34  ;;  %v2769_v43 = vpop.f32.mrb[22].mxu0 }
 0x120   :  { %v2706_v44 = vpop.f32.mrb[23].mxu1  ;;  %v2770_v40 = vpop.f32.mrb[23].mxu0 }
 0x121   :  { %v1715_v48 = vadd.f32 %v2704_v38, %v1618_v37  ;;  %v2707_v49 = vadd.f32 %v2706_v44, %v2705_v41  ;;  %v2771_v50 = vadd.f32 %v2770_v40, %v2769_v43  ;;  %v1642_v41 = vadd.f32 %v3994_v33, %v4017_v15 }
 0x123   :  { %v1718_v53 = vadd.f32 %v2707_v49, %v1621_v46  ;;  %v4027_v54 = vadd.f32 %v2768_v42, %v1715_v48  ;;  %v1645_v48 = vadd.f32 %v3996_v39, %v4017_v15 }
 0x125   :  { %v4029_v55 = vadd.f32 %v2771_v50, %v1718_v53  ;;  %v2708_v56 = vpop.f32.mrb[24].mxu1  ;;  %v2772_v58 = vpop.f32.mrb[24].mxu0 }
 0x126   :  { %v2709_v60 = vpop.f32.mrb[25].mxu1  ;;  %v2773_v47 = vpop.f32.mrb[25].mxu0 }
 0x127   :  { %v2710_v62 = vadd.f32 %v2709_v60, %v2708_v56  ;;  %v2711_v1 = vpop.f32.mrb[26].mxu1  ;;  %v2774_v2 = vadd.f32 %v2773_v47, %v2772_v58  ;;  %v2775_v3 = vpop.f32.mrb[26].mxu0 }
 0x128   :  { %v2712_v4 = vpop.f32.mrb[27].mxu1  ;;  %v2776_v52 = vpop.f32.mrb[27].mxu0 }
 0x129   :  { %v1723_v8 = vadd.f32 %v2710_v62, %v1626_v61  ;;  %v2713_v9 = vadd.f32 %v2712_v4, %v2711_v1  ;;  %v2777_v10 = vadd.f32 %v2776_v52, %v2775_v3  ;;  %v1650_v1 = vadd.f32 %v3998_v45, %v4017_v15 }
 0x12b   :  { %v1726_v13 = vadd.f32 %v2713_v9, %v1629_v6  ;;  %v4033_v14 = vadd.f32 %v2774_v2, %v1723_v8  ;;  %v1653_v8 = vadd.f32 %v4000_v51, %v4017_v15 }
 0x12d   :  { %v4035_v16 = vadd.f32 %v2777_v10, %v1726_v13  ;;  %v2714_v17 = vpop.f32.mrb[28].mxu1  ;;  %v2778_v18 = vpop.f32.mrb[28].mxu0 }
 0x12e   :  { %v2715_v19 = vpop.f32.mrb[29].mxu1  ;;  %v2779_v59 = vpop.f32.mrb[29].mxu0 }
 0x12f   :  { %v2716_v21 = vadd.f32 %v2715_v19, %v2714_v17  ;;  %v2717_v22 = vpop.f32.mrb[30].mxu1  ;;  %v2780_v23 = vadd.f32 %v2779_v59, %v2778_v18  ;;  %v2781_v24 = vpop.f32.mrb[30].mxu0 }
 0x130   :  { %v2718_v0 = vpop.f32.mrb[31].mxu1  ;;  %v2782_v25 = vpop.f32.mrb[31].mxu0 }
 0x131   :  { %v1731_v27 = vadd.f32 %v2716_v21, %v1634_v20  ;;  %v2719_v28 = vadd.f32 %v2718_v0, %v2717_v22  ;;  %v2783_v29 = vadd.f32 %v2782_v25, %v2781_v24  ;;  %v1658_v22 = vadd.f32 %v4002_v57, %v4017_v15 }
 0x133   :  { %v1734_v32 = vadd.f32 %v2719_v28, %v1637_v26  ;;  %v4041_v34 = vadd.f32 %v2780_v23, %v1731_v27  ;;  %v1661_v27 = vadd.f32 %v4004_v63, %v4017_v15 }
 0x135   :  { %v4043_v36 = vadd.f32 %v2783_v29, %v1734_v32  ;;  %v2720_v35 = vpop.f32.mrb[32].mxu1  ;;  %v2784_v37 = vpop.f32.mrb[32].mxu0 }
 0x136   :  { %v2721_v7 = vpop.f32.mrb[33].mxu1  ;;  %v2785_v38 = vpop.f32.mrb[33].mxu0 }
 0x137   :  { %v2722_v42 = vadd.f32 %v2721_v7, %v2720_v35  ;;  %v2723_v43 = vpop.f32.mrb[34].mxu1  ;;  %v2786_v44 = vadd.f32 %v2785_v38, %v2784_v37  ;;  %v2787_v40 = vpop.f32.mrb[34].mxu0 }
 0x138   :  { %v2724_v12 = vpop.f32.mrb[35].mxu1  ;;  %v2788_v46 = vpop.f32.mrb[35].mxu0 }
 0x139   :  { %v1739_v49 = vadd.f32 %v2722_v42, %v1642_v41  ;;  %v2725_v50 = vadd.f32 %v2724_v12, %v2723_v43  ;;  %v2789_v53 = vadd.f32 %v2788_v46, %v2787_v40  ;;  %v1666_v43 = vadd.f32 %v4006_v5, %v4017_v15 }
 0x13b   :  { %v1742_v56 = vadd.f32 %v2725_v50, %v1645_v48  ;;  %v4049_v58 = vadd.f32 %v2786_v44, %v1739_v49  ;;  %v1669_v49 = vadd.f32 %v4010_v11, %v4017_v15 }
 0x13d   :  { %v4051_v60 = vadd.f32 %v2789_v53, %v1742_v56  ;;  %v2726_v47 = vpop.f32.mrb[36].mxu1  ;;  %v2790_v61 = vpop.f32.mrb[36].mxu0 }
 0x13e   :  { %v2727_v33 = vpop.f32.mrb[37].mxu1  ;;  %v2791_v62 = vpop.f32.mrb[37].mxu0 }
 0x13f   :  { %v2728_v2 = vadd.f32 %v2727_v33, %v2726_v47  ;;  %v2729_v3 = vpop.f32.mrb[38].mxu1  ;;  %v2792_v4 = vadd.f32 %v2791_v62, %v2790_v61  ;;  %v2793_v52 = vpop.f32.mrb[38].mxu0 }
 0x140   :  { %v2730_v39 = vpop.f32.mrb[39].mxu1  ;;  %v2794_v6 = vpop.f32.mrb[39].mxu0 }
 0x141   :  { %v1747_v9 = vadd.f32 %v2728_v2, %v1650_v1  ;;  %v2731_v10 = vadd.f32 %v2730_v39, %v2729_v3  ;;  %v2795_v13 = vadd.f32 %v2794_v6, %v2793_v52 }
 0x143   :  { %v1750_v17 = vadd.f32 %v2731_v10, %v1653_v8  ;;  %v4057_v18 = vadd.f32 %v2792_v4, %v1747_v9 }
 0x145   :  { %v4059_v19 = vadd.f32 %v2795_v13, %v1750_v17  ;;  %v2732_v59 = vpop.f32.mrb[40].mxu1  ;;  %v2796_v20 = vpop.f32.mrb[40].mxu0 }
 0x146   :  { %v2733_v45 = vpop.f32.mrb[41].mxu1  ;;  %v2797_v21 = vpop.f32.mrb[41].mxu0 }
 0x147   :  { %v2734_v23 = vadd.f32 %v2733_v45, %v2732_v59  ;;  %v2735_v24 = vpop.f32.mrb[42].mxu1  ;;  %v2798_v0 = vadd.f32 %v2797_v21, %v2796_v20  ;;  %v2799_v25 = vpop.f32.mrb[42].mxu0 }
 0x148   :  { %v2736_v51 = vpop.f32.mrb[43].mxu1  ;;  %v2800_v26 = vpop.f32.mrb[43].mxu0 }
 0x149   :  { %v1755_v28 = vadd.f32 %v2734_v23, %v1658_v22  ;;  %v2737_v29 = vadd.f32 %v2736_v51, %v2735_v24  ;;  %v2801_v32 = vadd.f32 %v2800_v26, %v2799_v25 }
 0x14b   :  { %v1758_v35 = vadd.f32 %v2737_v29, %v1661_v27  ;;  %v4065_v37 = vadd.f32 %v2798_v0, %v1755_v28 }
 0x14d   :  { %v4067_v7 = vadd.f32 %v2801_v32, %v1758_v35  ;;  %v2738_v38 = vpop.f32.mrb[44].mxu1  ;;  %v2802_v41 = vpop.f32.mrb[44].mxu0 }
 0x14e   :  { %v2739_v57 = vpop.f32.mrb[45].mxu1  ;;  %v2803_v42 = vpop.f32.mrb[45].mxu0 }
 0x14f   :  { %v2740_v44 = vadd.f32 %v2739_v57, %v2738_v38  ;;  %v2741_v40 = vpop.f32.mrb[46].mxu1  ;;  %v2804_v12 = vadd.f32 %v2803_v42, %v2802_v41  ;;  %v2805_v46 = vpop.f32.mrb[46].mxu0 }
 0x150   :  { %v2742_v63 = vpop.f32.mrb[47].mxu1  ;;  %v2806_v48 = vpop.f32.mrb[47].mxu0 }
 0x151   :  { %v1763_v50 = vadd.f32 %v2740_v44, %v1666_v43  ;;  %v2743_v53 = vadd.f32 %v2742_v63, %v2741_v40  ;;  %v2807_v56 = vadd.f32 %v2806_v48, %v2805_v46 }
 0x153   :  { %v1766_v47 = vadd.f32 %v2743_v53, %v1669_v49  ;;  %v4073_v61 = vadd.f32 %v2804_v12, %v1763_v50 }
 0x155   :  { %v4075_v33 = vadd.f32 %v2807_v56, %v1766_v47  ;;  %v2824_v62 = vpop.f32.mrb[48].mxu1  ;;  %v2888_v1 = vpop.f32.mrb[48].mxu0 }
 0x156   :  { %v2825_v5 = vpop.f32.mrb[49].mxu1  ;;  %v2889_v2 = vpop.f32.mrb[49].mxu0 }
 0x157   :  { %v2826_v3 = vadd.f32 %v2825_v5, %v2824_v62  ;;  %v2827_v4 = vpop.f32.mrb[50].mxu1  ;;  %v2890_v52 = vadd.f32 %v2889_v2, %v2888_v1  ;;  %v2891_v39 = vpop.f32.mrb[50].mxu0 }
 0x158   :  { %v2828_v6 = vpop.f32.mrb[51].mxu1  ;;  %v2892_v8 = vpop.f32.mrb[51].mxu0 }
 0x159   :  { %v1901_v11 = vadd.f32 %v2826_v3, %v4021_v30  ;;  %v2829_v15 = vadd.f32 %v2828_v6, %v2827_v4  ;;  %v2893_v9 = vadd.f32 %v2892_v8, %v2891_v39 }
 0x15b   :  { %v1904_v10 = vadd.f32 %v2829_v15, %v4023_v31  ;;  %v4079_v13 = vadd.f32 %v2890_v52, %v1901_v11 }
 0x15d   :  { %v4081_v17 = vadd.f32 %v2893_v9, %v1904_v10  ;;  %v2830_v59 = vpop.f32.mrb[52].mxu1  ;;  %v2894_v20 = vpop.f32.mrb[52].mxu0 }
 0x15e   :  { %v2831_v45 = vpop.f32.mrb[53].mxu1  ;;  %v2895_v21 = vpop.f32.mrb[53].mxu0 }
 0x15f   :  { %v2832_v22 = vadd.f32 %v2831_v45, %v2830_v59  ;;  %v2833_v23 = vpop.f32.mrb[54].mxu1  ;;  %v2896_v24 = vadd.f32 %v2895_v21, %v2894_v20  ;;  %v2897_v0 = vpop.f32.mrb[54].mxu0 }
 0x160   :  { %v2834_v25 = vpop.f32.mrb[55].mxu1  ;;  %v2898_v51 = vpop.f32.mrb[55].mxu0 }
 0x161   :  { %v1909_v30 = vadd.f32 %v2832_v22, %v4027_v54  ;;  %v2835_v26 = vadd.f32 %v2834_v25, %v2833_v23  ;;  %v2899_v27 = vadd.f32 %v2898_v51, %v2897_v0 }
 0x163   :  { %v1912_v31 = vadd.f32 %v2835_v26, %v4029_v55  ;;  %v4085_v28 = vadd.f32 %v2896_v24, %v1909_v30 }
 0x165   :  { %v4087_v29 = vadd.f32 %v2899_v27, %v1912_v31  ;;  %v2836_v32 = vpop.f32.mrb[56].mxu1  ;;  %v2900_v35 = vpop.f32.mrb[56].mxu0 }
 0x166   :  { %v2837_v38 = vpop.f32.mrb[57].mxu1  ;;  %v2901_v41 = vpop.f32.mrb[57].mxu0 }
 0x167   :  { %v2838_v57 = vadd.f32 %v2837_v38, %v2836_v32  ;;  %v2839_v42 = vpop.f32.mrb[58].mxu1  ;;  %v2902_v43 = vadd.f32 %v2901_v41, %v2900_v35  ;;  %v2903_v44 = vpop.f32.mrb[58].mxu0 }
 0x168   :  { %v2840_v40 = vpop.f32.mrb[59].mxu1  ;;  %v2904_v12 = vpop.f32.mrb[59].mxu0 }
 0x169   :  { %v1917_v54 = vadd.f32 %v2838_v57, %v4033_v14  ;;  %v2841_v46 = vadd.f32 %v2840_v40, %v2839_v42  ;;  %v2905_v63 = vadd.f32 %v2904_v12, %v2903_v44 }
 0x16b   :  { %v1920_v55 = vadd.f32 %v2841_v46, %v4035_v16  ;;  %v4091_v48 = vadd.f32 %v2902_v43, %v1917_v54 }
 0x16d   :  { %v4093_v49 = vadd.f32 %v2905_v63, %v1920_v55  ;;  %v2842_v50 = vpop.f32.mrb[60].mxu1  ;;  %v2906_v53 = vpop.f32.mrb[60].mxu0 }
 0x16e   :  { %v2843_v56 = vpop.f32.mrb[61].mxu1  ;;  %v2907_v47 = vpop.f32.mrb[61].mxu0 }
 0x16f   :  { %v2844_v62 = vadd.f32 %v2843_v56, %v2842_v50  ;;  %v2845_v1 = vpop.f32.mrb[62].mxu1  ;;  %v2908_v5 = vadd.f32 %v2907_v47, %v2906_v53  ;;  %v2909_v2 = vpop.f32.mrb[62].mxu0 }
 0x170   :  { %v2846_v3 = vpop.f32.mrb[63].mxu1  ;;  %v2910_v4 = vpop.f32.mrb[63].mxu0 }
 0x171   :  { %v1925_v14 = vadd.f32 %v2844_v62, %v4041_v34  ;;  %v2847_v52 = vadd.f32 %v2846_v3, %v2845_v1  ;;  %v2911_v39 = vadd.f32 %v2910_v4, %v2909_v2 }
 0x173   :  { %v1928_v16 = vadd.f32 %v2847_v52, %v4043_v36  ;;  %v4097_v6 = vadd.f32 %v2908_v5, %v1925_v14 }
 0x175   :  { %v4099_v8 = vadd.f32 %v2911_v39, %v1928_v16  ;;  %v2848_v11 = vpop.f32.mrb[64].mxu1  ;;  %v2912_v15 = vpop.f32.mrb[64].mxu0 }
 0x176   :  { %v2849_v9 = vpop.f32.mrb[65].mxu1  ;;  %v2913_v10 = vpop.f32.mrb[65].mxu0 }
 0x177   :  { %v2850_v59 = vadd.f32 %v2849_v9, %v2848_v11  ;;  %v2851_v20 = vpop.f32.mrb[66].mxu1  ;;  %v2914_v45 = vadd.f32 %v2913_v10, %v2912_v15  ;;  %v2915_v21 = vpop.f32.mrb[66].mxu0 }
 0x178   :  { %v2852_v22 = vpop.f32.mrb[67].mxu1  ;;  %v2916_v23 = vpop.f32.mrb[67].mxu0 }
 0x179   :  { %v1933_v34 = vadd.f32 %v2850_v59, %v4049_v58  ;;  %v2853_v24 = vadd.f32 %v2852_v22, %v2851_v20  ;;  %v2917_v0 = vadd.f32 %v2916_v23, %v2915_v21 }
 0x17b   :  { %v1936_v36 = vadd.f32 %v2853_v24, %v4051_v60  ;;  %v4103_v25 = vadd.f32 %v2914_v45, %v1933_v34 }
 0x17d   :  { %v4105_v51 = vadd.f32 %v2917_v0, %v1936_v36  ;;  %v2854_v30 = vpop.f32.mrb[68].mxu1  ;;  %v2918_v26 = vpop.f32.mrb[68].mxu0 }
 0x17e   :  { %v2855_v27 = vpop.f32.mrb[69].mxu1  ;;  %v2919_v31 = vpop.f32.mrb[69].mxu0 }
 0x17f   :  { %v2856_v32 = vadd.f32 %v2855_v27, %v2854_v30  ;;  %v2857_v35 = vpop.f32.mrb[70].mxu1  ;;  %v2920_v38 = vadd.f32 %v2919_v31, %v2918_v26  ;;  %v2921_v41 = vpop.f32.mrb[70].mxu0 }
 0x180   :  { %v2858_v57 = vpop.f32.mrb[71].mxu1  ;;  %v2922_v42 = vpop.f32.mrb[71].mxu0 }
 0x181   :  { %v1941_v58 = vadd.f32 %v2856_v32, %v4057_v18  ;;  %v2859_v43 = vadd.f32 %v2858_v57, %v2857_v35  ;;  %v2923_v44 = vadd.f32 %v2922_v42, %v2921_v41 }
 0x183   :  { %v1944_v60 = vadd.f32 %v2859_v43, %v4059_v19  ;;  %v4109_v40 = vadd.f32 %v2920_v38, %v1941_v58 }
 0x185   :  { %v4111_v12 = vadd.f32 %v2923_v44, %v1944_v60  ;;  %v2860_v54 = vpop.f32.mrb[72].mxu1  ;;  %v2924_v46 = vpop.f32.mrb[72].mxu0 }
 0x186   :  { %v2861_v63 = vpop.f32.mrb[73].mxu1  ;;  %v2925_v55 = vpop.f32.mrb[73].mxu0 }
 0x187   :  { %v2862_v50 = vadd.f32 %v2861_v63, %v2860_v54  ;;  %v2863_v53 = vpop.f32.mrb[74].mxu1  ;;  %v2926_v56 = vadd.f32 %v2925_v55, %v2924_v46  ;;  %v2927_v47 = vpop.f32.mrb[74].mxu0 }
 0x188   :  { %v2864_v62 = vpop.f32.mrb[75].mxu1  ;;  %v2928_v1 = vpop.f32.mrb[75].mxu0 }
 0x189   :  { %v1949_v18 = vadd.f32 %v2862_v50, %v4065_v37  ;;  %v2865_v5 = vadd.f32 %v2864_v62, %v2863_v53  ;;  %v2929_v2 = vadd.f32 %v2928_v1, %v2927_v47 }
 0x18b   :  { %v1952_v19 = vadd.f32 %v2865_v5, %v4067_v7  ;;  %v4115_v3 = vadd.f32 %v2926_v56, %v1949_v18 }
 0x18d   :  { %v4117_v4 = vadd.f32 %v2929_v2, %v1952_v19  ;;  %v2866_v14 = vpop.f32.mrb[76].mxu1  ;;  %v2930_v52 = vpop.f32.mrb[76].mxu0 }
 0x18e   :  { %v2867_v39 = vpop.f32.mrb[77].mxu1  ;;  %v2931_v16 = vpop.f32.mrb[77].mxu0 }
 0x18f   :  { %v2868_v11 = vadd.f32 %v2867_v39, %v2866_v14  ;;  %v2869_v15 = vpop.f32.mrb[78].mxu1  ;;  %v2932_v9 = vadd.f32 %v2931_v16, %v2930_v52  ;;  %v2933_v10 = vpop.f32.mrb[78].mxu0 }
 0x190   :  { %v2870_v59 = vpop.f32.mrb[79].mxu1  ;;  %v2934_v20 = vpop.f32.mrb[79].mxu0 }
 0x191   :  { %v1957_v37 = vadd.f32 %v2868_v11, %v4073_v61  ;;  %v2871_v45 = vadd.f32 %v2870_v59, %v2869_v15  ;;  %v2935_v21 = vadd.f32 %v2934_v20, %v2933_v10 }
 0x193   :  { %v1960_v7 = vadd.f32 %v2871_v45, %v4075_v33  ;;  %v4121_v22 = vadd.f32 %v2932_v9, %v1957_v37 }
 0x195   :  { %v4123_v23 = vadd.f32 %v2935_v21, %v1960_v7  ;;  %v2952_v34 = vpop.f32.mrb[80].mxu1  ;;  %v2191_v24 = vpop.f32.mrb[80].mxu0 }
 0x196   :  { %v2953_v0 = vpop.f32.mrb[81].mxu1  ;;  %v2193_v36 = vpop.f32.mrb[81].mxu0 }
 0x197   :  { %v2954_v30 = vadd.f32 %v2953_v0, %v2952_v34  ;;  %v2955_v26 = vpop.f32.mrb[82].mxu1  ;;  %v2194_v27 = vpop.f32.mrb[82].mxu0 }
 0x198   :  { %v2956_v31 = vpop.f32.mrb[83].mxu1  ;;  %v2196_v32 = vpop.f32.mrb[83].mxu0 }
 0x199   :  { %v2957_v35 = vadd.f32 %v2956_v31, %v2955_v26  ;;  %v2095_v61 = vadd.f32 %v2954_v30, %v4079_v13 }
 0x19b   :  { %v2192_v38 = vadd.f32 %v2191_v24, %v2095_v61  ;;  %v2098_v41 = vadd.f32 %v2957_v35, %v4081_v17 }
 0x19d   :  { %v2254_v33 = vmax.f32 %v2192_v38, 0.0  ;;  %v2195_v57 = vadd.f32 %v2194_v27, %v2098_v41  ;;  %v2958_v42 = vpop.f32.mrb[84].mxu1  ;;  %v2199_v58 = vpop.f32.mrb[84].mxu0 }
 0x19e   :  { %v2959_v43 = vpop.f32.mrb[85].mxu1  ;;  %v2201_v44 = vpop.f32.mrb[85].mxu0 }
 0x19f   :  { %v2600_v60 = vpack.c.bf16 %v2254_v33, %v2254_v33  ;;  %v2255_v54 = vmax.f32 %v2195_v57, 0.0  ;;  %v2960_v46 = vadd.f32 %v2959_v43, %v2958_v42  ;;  %v2961_v63 = vpop.f32.mrb[86].mxu1  ;;  %v2202_v55 = vpop.f32.mrb[86].mxu0 }
 0x1a0   :  { %v2962_v50 = vpop.f32.mrb[87].mxu1  ;;  %v2204_v53 = vpop.f32.mrb[87].mxu0 }
 0x1a1   :  { %2335 = vst.msk [vmem:[%s4208_s3] sm:$0xf] %vm2334_vm1, %v2600_v60  ;;  %v2601_v13 = vpack.c.bf16 %v2255_v54, %v2255_v54  ;;  %v2963_v17 = vadd.f32 %v2962_v50, %v2961_v63  ;;  %v2103_v56 = vadd.f32 %v2960_v46, %v4085_v28 }
 0x1a3   :  { %2336 = vst.msk [vmem:[%s4208_s3 + $0x4] sm:$0xf] %vm2334_vm1, %v2601_v13  ;;  %v2200_v47 = vadd.f32 %v2199_v58, %v2103_v56  ;;  %v2106_v62 = vadd.f32 %v2963_v17, %v4087_v29 }
 0x1a5   :  { %v2256_v1 = vmax.f32 %v2200_v47, 0.0  ;;  %v2203_v18 = vadd.f32 %v2202_v55, %v2106_v62  ;;  %v2964_v5 = vpop.f32.mrb[88].mxu1  ;;  %v2207_v2 = vpop.f32.mrb[88].mxu0 }
 0x1a6   :  { %v2965_v19 = vpop.f32.mrb[89].mxu1  ;;  %v2209_v14 = vpop.f32.mrb[89].mxu0 }
 0x1a7   :  { %v2602_v52 = vpack.c.bf16 %v2256_v1, %v2256_v1  ;;  %v2257_v39 = vmax.f32 %v2203_v18, 0.0  ;;  %v2966_v16 = vadd.f32 %v2965_v19, %v2964_v5  ;;  %v2967_v11 = vpop.f32.mrb[90].mxu1  ;;  %v2210_v15 = vpop.f32.mrb[90].mxu0 }
 0x1a8   :  { %v2968_v28 = vpop.f32.mrb[91].mxu1  ;;  %v2212_v9 = vpop.f32.mrb[91].mxu0 }
 0x1a9   :  { %2337 = vst.msk [vmem:[%s4208_s3 + $0x8] sm:$0xf] %vm2334_vm1, %v2602_v52  ;;  %v2603_v10 = vpack.c.bf16 %v2257_v39, %v2257_v39  ;;  %v2969_v29 = vadd.f32 %v2968_v28, %v2967_v11  ;;  %v2111_v59 = vadd.f32 %v2966_v16, %v4091_v48 }
 0x1ab   :  { %2338 = vst.msk [vmem:[%s4208_s3 + $0xc] sm:$0xf] %vm2334_vm1, %v2603_v10  ;;  %v2208_v20 = vadd.f32 %v2207_v2, %v2111_v59  ;;  %v2114_v37 = vadd.f32 %v2969_v29, %v4093_v49 }
 0x1ad   :  { %v2258_v45 = vmax.f32 %v2208_v20, 0.0  ;;  %v2211_v21 = vadd.f32 %v2210_v15, %v2114_v37  ;;  %v2970_v7 = vpop.f32.mrb[92].mxu1  ;;  %v2215_v34 = vpop.f32.mrb[92].mxu0 }
 0x1ae   :  { %v2971_v24 = vpop.f32.mrb[93].mxu1  ;;  %v2217_v0 = vpop.f32.mrb[93].mxu0 }
 0x1af   :  { %v2604_v36 = vpack.c.bf16 %v2258_v45, %v2258_v45  ;;  %v2259_v30 = vmax.f32 %v2211_v21, 0.0  ;;  %v2972_v26 = vadd.f32 %v2971_v24, %v2970_v7  ;;  %v2973_v27 = vpop.f32.mrb[94].mxu1  ;;  %v2218_v31 = vpop.f32.mrb[94].mxu0 }
 0x1b0   :  { %v2974_v48 = vpop.f32.mrb[95].mxu1  ;;  %v2220_v32 = vpop.f32.mrb[95].mxu0 }
 0x1b1   :  { %2339 = vst.msk [vmem:[%s4208_s3 + $0x10] sm:$0xf] %vm2334_vm1, %v2604_v36  ;;  %v2605_v35 = vpack.c.bf16 %v2259_v30, %v2259_v30  ;;  %v2975_v49 = vadd.f32 %v2974_v48, %v2973_v27  ;;  %v2119_v61 = vadd.f32 %v2972_v26, %v4097_v6 }
 0x1b3   :  { %2340 = vst.msk [vmem:[%s4208_s3 + $0x14] sm:$0xf] %vm2334_vm1, %v2605_v35  ;;  %v2216_v38 = vadd.f32 %v2215_v34, %v2119_v61  ;;  %v2122_v41 = vadd.f32 %v2975_v49, %v4099_v8 }
 0x1b5   :  { %v2260_v33 = vmax.f32 %v2216_v38, 0.0  ;;  %v2219_v57 = vadd.f32 %v2218_v31, %v2122_v41  ;;  %v2976_v42 = vpop.f32.mrb[96].mxu1  ;;  %v2223_v58 = vpop.f32.mrb[96].mxu0 }
 0x1b6   :  { %v2977_v43 = vpop.f32.mrb[97].mxu1  ;;  %v2225_v44 = vpop.f32.mrb[97].mxu0 }
 0x1b7   :  { %v2606_v60 = vpack.c.bf16 %v2260_v33, %v2260_v33  ;;  %v2261_v54 = vmax.f32 %v2219_v57, 0.0  ;;  %v2978_v46 = vadd.f32 %v2977_v43, %v2976_v42  ;;  %v2979_v63 = vpop.f32.mrb[98].mxu1  ;;  %v2226_v55 = vpop.f32.mrb[98].mxu0 }
 0x1b8   :  { %v2980_v6 = vpop.f32.mrb[99].mxu1  ;;  %v2228_v50 = vpop.f32.mrb[99].mxu0 }
 0x1b9   :  { %2341 = vst.msk [vmem:[%s4208_s3 + $0x18] sm:$0xf] %vm2334_vm1, %v2606_v60  ;;  %v2607_v53 = vpack.c.bf16 %v2261_v54, %v2261_v54  ;;  %v2981_v8 = vadd.f32 %v2980_v6, %v2979_v63  ;;  %v2127_v13 = vadd.f32 %v2978_v46, %v4103_v25 }
 0x1bb   :  { %2342 = vst.msk [vmem:[%s4208_s3 + $0x1c] sm:$0xf] %vm2334_vm1, %v2607_v53  ;;  %v2224_v17 = vadd.f32 %v2223_v58, %v2127_v13  ;;  %v2130_v56 = vadd.f32 %v2981_v8, %v4105_v51 }
 0x1bd   :  { %v2262_v47 = vmax.f32 %v2224_v17, 0.0  ;;  %v2227_v62 = vadd.f32 %v2226_v55, %v2130_v56  ;;  %v2982_v1 = vpop.f32.mrb[100].mxu1  ;;  %v2231_v18 = vpop.f32.mrb[100].mxu0 }
 0x1be   :  { %v2983_v5 = vpop.f32.mrb[101].mxu1  ;;  %v2233_v2 = vpop.f32.mrb[101].mxu0 }
 0x1bf   :  { %v2608_v19 = vpack.c.bf16 %v2262_v47, %v2262_v47  ;;  %v2263_v14 = vmax.f32 %v2227_v62, 0.0  ;;  %v2984_v52 = vadd.f32 %v2983_v5, %v2982_v1  ;;  %v2985_v39 = vpop.f32.mrb[102].mxu1  ;;  %v2234_v16 = vpop.f32.mrb[102].mxu0 }
 0x1c0   :  { %v2986_v25 = vpop.f32.mrb[103].mxu1  ;;  %v2236_v11 = vpop.f32.mrb[103].mxu0 }
 0x1c1   :  { %2343 = vst.msk [vmem:[%s4208_s3 + $0x20] sm:$0xf] %vm2334_vm1, %v2608_v19  ;;  %v2609_v15 = vpack.c.bf16 %v2263_v14, %v2263_v14  ;;  %v2987_v51 = vadd.f32 %v2986_v25, %v2985_v39  ;;  %v2135_v28 = vadd.f32 %v2984_v52, %v4109_v40 }
 0x1c3   :  { %2344 = vst.msk [vmem:[%s4208_s3 + $0x24] sm:$0xf] %vm2334_vm1, %v2609_v15  ;;  %v2232_v9 = vadd.f32 %v2231_v18, %v2135_v28  ;;  %v2138_v10 = vadd.f32 %v2987_v51, %v4111_v12 }
 0x1c5   :  { %v2264_v29 = vmax.f32 %v2232_v9, 0.0  ;;  %v2235_v59 = vadd.f32 %v2234_v16, %v2138_v10  ;;  %v2988_v20 = vpop.f32.mrb[104].mxu1  ;;  %v2239_v37 = vpop.f32.mrb[104].mxu0 }
 0x1c6   :  { %v2989_v45 = vpop.f32.mrb[105].mxu1  ;;  %v2241_v21 = vpop.f32.mrb[105].mxu0 }
 0x1c7   :  { %v2610_v7 = vpack.c.bf16 %v2264_v29, %v2264_v29  ;;  %v2265_v34 = vmax.f32 %v2235_v59, 0.0  ;;  %v2990_v24 = vadd.f32 %v2989_v45, %v2988_v20  ;;  %v2991_v0 = vpop.f32.mrb[106].mxu1  ;;  %v2242_v36 = vpop.f32.mrb[106].mxu0 }
 0x1c8   :  { %v2992_v40 = vpop.f32.mrb[107].mxu1  ;;  %v2244_v30 = vpop.f32.mrb[107].mxu0 }
 0x1c9   :  { %2345 = vst.msk [vmem:[%s4208_s3 + $0x28] sm:$0xf] %vm2334_vm1, %v2610_v7  ;;  %v2611_v26 = vpack.c.bf16 %v2265_v34, %v2265_v34  ;;  %v2993_v12 = vadd.f32 %v2992_v40, %v2991_v0  ;;  %v2143_v27 = vadd.f32 %v2990_v24, %v4115_v3 }
 0x1cb   :  { %2346 = vst.msk [vmem:[%s4208_s3 + $0x2c] sm:$0xf] %vm2334_vm1, %v2611_v26  ;;  %v2240_v31 = vadd.f32 %v2239_v37, %v2143_v27  ;;  %v2146_v48 = vadd.f32 %v2993_v12, %v4117_v4 }
 0x1cd   :  { %v2266_v32 = vmax.f32 %v2240_v31, 0.0  ;;  %v2243_v35 = vadd.f32 %v2242_v36, %v2146_v48  ;;  %v2994_v49 = vpop.f32.mrb[108].mxu1  ;;  %v2247_v61 = vpop.f32.mrb[108].mxu0 }
 0x1ce   :  { %v2995_v38 = vpop.f32.mrb[109].mxu1  ;;  %v2249_v41 = vpop.f32.mrb[109].mxu0 }
 0x1cf   :  { %v2612_v33 = vpack.c.bf16 %v2266_v32, %v2266_v32  ;;  %v2267_v57 = vmax.f32 %v2243_v35, 0.0  ;;  %v2996_v42 = vadd.f32 %v2995_v38, %v2994_v49  ;;  %v2997_v58 = vpop.f32.mrb[110].mxu1  ;;  %v2250_v43 = vpop.f32.mrb[110].mxu0 }
 0x1d0   :  { %v2998_v3 = vpop.f32.mrb[111].mxu1  ;;  %v2252_v44 = vpop.f32.mrb[111].mxu0 }
 0x1d1   :  { %2347 = vst.msk [vmem:[%s4208_s3 + $0x30] sm:$0xf] %vm2334_vm1, %v2612_v33  ;;  %v2613_v60 = vpack.c.bf16 %v2267_v57, %v2267_v57  ;;  %v2999_v4 = vadd.f32 %v2998_v3, %v2997_v58  ;;  %v2151_v54 = vadd.f32 %v2996_v42, %v4121_v22 }
 0x1d3   :  { %2348 = vst.msk [vmem:[%s4208_s3 + $0x34] sm:$0xf] %vm2334_vm1, %v2613_v60  ;;  %v2248_v46 = vadd.f32 %v2247_v61, %v2151_v54  ;;  %v2154_v63 = vadd.f32 %v2999_v4, %v4123_v23 }
 0x1d5   :  { %v2268_v55 = vmax.f32 %v2248_v46, 0.0  ;;  %v2251_v6 = vadd.f32 %v2250_v43, %v2154_v63 }
 0x1d7   :  { %v2614_v50 = vpack.c.bf16 %v2268_v55, %v2268_v55  ;;  %v2269_v53 = vmax.f32 %v2251_v6, 0.0 }
 0x1d9   :  { %2349 = vst.msk [vmem:[%s4208_s3 + $0x38] sm:$0xf] %vm2334_vm1, %v2614_v50  ;;  %v2615_v8 = vpack.c.bf16 %v2269_v53, %v2269_v53 }
 0x1db   :  { %2350 = vst.msk [vmem:[%s4208_s3 + $0x3c] sm:$0xf] %vm2334_vm1, %v2615_v8 }

// kernel: apsnet_forward.13
= control target key start
LH: loop header
LB: loop body
LE: loop exit
PB: predicated region body
PF: predicated region fallthrough
CT: control target
= control target key end

     0   :  { %vm1611_vm0 = vcmask 519168   ;;  %s2923_s1 = inlined_call_operand.vmem [shape: bf16[1152,64], index: 1, kind: input, shape index: {}]   ;;  %s2924_s0 = inlined_call_operand.vmem [shape: bf16[128,1152], index: 0, kind: input, shape index: {}]   ;;  %s2925_s2 = inlined_call_operand.vmem [shape: f32[1,64], index: 2, kind: input, shape index: {}]   ;;  %s2926_s3 = inlined_call_operand.vmem [shape: bf16[128,64], index: 3, kind: output, shape index: {}]  }
   0x1   :  { %v2129_v0 = vld [vmem:[%s2923_s1 + $0x40] sm:$0xff]   ;;  %v2133_v4 = vld [vmem:[%s2923_s1 + $0x48] sm:$0xff]   ;;  %v2137_v8 = vld [vmem:[%s2923_s1 + $0x50] sm:$0xff]  }
   0x2   :  { %v2130_v1 = vld [vmem:[%s2923_s1 + $0xc0] sm:$0xff]   ;;  %1809 = vmatprep.subr.bf16.mxu0 %v2129_v0  ;;  %v2134_v5 = vld [vmem:[%s2923_s1 + $0xc8] sm:$0xff]   ;;  %v2138_v9 = vld [vmem:[%s2923_s1 + $0xd0] sm:$0xff]  }
   0x3   :  { %v2131_v2 = vld [vmem:[%s2923_s1] sm:$0xff]   ;;  %1873 = vmatprep.subr.bf16.mxu1 %v2130_v1  ;;  %v2135_v6 = vld [vmem:[%s2923_s1 + $0x8] sm:$0xff]   ;;  %v2139_v10 = vld [vmem:[%s2923_s1 + $0x10] sm:$0xff]  }
   0x4   :  { %v2132_v3 = vld [vmem:[%s2923_s1 + $0x80] sm:$0xff]   ;;  %1810 = vmatpush3.bf16.msra.mxu0 %v2131_v2  ;;  %v2136_v7 = vld [vmem:[%s2923_s1 + $0x88] sm:$0xff]   ;;  %v2140_v11 = vld [vmem:[%s2923_s1 + $0x90] sm:$0xff]  }
   0x5   :  { %1874 = vmatpush3.bf16.msra.mxu1 %v2132_v3  ;;  %1811 = vmatprep.subr.bf16.mxu0 %v2133_v4  ;;  %v2141_v12 = vld [vmem:[%s2923_s1 + $0x58] sm:$0xff]   ;;  %v2145_v16 = vld [vmem:[%s2923_s1 + $0x60] sm:$0xff]   ;;  %v2149_v20 = vld [vmem:[%s2923_s1 + $0x68] sm:$0xff]  }
   0x6   :  { %1875 = vmatprep.subr.bf16.mxu1 %v2134_v5  ;;  %v2142_v13 = vld [vmem:[%s2923_s1 + $0xd8] sm:$0xff]   ;;  %v2146_v17 = vld [vmem:[%s2923_s1 + $0xe0] sm:$0xff]   ;;  %v2150_v21 = vld [vmem:[%s2923_s1 + $0xe8] sm:$0xff]  }
   0x7   :  { %v2143_v14 = vld [vmem:[%s2923_s1 + $0x18] sm:$0xff]   ;;  %v2147_v18 = vld [vmem:[%s2923_s1 + $0x20] sm:$0xff]   ;;  %v2151_v22 = vld [vmem:[%s2923_s1 + $0x28] sm:$0xff]  }
   0x8   :  { %1812 = vmatpush3.bf16.msra.mxu0 %v2135_v6  ;;  %v2144_v15 = vld [vmem:[%s2923_s1 + $0x98] sm:$0xff]   ;;  %v2148_v19 = vld [vmem:[%s2923_s1 + $0xa0] sm:$0xff]   ;;  %v2152_v23 = vld [vmem:[%s2923_s1 + $0xa8] sm:$0xff]  }
   0x9   :  { %1876 = vmatpush3.bf16.msra.mxu1 %v2136_v7  ;;  %1813 = vmatprep.subr.bf16.mxu0 %v2137_v8  ;;  %v2153_v24 = vld [vmem:[%s2923_s1 + $0x70] sm:$0xff]   ;;  %v2157_v28 = vld [vmem:[%s2923_s1 + $0x78] sm:$0xff]   ;;  %v2161_v32 = vld [vmem:[%s2924_s0] ss:$36 sps:$4 sm:$0xff]  }
   0xa   :  { %1877 = vmatprep.subr.bf16.mxu1 %v2138_v9  ;;  %v2154_v25 = vld [vmem:[%s2923_s1 + $0xf0] sm:$0xff]   ;;  %v2158_v29 = vld [vmem:[%s2923_s1 + $0xf8] sm:$0xff]   ;;  %v2163_v33 = vld [vmem:[%s2924_s0 + $0x4] ss:$36 sps:$4 sm:$0xff]  }
   0xb   :  { %v2155_v26 = vld [vmem:[%s2923_s1 + $0x30] sm:$0xff]   ;;  %v2159_v30 = vld [vmem:[%s2923_s1 + $0x38] sm:$0xff]   ;;  %v2164_v34 = vld [vmem:[%s2924_s0 + $0x8] ss:$36 sps:$4 sm:$0xff]   ;;  %1078 = vmatprep.mubr.bf16.mxu0 %v2163_v33 }
   0xc   :  { %1814 = vmatpush3.bf16.msra.mxu0 %v2139_v10  ;;  %v2156_v27 = vld [vmem:[%s2923_s1 + $0xb0] sm:$0xff]   ;;  %v2160_v31 = vld [vmem:[%s2923_s1 + $0xb8] sm:$0xff]   ;;  %v2167_v36 = vld [vmem:[%s2923_s1 + $0x140] sm:$0xff]  }
   0xd   :  { %1878 = vmatpush3.bf16.msra.mxu1 %v2140_v11  ;;  %1815 = vmatprep.subr.bf16.mxu0 %v2141_v12  ;;  %v2166_v35 = vld [vmem:[%s2924_s0 + $0xc] ss:$36 sps:$4 sm:$0xff]   ;;  %v2168_v37 = vld [vmem:[%s2923_s1 + $0x1c0] sm:$0xff]   ;;  %v2173_v41 = vld [vmem:[%s2924_s0 + $0x54] ss:$36 sps:$4 sm:$0xff]  }
   0xe   :  { %1879 = vmatprep.subr.bf16.mxu1 %v2142_v13  ;;  %1175 = vmatprep.mubr.bf16.mxu1 %v2166_v35  ;;  %v2169_v38 = vld [vmem:[%s2923_s1 + $0x100] sm:$0xff]   ;;  %v2171_v40 = vld [vmem:[%s2924_s0 + $0x4c] ss:$36 sps:$4 sm:$0xff]   ;;  %v2181_v48 = vld [vmem:[%s2924_s0 + $0x94] ss:$36 sps:$4 sm:$0xff]  }
   0xf   :  { %v2170_v39 = vld [vmem:[%s2923_s1 + $0x180] sm:$0xff]   ;;  %v2175_v42 = vld [vmem:[%s2924_s0 + $0x48] ss:$36 sps:$4 sm:$0xff]   ;;  %v2176_v43 = vld [vmem:[%s2924_s0 + $0x50] ss:$36 sps:$4 sm:$0xff]  }
  0x10   :  { %1816 = vmatpush3.bf16.msra.mxu0 %v2143_v14  ;;  %v2177_v44 = vld [vmem:[%s2923_s1 + $0x148] sm:$0xff]   ;;  %v2183_v49 = vld [vmem:[%s2924_s0 + $0x9c] ss:$36 sps:$4 sm:$0xff]   ;;  %v2185_v50 = vld [vmem:[%s2924_s0 + $0x90] ss:$36 sps:$4 sm:$0xff]  }
  0x11   :  { %1880 = vmatpush3.bf16.msra.mxu1 %v2144_v15  ;;  %1817 = vmatprep.subr.bf16.mxu0 %v2145_v16  ;;  %v2178_v45 = vld [vmem:[%s2923_s1 + $0x1c8] sm:$0xff]   ;;  %v2186_v51 = vld [vmem:[%s2924_s0 + $0x98] ss:$36 sps:$4 sm:$0xff]   ;;  %v2187_v52 = vld [vmem:[%s2923_s1 + $0x150] sm:$0xff]  }
  0x12   :  { %1881 = vmatprep.subr.bf16.mxu1 %v2146_v17  ;;  %v2179_v46 = vld [vmem:[%s2923_s1 + $0x108] sm:$0xff]   ;;  %v2188_v53 = vld [vmem:[%s2923_s1 + $0x1d0] sm:$0xff]   ;;  %v2191_v56 = vld [vmem:[%s2924_s0 + $0xdc] ss:$36 sps:$4 sm:$0xff]  }
  0x13   :  { %v2180_v47 = vld [vmem:[%s2923_s1 + $0x188] sm:$0xff]   ;;  %v2189_v54 = vld [vmem:[%s2923_s1 + $0x110] sm:$0xff]   ;;  %v2195_v58 = vld [vmem:[%s2924_s0 + $0xd8] ss:$36 sps:$4 sm:$0xff]  }
  0x14   :  { %1818 = vmatpush3.bf16.msra.mxu0 %v2147_v18  ;;  %v2190_v55 = vld [vmem:[%s2923_s1 + $0x190] sm:$0xff]   ;;  %v2193_v57 = vld [vmem:[%s2924_s0 + $0xe4] ss:$36 sps:$4 sm:$0xff]   ;;  %v2197_v60 = vld [vmem:[%s2923_s1 + $0x158] sm:$0xff]  }
  0x15   :  { %1882 = vmatpush3.bf16.msra.mxu1 %v2148_v19  ;;  %1819 = vmatprep.subr.bf16.mxu0 %v2149_v20  ;;  %v2196_v59 = vld [vmem:[%s2924_s0 + $0xe0] ss:$36 sps:$4 sm:$0xff]   ;;  %v2198_v61 = vld [vmem:[%s2923_s1 + $0x1d8] sm:$0xff]   ;;  %v2203_v1 = vld [vmem:[%s2924_s0 + $0x12c] ss:$36 sps:$4 sm:$0xff]  }
  0x16   :  { %1883 = vmatprep.subr.bf16.mxu1 %v2150_v21  ;;  %v2199_v62 = vld [vmem:[%s2923_s1 + $0x118] sm:$0xff]   ;;  %v2201_v0 = vld [vmem:[%s2924_s0 + $0x124] ss:$36 sps:$4 sm:$0xff]   ;;  %v2211_v8 = vld [vmem:[%s2924_s0 + $0x16c] ss:$36 sps:$4 sm:$0xff]  }
  0x17   :  { %v2200_v63 = vld [vmem:[%s2923_s1 + $0x198] sm:$0xff]   ;;  %v2205_v2 = vld [vmem:[%s2924_s0 + $0x120] ss:$36 sps:$4 sm:$0xff]   ;;  %v2206_v4 = vld [vmem:[%s2924_s0 + $0x128] ss:$36 sps:$4 sm:$0xff]  }
  0x18   :  { %1820 = vmatpush3.bf16.msra.mxu0 %v2151_v22  ;;  %v2207_v3 = vld [vmem:[%s2923_s1 + $0x160] sm:$0xff]   ;;  %v2213_v9 = vld [vmem:[%s2924_s0 + $0x174] ss:$36 sps:$4 sm:$0xff]   ;;  %v2217_v10 = vld [vmem:[%s2923_s1 + $0x168] sm:$0xff]  }
  0x19   :  { %1884 = vmatpush3.bf16.msra.mxu1 %v2152_v23  ;;  %1821 = vmatprep.subr.bf16.mxu0 %v2153_v24  ;;  %v2208_v5 = vld [vmem:[%s2923_s1 + $0x1e0] sm:$0xff]   ;;  %v2218_v11 = vld [vmem:[%s2923_s1 + $0x1e8] sm:$0xff]   ;;  %v2216_v15 = vld [vmem:[%s2924_s0 + $0x170] ss:$36 sps:$4 sm:$0xff]  }
  0x1a   :  { %1885 = vmatprep.subr.bf16.mxu1 %v2154_v25  ;;  %v2209_v6 = vld [vmem:[%s2923_s1 + $0x120] sm:$0xff]   ;;  %v2215_v12 = vld [vmem:[%s2924_s0 + $0x168] ss:$36 sps:$4 sm:$0xff]   ;;  %v2221_v16 = vld [vmem:[%s2924_s0 + $0x1b4] ss:$36 sps:$4 sm:$0xff]  }
  0x1b   :  { %v2210_v7 = vld [vmem:[%s2923_s1 + $0x1a0] sm:$0xff]   ;;  %v2219_v13 = vld [vmem:[%s2923_s1 + $0x128] sm:$0xff]   ;;  %v2227_v18 = vld [vmem:[%s2923_s1 + $0x170] sm:$0xff]  }
  0x1c   :  { %1822 = vmatpush3.bf16.msra.mxu0 %v2155_v26  ;;  %v2220_v14 = vld [vmem:[%s2923_s1 + $0x1a8] sm:$0xff]   ;;  %v2223_v17 = vld [vmem:[%s2924_s0 + $0x1bc] ss:$36 sps:$4 sm:$0xff]   ;;  %v2228_v19 = vld [vmem:[%s2923_s1 + $0x1f0] sm:$0xff]  }
  0x1d   :  { %1886 = vmatpush3.bf16.msra.mxu1 %v2156_v27  ;;  %1823 = vmatprep.subr.bf16.mxu0 %v2157_v28  ;;  %v2229_v20 = vld [vmem:[%s2923_s1 + $0x130] sm:$0xff]   ;;  %v2226_v23 = vld [vmem:[%s2924_s0 + $0x1b8] ss:$36 sps:$4 sm:$0xff]   ;;  %v2233_v25 = vld [vmem:[%s2924_s0 + $0x204] ss:$36 sps:$4 sm:$0xff]  }
  0x1e   :  { %1887 = vmatprep.subr.bf16.mxu1 %v2158_v29  ;;  %v2230_v21 = vld [vmem:[%s2923_s1 + $0x1b0] sm:$0xff]   ;;  %v2231_v24 = vld [vmem:[%s2924_s0 + $0x1fc] ss:$36 sps:$4 sm:$0xff]  }
  0x1f   :  { %v2225_v22 = vld [vmem:[%s2924_s0 + $0x1b0] ss:$36 sps:$4 sm:$0xff]   ;;  %v2237_v26 = vld [vmem:[%s2923_s1 + $0x178] sm:$0xff]  }
  0x20   :  { %1824 = vmatpush3.bf16.msra.mxu0 %v2159_v30  ;;  %v2238_v27 = vld [vmem:[%s2923_s1 + $0x1f8] sm:$0xff]   ;;  %v2241_v35 = vld [vmem:[%s2924_s0 + $0x10] ss:$36 sps:$4 sm:$0xff]  }
  0x21   :  { %1888 = vmatpush3.bf16.msra.mxu1 %v2160_v31  ;;  %1937 = vmatprep.subr.bf16.mxu0 %v2167_v36  ;;  %v2239_v28 = vld [vmem:[%s2923_s1 + $0x138] sm:$0xff]   ;;  %v2236_v31 = vld [vmem:[%s2924_s0 + $0x200] ss:$36 sps:$4 sm:$0xff]  }
  0x22   :  { %2001 = vmatprep.subr.bf16.mxu1 %v2168_v37  ;;  %v2240_v29 = vld [vmem:[%s2923_s1 + $0x1b8] sm:$0xff]  }
  0x23   :  { %1079 = vmatmul.mubr.bf16.vlgmr.msra.gmra.mrb[0].mxu0 %v2161_v32  ;;  %v2235_v30 = vld [vmem:[%s2924_s0 + $0x1f8] ss:$36 sps:$4 sm:$0xff]   ;;  %v2247_v32 = vld [vmem:[%s2923_s1 + $0x200] sm:$0xff]  }
  0x24   :  { %1176 = vmatmul.mubr.bf16.vlgmr.msra.gmra.mrb[0].mxu1 %v2164_v34  ;;  %1938 = vmatpush3.bf16.msra.mxu0 %v2169_v38  ;;  %v2243_v33 = vld [vmem:[%s2924_s0 + $0x14] ss:$36 sps:$4 sm:$0xff]   ;;  %v2246_v34 = vld [vmem:[%s2924_s0 + $0x1c] ss:$36 sps:$4 sm:$0xff]   ;;  %v2250_v38 = vld [vmem:[%s2924_s0 + $0x64] ss:$36 sps:$4 sm:$0xff]  }
  0x25   :  { %2002 = vmatpush3.bf16.msra.mxu1 %v2170_v39  ;;  %1086 = vmatprep.mubr.bf16.mxu0 %v2171_v40  ;;  %v2244_v36 = vld [vmem:[%s2924_s0 + $0x18] ss:$36 sps:$4 sm:$0xff]   ;;  %v2254_v39 = vld [vmem:[%s2923_s1 + $0x208] sm:$0xff]   ;;  %v2261_v40 = vld [vmem:[%s2923_s1 + $0x210] sm:$0xff]  }
  0x26   :  { %1183 = vmatprep.mubr.bf16.mxu1 %v2173_v41  ;;  %1939 = vmatprep.subr.bf16.mxu0 %v2177_v44  ;;  %v2248_v37 = vld [vmem:[%s2924_s0 + $0x5c] ss:$36 sps:$4 sm:$0xff]   ;;  %v2257_v44 = vld [vmem:[%s2924_s0 + $0xac] ss:$36 sps:$4 sm:$0xff]  }
  0x27   :  { %2003 = vmatprep.subr.bf16.mxu1 %v2178_v45  ;;  %v2252_v41 = vld [vmem:[%s2924_s0 + $0x58] ss:$36 sps:$4 sm:$0xff]  }
  0x28   :  { %1940 = vmatpush3.bf16.msra.mxu0 %v2179_v46  ;;  %v2268_v45 = vld [vmem:[%s2923_s1 + $0x218] sm:$0xff]   ;;  %v2275_v46 = vld [vmem:[%s2923_s1 + $0x220] sm:$0xff]  }
  0x29   :  { %2004 = vmatpush3.bf16.msra.mxu1 %v2180_v47  ;;  %1941 = vmatprep.subr.bf16.mxu0 %v2187_v52  ;;  %v2259_v47 = vld [vmem:[%s2924_s0 + $0xa0] ss:$36 sps:$4 sm:$0xff]   ;;  %v2266_v52 = vld [vmem:[%s2924_s0 + $0xe8] ss:$36 sps:$4 sm:$0xff]  }
  0x2a   :  { %2005 = vmatprep.subr.bf16.mxu1 %v2188_v53  ;;  %v2289_v53 = vld [vmem:[%s2923_s1 + $0x230] sm:$0xff]  }
  0x2b   :  { %1087 = vmatmul.mubr.bf16.gmra.mrb[4].mxu0 %v2175_v42  ;;  %v2253_v42 = vld [vmem:[%s2924_s0 + $0x60] ss:$36 sps:$4 sm:$0xff]  }
  0x2c   :  { %1184 = vmatmul.mubr.bf16.gmra.mrb[4].mxu1 %v2176_v43  ;;  %1094 = vmatprep.mubr.bf16.mxu0 %v2181_v48  ;;  %v2255_v43 = vld [vmem:[%s2924_s0 + $0xa4] ss:$36 sps:$4 sm:$0xff]  }
  0x2d   :  { %1191 = vmatprep.mubr.bf16.mxu1 %v2183_v49  ;;  %1942 = vmatpush3.bf16.msra.mxu0 %v2189_v54  ;;  %v2260_v48 = vld [vmem:[%s2924_s0 + $0xa8] ss:$36 sps:$4 sm:$0xff]   ;;  %v2267_v54 = vld [vmem:[%s2924_s0 + $0xf0] ss:$36 sps:$4 sm:$0xff]  }
  0x2e   :  { %2006 = vmatpush3.bf16.msra.mxu1 %v2190_v55  ;;  %1943 = vmatprep.subr.bf16.mxu0 %v2197_v60  ;;  %v2262_v49 = vld [vmem:[%s2924_s0 + $0xec] ss:$36 sps:$4 sm:$0xff]   ;;  %v2269_v55 = vld [vmem:[%s2924_s0 + $0x134] ss:$36 sps:$4 sm:$0xff]   ;;  %v2276_v60 = vld [vmem:[%s2924_s0 + $0x17c] ss:$36 sps:$4 sm:$0xff]  }
  0x2f   :  { %2007 = vmatprep.subr.bf16.mxu1 %v2198_v61  ;;  %v2278_v61 = vld [vmem:[%s2924_s0 + $0x184] ss:$36 sps:$4 sm:$0xff]  }
  0x31   :  { %1944 = vmatpush3.bf16.msra.mxu0 %v2199_v62  ;;  %v2280_v62 = vld [vmem:[%s2924_s0 + $0x178] ss:$36 sps:$4 sm:$0xff]  }
  0x32   :  { %2008 = vmatpush3.bf16.msra.mxu1 %v2200_v63  ;;  %1945 = vmatprep.subr.bf16.mxu0 %v2207_v3  ;;  %v2281_v63 = vld [vmem:[%s2924_s0 + $0x180] ss:$36 sps:$4 sm:$0xff]   ;;  %v2288_v3 = vld [vmem:[%s2924_s0 + $0x1c8] ss:$36 sps:$4 sm:$0xff]  }
  0x33   :  { %1095 = vmatmul.mubr.bf16.gmra.mrb[8].mxu0 %v2185_v50  ;;  %2009 = vmatprep.subr.bf16.mxu1 %v2208_v5  ;;  %v2264_v50 = vld [vmem:[%s2924_s0 + $0xf4] ss:$36 sps:$4 sm:$0xff]  }
  0x34   :  { %1192 = vmatmul.mubr.bf16.gmra.mrb[8].mxu1 %v2186_v51  ;;  %1102 = vmatprep.mubr.bf16.mxu0 %v2191_v56  ;;  %v2282_v51 = vld [vmem:[%s2923_s1 + $0x228] sm:$0xff]   ;;  %v2271_v56 = vld [vmem:[%s2924_s0 + $0x13c] ss:$36 sps:$4 sm:$0xff]   ;;  %v2292_v5 = vld [vmem:[%s2924_s0 + $0x214] ss:$36 sps:$4 sm:$0xff]  }
  0x35   :  { %1199 = vmatprep.mubr.bf16.mxu1 %v2193_v57  ;;  %1946 = vmatpush3.bf16.msra.mxu0 %v2209_v6  ;;  %v2296_v57 = vld [vmem:[%s2923_s1 + $0x238] sm:$0xff]   ;;  %v2294_v6 = vld [vmem:[%s2924_s0 + $0x208] ss:$36 sps:$4 sm:$0xff]  }
  0x36   :  { %2010 = vmatpush3.bf16.msra.mxu1 %v2210_v7  ;;  %1947 = vmatprep.subr.bf16.mxu0 %v2217_v10  ;;  %v2295_v7 = vld [vmem:[%s2924_s0 + $0x210] ss:$36 sps:$4 sm:$0xff]   ;;  %v2299_v10 = vld [vmem:[%s2924_s0 + $0x68] ss:$36 sps:$4 sm:$0xff]  }
  0x37   :  { %2011 = vmatprep.subr.bf16.mxu1 %v2218_v11  ;;  %v2300_v11 = vld [vmem:[%s2924_s0 + $0x188] ss:$36 sps:$4 sm:$0xff]  }
  0x39   :  { %1948 = vmatpush3.bf16.msra.mxu0 %v2219_v13  ;;  %v2302_v13 = vld [vmem:[%s2924_s0 + $0x1d0] ss:$36 sps:$4 sm:$0xff]  }
  0x3a   :  { %2012 = vmatpush3.bf16.msra.mxu1 %v2220_v14  ;;  %1949 = vmatprep.subr.bf16.mxu0 %v2227_v18  ;;  %v2303_v14 = vld [vmem:[%s2924_s0 + $0xf8] ss:$36 sps:$4 sm:$0xff]   ;;  %v2760_v18 = vld [vmem:[%s2925_s2] ss:$0 sm:$0xff] }
  0x3b   :  { %1103 = vmatmul.mubr.bf16.gmra.mrb[12].mxu0 %v2195_v58  ;;  %2013 = vmatprep.subr.bf16.mxu1 %v2228_v19  ;;  %v2273_v58 = vld [vmem:[%s2924_s0 + $0x130] ss:$36 sps:$4 sm:$0xff]  }
  0x3c   :  { %1200 = vmatmul.mubr.bf16.gmra.mrb[12].mxu1 %v2196_v59  ;;  %1110 = vmatprep.mubr.bf16.mxu0 %v2201_v0  ;;  %v2274_v59 = vld [vmem:[%s2924_s0 + $0x138] ss:$36 sps:$4 sm:$0xff]   ;;  %v2283_v0 = vld [vmem:[%s2924_s0 + $0x1c4] ss:$36 sps:$4 sm:$0xff]  }
  0x3d   :  { %1207 = vmatprep.mubr.bf16.mxu1 %v2203_v1  ;;  %1950 = vmatpush3.bf16.msra.mxu0 %v2229_v20  ;;  %v2285_v1 = vld [vmem:[%s2924_s0 + $0x1cc] ss:$36 sps:$4 sm:$0xff]  }
  0x3e   :  { %2014 = vmatpush3.bf16.msra.mxu1 %v2230_v21  ;;  %1951 = vmatprep.subr.bf16.mxu0 %v2237_v26 }
  0x3f   :  { %2015 = vmatprep.subr.bf16.mxu1 %v2238_v27 }
  0x41   :  { %1952 = vmatpush3.bf16.msra.mxu0 %v2239_v28 }
  0x42   :  { %2016 = vmatpush3.bf16.msra.mxu1 %v2240_v29  ;;  %2081 = vmatprep.subr.bf16.mxu0 %v2247_v32 }
  0x43   :  { %1111 = vmatmul.mubr.bf16.gmra.mrb[16].mxu0 %v2205_v2  ;;  %2113 = vmatprep.subr.bf16.mxu1 %v2247_v32  ;;  %v2287_v2 = vld [vmem:[%s2924_s0 + $0x1c0] ss:$36 sps:$4 sm:$0xff]  }
  0x44   :  { %1208 = vmatmul.mubr.bf16.gmra.mrb[16].mxu1 %v2206_v4  ;;  %1118 = vmatprep.mubr.bf16.mxu0 %v2211_v8  ;;  %v2290_v4 = vld [vmem:[%s2924_s0 + $0x20c] ss:$36 sps:$4 sm:$0xff]   ;;  %v2297_v8 = vld [vmem:[%s2924_s0 + $0x20] ss:$36 sps:$4 sm:$0xff]  }
  0x45   :  { %1215 = vmatprep.mubr.bf16.mxu1 %v2213_v9  ;;  %v2298_v9 = vld [vmem:[%s2924_s0 + $0x140] ss:$36 sps:$4 sm:$0xff]  }
  0x4b   :  { %1119 = vmatmul.mubr.bf16.gmra.mrb[20].mxu0 %v2215_v12  ;;  %v2301_v12 = vld [vmem:[%s2924_s0 + $0xb0] ss:$36 sps:$4 sm:$0xff]  }
  0x4c   :  { %1216 = vmatmul.mubr.bf16.gmra.mrb[20].mxu1 %v2216_v15  ;;  %1126 = vmatprep.mubr.bf16.mxu0 %v2221_v16  ;;  %v2304_v15 = vld [vmem:[%s2924_s0 + $0x218] ss:$36 sps:$4 sm:$0xff]  }
  0x4d   :  { %1223 = vmatprep.mubr.bf16.mxu1 %v2223_v17 }
  0x53   :  { %1127 = vmatmul.mubr.bf16.gmra.mrb[24].mxu0 %v2225_v22 }
  0x54   :  { %1224 = vmatmul.mubr.bf16.gmra.mrb[24].mxu1 %v2226_v23  ;;  %1134 = vmatprep.mubr.bf16.mxu0 %v2231_v24 }
  0x55   :  { %1231 = vmatprep.mubr.bf16.mxu1 %v2233_v25 }
  0x5b   :  { %1135 = vmatmul.mubr.bf16.gmra.mrb[28].mxu0 %v2235_v30 }
  0x5c   :  { %1232 = vmatmul.mubr.bf16.gmra.mrb[28].mxu1 %v2236_v31  ;;  %1272 = vmatprep.mubr.bf16.mxu0 %v2243_v33 }
  0x5d   :  { %1369 = vmatprep.mubr.bf16.mxu1 %v2246_v34 }
  0x63   :  { %1273 = vmatmul.mubr.bf16.vlgmr.msra.gmra.mrb[32].mxu0 %v2241_v35 }
  0x64   :  { %1370 = vmatmul.mubr.bf16.vlgmr.msra.gmra.mrb[32].mxu1 %v2244_v36  ;;  %2082 = vmatpush3.bf16.msra.mxu0 %v2247_v32 }
  0x65   :  { %2121 = vmatpush3.bf16.msra.mxu1 %v2247_v32  ;;  %1280 = vmatprep.mubr.bf16.mxu0 %v2248_v37 }
  0x66   :  { %1377 = vmatprep.mubr.bf16.mxu1 %v2250_v38  ;;  %2083 = vmatprep.subr.bf16.mxu0 %v2254_v39 }
  0x67   :  { %2114 = vmatprep.subr.bf16.mxu1 %v2254_v39 }
  0x68   :  { %2084 = vmatpush3.bf16.msra.mxu0 %v2254_v39 }
  0x69   :  { %2122 = vmatpush3.bf16.msra.mxu1 %v2254_v39  ;;  %2085 = vmatprep.subr.bf16.mxu0 %v2261_v40 }
  0x6a   :  { %2115 = vmatprep.subr.bf16.mxu1 %v2261_v40 }
  0x6b   :  { %1281 = vmatmul.mubr.bf16.gmra.mrb[36].mxu0 %v2252_v41 }
  0x6c   :  { %1378 = vmatmul.mubr.bf16.gmra.mrb[36].mxu1 %v2253_v42  ;;  %1288 = vmatprep.mubr.bf16.mxu0 %v2255_v43 }
  0x6d   :  { %1385 = vmatprep.mubr.bf16.mxu1 %v2257_v44  ;;  %2086 = vmatpush3.bf16.msra.mxu0 %v2261_v40 }
  0x6e   :  { %2123 = vmatpush3.bf16.msra.mxu1 %v2261_v40  ;;  %2087 = vmatprep.subr.bf16.mxu0 %v2268_v45 }
  0x6f   :  { %2116 = vmatprep.subr.bf16.mxu1 %v2268_v45 }
  0x71   :  { %2088 = vmatpush3.bf16.msra.mxu0 %v2268_v45 }
  0x72   :  { %2124 = vmatpush3.bf16.msra.mxu1 %v2268_v45  ;;  %2089 = vmatprep.subr.bf16.mxu0 %v2275_v46 }
  0x73   :  { %1289 = vmatmul.mubr.bf16.gmra.mrb[40].mxu0 %v2259_v47  ;;  %2117 = vmatprep.subr.bf16.mxu1 %v2275_v46 }
  0x74   :  { %1386 = vmatmul.mubr.bf16.gmra.mrb[40].mxu1 %v2260_v48  ;;  %1296 = vmatprep.mubr.bf16.mxu0 %v2262_v49 }
  0x75   :  { %1393 = vmatprep.mubr.bf16.mxu1 %v2264_v50  ;;  %2090 = vmatpush3.bf16.msra.mxu0 %v2275_v46 }
  0x76   :  { %2125 = vmatpush3.bf16.msra.mxu1 %v2275_v46  ;;  %2091 = vmatprep.subr.bf16.mxu0 %v2282_v51 }
  0x77   :  { %2118 = vmatprep.subr.bf16.mxu1 %v2282_v51 }
  0x79   :  { %2092 = vmatpush3.bf16.msra.mxu0 %v2282_v51 }
  0x7a   :  { %2126 = vmatpush3.bf16.msra.mxu1 %v2282_v51  ;;  %2093 = vmatprep.subr.bf16.mxu0 %v2289_v53 }
  0x7b   :  { %1297 = vmatmul.mubr.bf16.gmra.mrb[44].mxu0 %v2266_v52  ;;  %2119 = vmatprep.subr.bf16.mxu1 %v2289_v53 }
  0x7c   :  { %1394 = vmatmul.mubr.bf16.gmra.mrb[44].mxu1 %v2267_v54  ;;  %1304 = vmatprep.mubr.bf16.mxu0 %v2269_v55 }
  0x7d   :  { %1401 = vmatprep.mubr.bf16.mxu1 %v2271_v56  ;;  %2094 = vmatpush3.bf16.msra.mxu0 %v2289_v53 }
  0x7e   :  { %2127 = vmatpush3.bf16.msra.mxu1 %v2289_v53  ;;  %2095 = vmatprep.subr.bf16.mxu0 %v2296_v57 }
  0x7f   :  { %2120 = vmatprep.subr.bf16.mxu1 %v2296_v57 }
  0x81   :  { %2096 = vmatpush3.bf16.msra.mxu0 %v2296_v57 }
  0x82   :  { %2128 = vmatpush3.bf16.msra.mxu1 %v2296_v57 }
  0x83   :  { %1305 = vmatmul.mubr.bf16.gmra.mrb[48].mxu0 %v2273_v58 }
  0x84   :  { %1402 = vmatmul.mubr.bf16.gmra.mrb[48].mxu1 %v2274_v59  ;;  %1312 = vmatprep.mubr.bf16.mxu0 %v2276_v60 }
  0x85   :  { %1409 = vmatprep.mubr.bf16.mxu1 %v2278_v61 }
  0x8b   :  { %1313 = vmatmul.mubr.bf16.gmra.mrb[52].mxu0 %v2280_v62 }
  0x8c   :  { %1410 = vmatmul.mubr.bf16.gmra.mrb[52].mxu1 %v2281_v63  ;;  %1320 = vmatprep.mubr.bf16.mxu0 %v2283_v0 }
  0x8d   :  { %1417 = vmatprep.mubr.bf16.mxu1 %v2285_v1 }
  0x93   :  { %1321 = vmatmul.mubr.bf16.gmra.mrb[56].mxu0 %v2287_v2 }
  0x94   :  { %1418 = vmatmul.mubr.bf16.gmra.mrb[56].mxu1 %v2288_v3  ;;  %1328 = vmatprep.mubr.bf16.mxu0 %v2290_v4 }
  0x95   :  { %1425 = vmatprep.mubr.bf16.mxu1 %v2292_v5 }
  0x9b   :  { %1329 = vmatmul.mubr.bf16.gmra.mrb[60].mxu0 %v2294_v6 }
  0x9c   :  { %1426 = vmatmul.mubr.bf16.gmra.mrb[60].mxu1 %v2295_v7  ;;  %2097 = vmatprep.mubr.bf16.mxu0 %v2297_v8 }
  0x9d   :  { %2105 = vmatprep.mubr.bf16.mxu1 %v2298_v9 }
  0xa3   :  { %2098 = vmatmul.mubr.bf16.vlgmr.msra.gmra.mrb[64].mxu0 %v2299_v10 }
  0xa4   :  { %2106 = vmatmul.mubr.bf16.vlgmr.msra.gmra.mrb[64].mxu1 %v2300_v11  ;;  %2101 = vmatprep.mubr.bf16.mxu0 %v2301_v12 }
  0xa5   :  { %2109 = vmatprep.mubr.bf16.mxu1 %v2302_v13 }
  0xab   :  { %2102 = vmatmul.mubr.bf16.gmra.mrb[68].mxu0 %v2303_v14 }
  0xac   :  { %2110 = vmatmul.mubr.bf16.gmra.mrb[68].mxu1 %v2304_v15 }
  0xf6   :  { %v1825_v16 = vpop.f32.mrb[0].mxu0 }
  0xf7   :  { %v1889_v17 = vpop.f32.mrb[0].mxu1  ;;  %v1826_v19 = vpop.f32.mrb[1].mxu0 }
  0xf8   :  { %v1827_v20 = vadd.f32 %v1826_v19, %v1825_v16  ;;  %v1890_v21 = vpop.f32.mrb[1].mxu1  ;;  %v1828_v22 = vpop.f32.mrb[2].mxu0 }
  0xf9   :  { %v1891_v23 = vadd.f32 %v1890_v21, %v1889_v17  ;;  %v1892_v24 = vpop.f32.mrb[2].mxu1  ;;  %v1829_v25 = vpop.f32.mrb[3].mxu0 }
  0xfa   :  { %v1081_v26 = vadd.f32 %v1827_v20, %v2760_v18  ;;  %v1830_v27 = vadd.f32 %v1829_v25, %v1828_v22  ;;  %v1893_v28 = vpop.f32.mrb[3].mxu1 }
  0xfb   :  { %v1894_v29 = vadd.f32 %v1893_v28, %v1892_v24 }
  0xfc   :  { %v2763_v30 = vadd.f32 %v1891_v23, %v1081_v26  ;;  %v1084_v31 = vadd.f32 %v1830_v27, %v2760_v18 }
  0xfe   :  { %v2766_v32 = vadd.f32 %v1894_v29, %v1084_v31  ;;  %v1831_v33 = vpop.f32.mrb[4].mxu0 }
  0xff   :  { %v1895_v34 = vpop.f32.mrb[4].mxu1  ;;  %v1832_v35 = vpop.f32.mrb[5].mxu0 }
 0x100   :  { %v1833_v36 = vadd.f32 %v1832_v35, %v1831_v33  ;;  %v1896_v37 = vpop.f32.mrb[5].mxu1  ;;  %v1834_v38 = vpop.f32.mrb[6].mxu0 }
 0x101   :  { %v1897_v39 = vadd.f32 %v1896_v37, %v1895_v34  ;;  %v1898_v40 = vpop.f32.mrb[6].mxu1  ;;  %v1835_v41 = vpop.f32.mrb[7].mxu0 }
 0x102   :  { %v1089_v42 = vadd.f32 %v1833_v36, %v2760_v18  ;;  %v1836_v43 = vadd.f32 %v1835_v41, %v1834_v38  ;;  %v1899_v44 = vpop.f32.mrb[7].mxu1 }
 0x103   :  { %v1900_v45 = vadd.f32 %v1899_v44, %v1898_v40 }
 0x104   :  { %v2769_v46 = vadd.f32 %v1897_v39, %v1089_v42  ;;  %v1092_v47 = vadd.f32 %v1836_v43, %v2760_v18 }
 0x106   :  { %v2772_v48 = vadd.f32 %v1900_v45, %v1092_v47  ;;  %v1837_v49 = vpop.f32.mrb[8].mxu0 }
 0x107   :  { %v1901_v50 = vpop.f32.mrb[8].mxu1  ;;  %v1838_v51 = vpop.f32.mrb[9].mxu0 }
 0x108   :  { %v1839_v52 = vadd.f32 %v1838_v51, %v1837_v49  ;;  %v1902_v53 = vpop.f32.mrb[9].mxu1  ;;  %v1840_v54 = vpop.f32.mrb[10].mxu0 }
 0x109   :  { %v1903_v55 = vadd.f32 %v1902_v53, %v1901_v50  ;;  %v1904_v56 = vpop.f32.mrb[10].mxu1  ;;  %v1841_v57 = vpop.f32.mrb[11].mxu0 }
 0x10a   :  { %v1097_v58 = vadd.f32 %v1839_v52, %v2760_v18  ;;  %v1842_v59 = vadd.f32 %v1841_v57, %v1840_v54  ;;  %v1905_v60 = vpop.f32.mrb[11].mxu1 }
 0x10b   :  { %v1906_v61 = vadd.f32 %v1905_v60, %v1904_v56 }
 0x10c   :  { %v2775_v62 = vadd.f32 %v1903_v55, %v1097_v58  ;;  %v1100_v63 = vadd.f32 %v1842_v59, %v2760_v18 }
 0x10e   :  { %v2778_v0 = vadd.f32 %v1906_v61, %v1100_v63  ;;  %v1843_v1 = vpop.f32.mrb[12].mxu0 }
 0x10f   :  { %v1907_v2 = vpop.f32.mrb[12].mxu1  ;;  %v1844_v3 = vpop.f32.mrb[13].mxu0 }
 0x110   :  { %v1845_v4 = vadd.f32 %v1844_v3, %v1843_v1  ;;  %v1908_v5 = vpop.f32.mrb[13].mxu1  ;;  %v1846_v6 = vpop.f32.mrb[14].mxu0 }
 0x111   :  { %v1909_v7 = vadd.f32 %v1908_v5, %v1907_v2  ;;  %v1910_v8 = vpop.f32.mrb[14].mxu1  ;;  %v1847_v9 = vpop.f32.mrb[15].mxu0 }
 0x112   :  { %v1105_v10 = vadd.f32 %v1845_v4, %v2760_v18  ;;  %v1848_v11 = vadd.f32 %v1847_v9, %v1846_v6  ;;  %v1911_v12 = vpop.f32.mrb[15].mxu1 }
 0x113   :  { %v1912_v13 = vadd.f32 %v1911_v12, %v1910_v8 }
 0x114   :  { %v2781_v14 = vadd.f32 %v1909_v7, %v1105_v10  ;;  %v1108_v15 = vadd.f32 %v1848_v11, %v2760_v18 }
 0x116   :  { %v2784_v16 = vadd.f32 %v1912_v13, %v1108_v15  ;;  %v1849_v17 = vpop.f32.mrb[16].mxu0 }
 0x117   :  { %v1913_v19 = vpop.f32.mrb[16].mxu1  ;;  %v1850_v20 = vpop.f32.mrb[17].mxu0 }
 0x118   :  { %v1851_v21 = vadd.f32 %v1850_v20, %v1849_v17  ;;  %v1914_v22 = vpop.f32.mrb[17].mxu1  ;;  %v1852_v23 = vpop.f32.mrb[18].mxu0 }
 0x119   :  { %v1915_v24 = vadd.f32 %v1914_v22, %v1913_v19  ;;  %v1916_v25 = vpop.f32.mrb[18].mxu1  ;;  %v1853_v26 = vpop.f32.mrb[19].mxu0 }
 0x11a   :  { %v1113_v27 = vadd.f32 %v1851_v21, %v2760_v18  ;;  %v1854_v28 = vadd.f32 %v1853_v26, %v1852_v23  ;;  %v1917_v29 = vpop.f32.mrb[19].mxu1 }
 0x11b   :  { %v1918_v31 = vadd.f32 %v1917_v29, %v1916_v25 }
 0x11c   :  { %v2787_v33 = vadd.f32 %v1915_v24, %v1113_v27  ;;  %v1116_v34 = vadd.f32 %v1854_v28, %v2760_v18 }
 0x11e   :  { %v2790_v35 = vadd.f32 %v1918_v31, %v1116_v34  ;;  %v1855_v36 = vpop.f32.mrb[20].mxu0 }
 0x11f   :  { %v1919_v37 = vpop.f32.mrb[20].mxu1  ;;  %v1856_v38 = vpop.f32.mrb[21].mxu0 }
 0x120   :  { %v1857_v39 = vadd.f32 %v1856_v38, %v1855_v36  ;;  %v1920_v40 = vpop.f32.mrb[21].mxu1  ;;  %v1858_v41 = vpop.f32.mrb[22].mxu0 }
 0x121   :  { %v1921_v42 = vadd.f32 %v1920_v40, %v1919_v37  ;;  %v1922_v43 = vpop.f32.mrb[22].mxu1  ;;  %v1859_v44 = vpop.f32.mrb[23].mxu0 }
 0x122   :  { %v1121_v45 = vadd.f32 %v1857_v39, %v2760_v18  ;;  %v1860_v47 = vadd.f32 %v1859_v44, %v1858_v41  ;;  %v1923_v49 = vpop.f32.mrb[23].mxu1 }
 0x123   :  { %v1924_v50 = vadd.f32 %v1923_v49, %v1922_v43 }
 0x124   :  { %v2793_v51 = vadd.f32 %v1921_v42, %v1121_v45  ;;  %v1124_v52 = vadd.f32 %v1860_v47, %v2760_v18 }
 0x126   :  { %v2796_v53 = vadd.f32 %v1924_v50, %v1124_v52  ;;  %v1861_v54 = vpop.f32.mrb[24].mxu0 }
 0x127   :  { %v1925_v55 = vpop.f32.mrb[24].mxu1  ;;  %v1862_v56 = vpop.f32.mrb[25].mxu0 }
 0x128   :  { %v1863_v57 = vadd.f32 %v1862_v56, %v1861_v54  ;;  %v1926_v58 = vpop.f32.mrb[25].mxu1  ;;  %v1864_v59 = vpop.f32.mrb[26].mxu0 }
 0x129   :  { %v1927_v60 = vadd.f32 %v1926_v58, %v1925_v55  ;;  %v1928_v61 = vpop.f32.mrb[26].mxu1  ;;  %v1865_v63 = vpop.f32.mrb[27].mxu0 }
 0x12a   :  { %v1129_v1 = vadd.f32 %v1863_v57, %v2760_v18  ;;  %v1866_v2 = vadd.f32 %v1865_v63, %v1864_v59  ;;  %v1929_v3 = vpop.f32.mrb[27].mxu1 }
 0x12b   :  { %v1930_v4 = vadd.f32 %v1929_v3, %v1928_v61 }
 0x12c   :  { %v2799_v5 = vadd.f32 %v1927_v60, %v1129_v1  ;;  %v1132_v6 = vadd.f32 %v1866_v2, %v2760_v18 }
 0x12e   :  { %v2802_v7 = vadd.f32 %v1930_v4, %v1132_v6  ;;  %v1867_v8 = vpop.f32.mrb[28].mxu0 }
 0x12f   :  { %v1931_v9 = vpop.f32.mrb[28].mxu1  ;;  %v1868_v10 = vpop.f32.mrb[29].mxu0 }
 0x130   :  { %v1869_v11 = vadd.f32 %v1868_v10, %v1867_v8  ;;  %v1932_v12 = vpop.f32.mrb[29].mxu1  ;;  %v1870_v13 = vpop.f32.mrb[30].mxu0 }
 0x131   :  { %v1933_v15 = vadd.f32 %v1932_v12, %v1931_v9  ;;  %v1934_v17 = vpop.f32.mrb[30].mxu1  ;;  %v1871_v19 = vpop.f32.mrb[31].mxu0 }
 0x132   :  { %v1137_v20 = vadd.f32 %v1869_v11, %v2760_v18  ;;  %v1872_v21 = vadd.f32 %v1871_v19, %v1870_v13  ;;  %v1935_v22 = vpop.f32.mrb[31].mxu1 }
 0x133   :  { %v1936_v23 = vadd.f32 %v1935_v22, %v1934_v17 }
 0x134   :  { %v2805_v24 = vadd.f32 %v1933_v15, %v1137_v20  ;;  %v1140_v25 = vadd.f32 %v1872_v21, %v2760_v18 }
 0x136   :  { %v2808_v26 = vadd.f32 %v1936_v23, %v1140_v25  ;;  %v1953_v27 = vpop.f32.mrb[32].mxu0 }
 0x137   :  { %v2017_v28 = vpop.f32.mrb[32].mxu1  ;;  %v1954_v29 = vpop.f32.mrb[33].mxu0 }
 0x138   :  { %v1955_v31 = vadd.f32 %v1954_v29, %v1953_v27  ;;  %v2018_v34 = vpop.f32.mrb[33].mxu1  ;;  %v1956_v36 = vpop.f32.mrb[34].mxu0 }
 0x139   :  { %v2019_v37 = vadd.f32 %v2018_v34, %v2017_v28  ;;  %v2020_v38 = vpop.f32.mrb[34].mxu1  ;;  %v1957_v39 = vpop.f32.mrb[35].mxu0 }
 0x13a   :  { %v1275_v40 = vadd.f32 %v1955_v31, %v2763_v30  ;;  %v1958_v41 = vadd.f32 %v1957_v39, %v1956_v36  ;;  %v2021_v42 = vpop.f32.mrb[35].mxu1 }
 0x13b   :  { %v2022_v43 = vadd.f32 %v2021_v42, %v2020_v38 }
 0x13c   :  { %v1278_v44 = vadd.f32 %v1958_v41, %v2766_v32  ;;  %v2812_v45 = vadd.f32 %v2019_v37, %v1275_v40 }
 0x13e   :  { %v1959_v18 = vpop.f32.mrb[36].mxu0  ;;  %v2814_v47 = vadd.f32 %v2022_v43, %v1278_v44 }
 0x13f   :  { %v2023_v49 = vpop.f32.mrb[36].mxu1  ;;  %v1960_v50 = vpop.f32.mrb[37].mxu0 }
 0x140   :  { %v1961_v52 = vadd.f32 %v1960_v50, %v1959_v18  ;;  %v2024_v54 = vpop.f32.mrb[37].mxu1  ;;  %v1962_v55 = vpop.f32.mrb[38].mxu0 }
 0x141   :  { %v2025_v56 = vadd.f32 %v2024_v54, %v2023_v49  ;;  %v2026_v57 = vpop.f32.mrb[38].mxu1  ;;  %v1963_v58 = vpop.f32.mrb[39].mxu0 }
 0x142   :  { %v1283_v30 = vadd.f32 %v1961_v52, %v2769_v46  ;;  %v1964_v59 = vadd.f32 %v1963_v58, %v1962_v55  ;;  %v2027_v60 = vpop.f32.mrb[39].mxu1 }
 0x143   :  { %v2028_v61 = vadd.f32 %v2027_v60, %v2026_v57 }
 0x144   :  { %v1286_v32 = vadd.f32 %v1964_v59, %v2772_v48  ;;  %v2818_v63 = vadd.f32 %v2025_v56, %v1283_v30 }
 0x146   :  { %v1965_v1 = vpop.f32.mrb[40].mxu0  ;;  %v2820_v2 = vadd.f32 %v2028_v61, %v1286_v32 }
 0x147   :  { %v2029_v3 = vpop.f32.mrb[40].mxu1  ;;  %v1966_v4 = vpop.f32.mrb[41].mxu0 }
 0x148   :  { %v1967_v6 = vadd.f32 %v1966_v4, %v1965_v1  ;;  %v2030_v8 = vpop.f32.mrb[41].mxu1  ;;  %v1968_v9 = vpop.f32.mrb[42].mxu0 }
 0x149   :  { %v2031_v10 = vadd.f32 %v2030_v8, %v2029_v3  ;;  %v2032_v11 = vpop.f32.mrb[42].mxu1  ;;  %v1969_v12 = vpop.f32.mrb[43].mxu0 }
 0x14a   :  { %v1291_v46 = vadd.f32 %v1967_v6, %v2775_v62  ;;  %v1970_v13 = vadd.f32 %v1969_v12, %v1968_v9  ;;  %v2033_v15 = vpop.f32.mrb[43].mxu1 }
 0x14b   :  { %v2034_v17 = vadd.f32 %v2033_v15, %v2032_v11 }
 0x14c   :  { %v1294_v48 = vadd.f32 %v1970_v13, %v2778_v0  ;;  %v2824_v19 = vadd.f32 %v2031_v10, %v1291_v46 }
 0x14e   :  { %v1971_v20 = vpop.f32.mrb[44].mxu0  ;;  %v2826_v21 = vadd.f32 %v2034_v17, %v1294_v48 }
 0x14f   :  { %v2035_v22 = vpop.f32.mrb[44].mxu1  ;;  %v1972_v23 = vpop.f32.mrb[45].mxu0 }
 0x150   :  { %v1973_v25 = vadd.f32 %v1972_v23, %v1971_v20  ;;  %v2036_v27 = vpop.f32.mrb[45].mxu1  ;;  %v1974_v28 = vpop.f32.mrb[46].mxu0 }
 0x151   :  { %v2037_v29 = vadd.f32 %v2036_v27, %v2035_v22  ;;  %v2038_v31 = vpop.f32.mrb[46].mxu1  ;;  %v1975_v34 = vpop.f32.mrb[47].mxu0 }
 0x152   :  { %v1299_v62 = vadd.f32 %v1973_v25, %v2781_v14  ;;  %v1976_v36 = vadd.f32 %v1975_v34, %v1974_v28  ;;  %v2039_v37 = vpop.f32.mrb[47].mxu1 }
 0x153   :  { %v2040_v38 = vadd.f32 %v2039_v37, %v2038_v31 }
 0x154   :  { %v1302_v0 = vadd.f32 %v1976_v36, %v2784_v16  ;;  %v2830_v39 = vadd.f32 %v2037_v29, %v1299_v62 }
 0x156   :  { %v1977_v40 = vpop.f32.mrb[48].mxu0  ;;  %v2832_v41 = vadd.f32 %v2040_v38, %v1302_v0 }
 0x157   :  { %v2041_v42 = vpop.f32.mrb[48].mxu1  ;;  %v1978_v43 = vpop.f32.mrb[49].mxu0 }
 0x158   :  { %v1979_v44 = vadd.f32 %v1978_v43, %v1977_v40  ;;  %v2042_v18 = vpop.f32.mrb[49].mxu1  ;;  %v1980_v49 = vpop.f32.mrb[50].mxu0 }
 0x159   :  { %v2043_v50 = vadd.f32 %v2042_v18, %v2041_v42  ;;  %v2044_v52 = vpop.f32.mrb[50].mxu1  ;;  %v1981_v54 = vpop.f32.mrb[51].mxu0 }
 0x15a   :  { %v1307_v14 = vadd.f32 %v1979_v44, %v2787_v33  ;;  %v1982_v55 = vadd.f32 %v1981_v54, %v1980_v49  ;;  %v2045_v56 = vpop.f32.mrb[51].mxu1 }
 0x15b   :  { %v2046_v57 = vadd.f32 %v2045_v56, %v2044_v52 }
 0x15c   :  { %v1310_v16 = vadd.f32 %v1982_v55, %v2790_v35  ;;  %v1404_v58 = vadd.f32 %v2043_v50, %v1307_v14 }
 0x15e   :  { %v1983_v30 = vpop.f32.mrb[52].mxu0  ;;  %v2836_v59 = vadd.f32 %v2046_v57, %v1310_v16 }
 0x15f   :  { %v2047_v60 = vpop.f32.mrb[52].mxu1  ;;  %v1984_v61 = vpop.f32.mrb[53].mxu0 }
 0x160   :  { %v1985_v32 = vadd.f32 %v1984_v61, %v1983_v30  ;;  %v2048_v1 = vpop.f32.mrb[53].mxu1  ;;  %v1986_v3 = vpop.f32.mrb[54].mxu0 }
 0x161   :  { %v2049_v4 = vadd.f32 %v2048_v1, %v2047_v60  ;;  %v2050_v6 = vpop.f32.mrb[54].mxu1  ;;  %v1987_v8 = vpop.f32.mrb[55].mxu0 }
 0x162   :  { %v1315_v9 = vadd.f32 %v1985_v32, %v2793_v51  ;;  %v1988_v33 = vadd.f32 %v1987_v8, %v1986_v3  ;;  %v2051_v10 = vpop.f32.mrb[55].mxu1 }
 0x163   :  { %v2052_v11 = vadd.f32 %v2051_v10, %v2050_v6 }
 0x164   :  { %v1318_v12 = vadd.f32 %v1988_v33, %v2796_v53  ;;  %v1412_v35 = vadd.f32 %v2049_v4, %v1315_v9 }
 0x166   :  { %v1989_v46 = vpop.f32.mrb[56].mxu0  ;;  %v1415_v13 = vadd.f32 %v2052_v11, %v1318_v12 }
 0x167   :  { %v2053_v15 = vpop.f32.mrb[56].mxu1  ;;  %v1990_v17 = vpop.f32.mrb[57].mxu0 }
 0x168   :  { %v1991_v48 = vadd.f32 %v1990_v17, %v1989_v46  ;;  %v2054_v20 = vpop.f32.mrb[57].mxu1  ;;  %v1992_v22 = vpop.f32.mrb[58].mxu0 }
 0x169   :  { %v2055_v23 = vadd.f32 %v2054_v20, %v2053_v15  ;;  %v2056_v25 = vpop.f32.mrb[58].mxu1  ;;  %v1993_v27 = vpop.f32.mrb[59].mxu0 }
 0x16a   :  { %v1323_v28 = vadd.f32 %v1991_v48, %v2799_v5  ;;  %v1994_v29 = vadd.f32 %v1993_v27, %v1992_v22  ;;  %v2057_v51 = vpop.f32.mrb[59].mxu1 }
 0x16b   :  { %v2058_v31 = vadd.f32 %v2057_v51, %v2056_v25 }
 0x16c   :  { %v1326_v34 = vadd.f32 %v1994_v29, %v2802_v7  ;;  %v2842_v62 = vadd.f32 %v2055_v23, %v1323_v28 }
 0x16e   :  { %v1995_v53 = vpop.f32.mrb[60].mxu0  ;;  %v2844_v36 = vadd.f32 %v2058_v31, %v1326_v34 }
 0x16f   :  { %v2059_v37 = vpop.f32.mrb[60].mxu1  ;;  %v1996_v38 = vpop.f32.mrb[61].mxu0 }
 0x170   :  { %v1997_v0 = vadd.f32 %v1996_v38, %v1995_v53  ;;  %v2060_v40 = vpop.f32.mrb[61].mxu1  ;;  %v1998_v42 = vpop.f32.mrb[62].mxu0 }
 0x171   :  { %v2061_v43 = vadd.f32 %v2060_v40, %v2059_v37  ;;  %v2062_v44 = vpop.f32.mrb[62].mxu1  ;;  %v1999_v18 = vpop.f32.mrb[63].mxu0 }
 0x172   :  { %v1331_v5 = vadd.f32 %v1997_v0, %v2805_v24  ;;  %v2000_v49 = vadd.f32 %v1999_v18, %v1998_v42  ;;  %v2063_v50 = vpop.f32.mrb[63].mxu1 }
 0x173   :  { %v2064_v52 = vadd.f32 %v2063_v50, %v2062_v44 }
 0x174   :  { %v1334_v7 = vadd.f32 %v2000_v49, %v2808_v26  ;;  %v1428_v54 = vadd.f32 %v2061_v43, %v1331_v5 }
 0x176   :  { %v2099_v14 = vpop.f32.mrb[64].mxu0  ;;  %v1431_v55 = vadd.f32 %v2064_v52, %v1334_v7 }
 0x177   :  { %v1477_v56 = vadd.f32 %v2099_v14, %v2818_v63  ;;  %v2107_v57 = vpop.f32.mrb[64].mxu1  ;;  %v1468_v16 = vpop.f32.mrb[65].mxu0 }
 0x178   :  { %v1509_v30 = vadd.f32 %v2107_v57, %v1412_v35  ;;  %v1469_v60 = vadd.f32 %v1468_v16, %v2812_v45  ;;  %v1500_v61 = vpop.f32.mrb[65].mxu1  ;;  %v2100_v32 = vpop.f32.mrb[66].mxu0 }
 0x179   :  { %v1533_v1 = vmax.f32 %v1477_v56, 0.0  ;;  %v1501_v24 = vadd.f32 %v1500_v61, %v1404_v58  ;;  %v1480_v3 = vadd.f32 %v2100_v32, %v2820_v2  ;;  %v2108_v4 = vpop.f32.mrb[66].mxu1  ;;  %v1471_v6 = vpop.f32.mrb[67].mxu0 }
 0x17a   :  { %v1541_v26 = vmax.f32 %v1509_v30, 0.0  ;;  %v1531_v8 = vmax.f32 %v1469_v60, 0.0  ;;  %v1512_v9 = vadd.f32 %v2108_v4, %v1415_v13  ;;  %v1472_v33 = vadd.f32 %v1471_v6, %v2814_v47  ;;  %v1503_v63 = vpop.f32.mrb[67].mxu1 }
 0x17b   :  { %v1795_v10 = vpack.c.bf16 %v1533_v1, %v1533_v1  ;;  %v1539_v11 = vmax.f32 %v1501_v24, 0.0  ;;  %v1534_v12 = vmax.f32 %v1480_v3, 0.0  ;;  %v1504_v45 = vadd.f32 %v1503_v63, %v2836_v59 }
 0x17c   :  { %v1803_v35 = vpack.c.bf16 %v1541_v26, %v1541_v26  ;;  %v1793_v46 = vpack.c.bf16 %v1531_v8, %v1531_v8  ;;  %v1542_v15 = vmax.f32 %v1512_v9, 0.0  ;;  %v1532_v17 = vmax.f32 %v1472_v33, 0.0 }
 0x17d   :  { %1614 = vst.msk [vmem:[%s2926_s3 + $0x8] sm:$0xf] %vm1611_vm0, %v1795_v10  ;;  %v1801_v2 = vpack.c.bf16 %v1539_v11, %v1539_v11  ;;  %v1796_v58 = vpack.c.bf16 %v1534_v12, %v1534_v12  ;;  %v1540_v13 = vmax.f32 %v1504_v45, 0.0 }
 0x17e   :  { %1622 = vst.msk [vmem:[%s2926_s3 + $0x28] sm:$0xf] %vm1611_vm0, %v1803_v35  ;;  %1612 = vst.msk [vmem:[%s2926_s3] sm:$0xf] %vm1611_vm0, %v1793_v46  ;;  %v1804_v47 = vpack.c.bf16 %v1542_v15, %v1542_v15  ;;  %v1794_v59 = vpack.c.bf16 %v1532_v17, %v1532_v17  ;;  %v2103_v48 = vpop.f32.mrb[68].mxu0 }
 0x17f   :  { %1620 = vst.msk [vmem:[%s2926_s3 + $0x20] sm:$0xf] %vm1611_vm0, %v1801_v2  ;;  %1615 = vst.msk [vmem:[%s2926_s3 + $0xc] sm:$0xf] %vm1611_vm0, %v1796_v58  ;;  %v1802_v20 = vpack.c.bf16 %v1540_v13, %v1540_v13  ;;  %v1493_v22 = vadd.f32 %v2103_v48, %v2830_v39  ;;  %v2111_v23 = vpop.f32.mrb[68].mxu1  ;;  %v1484_v25 = vpop.f32.mrb[69].mxu0 }
 0x180   :  { %1623 = vst.msk [vmem:[%s2926_s3 + $0x2c] sm:$0xf] %vm1611_vm0, %v1804_v47  ;;  %1613 = vst.msk [vmem:[%s2926_s3 + $0x4] sm:$0xf] %vm1611_vm0, %v1794_v59  ;;  %v1525_v27 = vadd.f32 %v2111_v23, %v1428_v54  ;;  %v1485_v28 = vadd.f32 %v1484_v25, %v2824_v19  ;;  %v1516_v29 = vpop.f32.mrb[69].mxu1  ;;  %v2104_v51 = vpop.f32.mrb[70].mxu0 }
 0x181   :  { %1621 = vst.msk [vmem:[%s2926_s3 + $0x24] sm:$0xf] %vm1611_vm0, %v1802_v20  ;;  %v1537_v39 = vmax.f32 %v1493_v22, 0.0  ;;  %v1517_v31 = vadd.f32 %v1516_v29, %v2842_v62  ;;  %v1496_v34 = vadd.f32 %v2104_v51, %v2832_v41  ;;  %v2112_v53 = vpop.f32.mrb[70].mxu1  ;;  %v1487_v37 = vpop.f32.mrb[71].mxu0 }
 0x182   :  { %v1545_v38 = vmax.f32 %v1525_v27, 0.0  ;;  %v1535_v0 = vmax.f32 %v1485_v28, 0.0  ;;  %v1528_v40 = vadd.f32 %v2112_v53, %v1431_v55  ;;  %v1488_v42 = vadd.f32 %v1487_v37, %v2826_v21  ;;  %v1519_v19 = vpop.f32.mrb[71].mxu1 }
 0x183   :  { %v1799_v43 = vpack.c.bf16 %v1537_v39, %v1537_v39  ;;  %v1543_v44 = vmax.f32 %v1517_v31, 0.0  ;;  %v1538_v18 = vmax.f32 %v1496_v34, 0.0  ;;  %v1520_v5 = vadd.f32 %v1519_v19, %v2844_v36 }
 0x184   :  { %v1807_v49 = vpack.c.bf16 %v1545_v38, %v1545_v38  ;;  %v1797_v50 = vpack.c.bf16 %v1535_v0, %v1535_v0  ;;  %v1546_v52 = vmax.f32 %v1528_v40, 0.0  ;;  %v1536_v7 = vmax.f32 %v1488_v42, 0.0 }
 0x185   :  { %1618 = vst.msk [vmem:[%s2926_s3 + $0x18] sm:$0xf] %vm1611_vm0, %v1799_v43  ;;  %v1805_v41 = vpack.c.bf16 %v1543_v44, %v1543_v44  ;;  %v1800_v62 = vpack.c.bf16 %v1538_v18, %v1538_v18  ;;  %v1544_v54 = vmax.f32 %v1520_v5, 0.0 }
 0x186   :  { %1626 = vst.msk [vmem:[%s2926_s3 + $0x38] sm:$0xf] %vm1611_vm0, %v1807_v49  ;;  %1616 = vst.msk [vmem:[%s2926_s3 + $0x10] sm:$0xf] %vm1611_vm0, %v1797_v50  ;;  %v1808_v21 = vpack.c.bf16 %v1546_v52, %v1546_v52  ;;  %v1798_v36 = vpack.c.bf16 %v1536_v7, %v1536_v7 }
 0x187   :  { %1624 = vst.msk [vmem:[%s2926_s3 + $0x30] sm:$0xf] %vm1611_vm0, %v1805_v41  ;;  %1619 = vst.msk [vmem:[%s2926_s3 + $0x1c] sm:$0xf] %vm1611_vm0, %v1800_v62  ;;  %v1806_v14 = vpack.c.bf16 %v1544_v54, %v1544_v54 }
 0x188   :  { %1627 = vst.msk [vmem:[%s2926_s3 + $0x3c] sm:$0xf] %vm1611_vm0, %v1808_v21  ;;  %1617 = vst.msk [vmem:[%s2926_s3 + $0x14] sm:$0xf] %vm1611_vm0, %v1798_v36 }
 0x189   :  { %1625 = vst.msk [vmem:[%s2926_s3 + $0x34] sm:$0xf] %vm1611_vm0, %v1806_v14 }

</bundles_post_ra>
